<compile_context>
chip_gen: v6e
topology: v6e:2x2x1
jax: 0.10.0
libtpu: 0.0.40
codegen_flags: <defaults>
</compile_context>

<pallas_src>
import functools

import numpy as np
import jax
import jax.numpy as jnp
from jax import lax
from jax.experimental import pallas as pl
from jax.experimental.pallas import tpu as pltpu


def _voxelize_kernel(pts_ref, pts_t_ref, vox_ref, coors_ref, npts_ref, nvox_ref, *,
                     pmin, inv_vs, grid_dims, key_bits, max_points, max_voxels):
    """Hard voxelization of N points into at most V voxels of at most K points."""
    N, C = pts_ref.shape
    K = max_points
    V = max_voxels
    Vp = coors_ref.shape[1]            # lane-padded voxel capacity (multiple of 128)
    gx, gy, gz = grid_dims
    x0, y0, z0 = pmin
    ivx, ivy, ivz = inv_vs
    bx, by = key_bits

    pts = pts_ref[...]                 # (N, C) float32 -- column-oriented coords
    pts_t = pts_t_ref[...]             # (C, N) float32 -- row-oriented coords + values

    def cell(x, y, z):
        cx = jnp.floor((x - x0) * ivx).astype(jnp.int32)
        cy = jnp.floor((y - y0) * ivy).astype(jnp.int32)
        cz = jnp.floor((z - z0) * ivz).astype(jnp.int32)
        valid = ((cx >= 0) & (cx < gx) & (cy >= 0) & (cy < gy)
                 & (cz >= 0) & (cz < gz))
        # Bit-packed voxel key (injective for valid in-range coords); decoded at
        # the end with shifts/ands on a single (1, Vp) row.
        key = cz * (1 << (bx + by)) + cy * (1 << bx) + cx
        return key, valid

    key_c, valid_c = cell(pts[:, 0:1], pts[:, 1:2], pts[:, 2:3])         # (N, 1)
    key_r, valid_r = cell(pts_t[0:1, :], pts_t[1:2, :], pts_t[2:3, :])   # (1, N)

    # E[r, c] = points r and c are valid and fall in the same voxel (symmetric).
    E = (key_c == key_r) & valid_c & valid_r                             # (N, N)
    iota_r = lax.broadcasted_iota(jnp.int32, (N, N), 0)
    iota_c = lax.broadcasted_iota(jnp.int32, (N, N), 1)

    # earlier-same counts (slot index inside the voxel), both orientations.
    es_r = jnp.sum((E & (iota_r < iota_c)).astype(jnp.int32),
                   axis=0, keepdims=True)                                # (1, N)
    es_c = jnp.sum((E & (iota_c < iota_r)).astype(jnp.int32),
                   axis=1, keepdims=True)                                # (N, 1)
    is_first_c = valid_c & (es_c == 0)                                   # (N, 1)

    big = jnp.int32(2 ** 30)
    # f_r[c] = index of the first point of c's voxel; out_idx = rank of that
    # voxel among all first occurrences.  Pure int32 compares / mins / sums.
    f_r = jnp.min(jnp.where(E, iota_r, N), axis=0, keepdims=True)        # (1, N)
    out_idx_r = jnp.sum((is_first_c & (iota_r < f_r)).astype(jnp.int32),
                        axis=0, keepdims=True)                           # (1, N)
    out_idx_c = jnp.min(jnp.where(E, out_idx_r, big),
                        axis=1, keepdims=True)                           # (N, 1)

    placed_r = valid_r & (out_idx_r < V) & (es_r < K)                    # (1, N)
    placed_c = valid_c & (out_idx_c < V) & (es_c < K)                    # (N, 1)

    # --- Membership (N, Vp): reused for scatter matmul, counts and coords. ----
    v_iota = lax.broadcasted_iota(jnp.int32, (N, Vp), 1)
    member_nv = (v_iota == out_idx_c) & placed_c                         # (N, Vp)
    npts_ref[...] = jnp.sum(member_nv.astype(jnp.int32), axis=0, keepdims=True)

    # --- Point scatter on the MXU: vox_t(K*C, Vp) = pe_T(K*C, N) @ member. ----
    # pe_T[k*C + c, n] = pts[n, c] iff point n lands in slot k; the placed mask
    # is folded into base (unplaced points address past the last row -> zeros).
    kc_iota = lax.broadcasted_iota(jnp.int32, (K * C, N), 0)
    base_r = jnp.where(placed_r, es_r * C, K * C)                        # (1, N)
    pe = jnp.zeros((K * C, N), jnp.float32)
    for c in range(C):                                                   # C is tiny/static
        pe = jnp.where(kc_iota == base_r + c, pts_t[c:c + 1, :], pe)

    # 3-chunk bf16 split of the f32 point values (2 chunks is not enough for the
    # rtol=1e-6 check); the 0/1 membership matrix is exact in bf16, so this is
    # 3 DEFAULT-precision MXU passes instead of ~6 HIGHEST-precision passes.
    hi = pe.astype(jnp.bfloat16)
    r1 = pe - hi.astype(jnp.float32)
    mid = r1.astype(jnp.bfloat16)
    lo = (r1 - mid.astype(jnp.float32)).astype(jnp.bfloat16)
    mem_b = member_nv.astype(jnp.bfloat16)
    vox_ref[...] = (jnp.dot(hi, mem_b, preferred_element_type=jnp.float32)
                    + jnp.dot(mid, mem_b, preferred_element_type=jnp.float32)
                    + jnp.dot(lo, mem_b, preferred_element_type=jnp.float32))

    # --- Per-voxel coords: ONE int32 min of the packed key, then bit-decode. --
    keyv = jnp.min(jnp.where(member_nv, key_c, big), axis=0, keepdims=True)  # (1, Vp)
    cxv = keyv & ((1 << bx) - 1)
    cyv = (keyv >> bx) & ((1 << by) - 1)
    czv = keyv >> (bx + by)

    n_vox = jnp.minimum(jnp.sum(is_first_c.astype(jnp.int32)), V)
    row3 = lax.broadcasted_iota(jnp.int32, (3, Vp), 0)
    lane3 = lax.broadcasted_iota(jnp.int32, (3, Vp), 1)
    zyx = jnp.where(row3 == 0, czv, jnp.where(row3 == 1, cyv, cxv))      # (3, Vp)
    coors_ref[...] = jnp.where(lane3 < n_vox, zyx, -1)
    nvox_ref[0] = n_vox


def pointpillars_forward(pts, *, voxel_size, point_cloud_range,
                         max_num_points, max_voxels):
    """JAX/Pallas equivalent of PointPillars.forward (voxelization layer)."""
    N, C = pts.shape
    V = max_voxels[0] if isinstance(max_voxels, (tuple, list)) else int(max_voxels)
    K = int(max_num_points)
    Vp = ((V + 127) // 128) * 128       # lane-dense padded voxel axis

    pmin = tuple(float(np.float32(point_cloud_range[i])) for i in range(3))
    inv_vs = tuple(float(np.float32(1.0) / np.float32(voxel_size[i])) for i in range(3))
    grid_dims = tuple(int(round((point_cloud_range[3 + i] - point_cloud_range[i])
                                / voxel_size[i])) for i in range(3))
    bx = max(grid_dims[0] - 1, 0).bit_length()
    by = max(grid_dims[1] - 1, 0).bit_length()
    bz = max(grid_dims[2] - 1, 0).bit_length()
    # TODO(synk): packed int32 keys require the grid to fit in 30 bits total.
    assert bx + by + bz <= 30, "voxel grid too large for int32 packed keys"

    kernel = functools.partial(
        _voxelize_kernel, pmin=pmin, inv_vs=inv_vs, grid_dims=grid_dims,
        key_bits=(bx, by), max_points=K, max_voxels=V)

    pts = pts.astype(jnp.float32)
    pts_t = pts.T                       # (C, N): row-oriented coords + scatter values

    vox_t, coors_t, npts2d, nvox = pl.pallas_call(
        kernel,
        out_shape=(jax.ShapeDtypeStruct((K * C, Vp), jnp.float32),  # lane-dense
                   jax.ShapeDtypeStruct((3, Vp), jnp.int32),        # lane-dense
                   jax.ShapeDtypeStruct((1, Vp), jnp.int32),        # lane-dense
                   jax.ShapeDtypeStruct((1,), jnp.int32)),
        in_specs=[pl.BlockSpec(memory_space=pltpu.MemorySpace.VMEM),
                  pl.BlockSpec(memory_space=pltpu.MemorySpace.VMEM)],
        out_specs=(pl.BlockSpec(memory_space=pltpu.MemorySpace.VMEM),
                   pl.BlockSpec(memory_space=pltpu.MemorySpace.VMEM),
                   pl.BlockSpec(memory_space=pltpu.MemorySpace.VMEM),
                   pl.BlockSpec(memory_space=pltpu.MemorySpace.SMEM)),
        # NOTE: no vmem_limit override -- the whole working set is <1 MiB, so the
        # default scoped VMEM is plenty on v5e/v6e/v7x alike.
    )(pts, pts_t)

    voxels = vox_t[:, :V].T.reshape(V, K, C)   # free host-side plumbing
    coors = coors_t[:, :V].T
    return voxels, coors, npts2d[0, :V], nvox[0]


def _ref_voxelize(pts_np, voxel_size, point_cloud_range, K, V):
    """Sequential NumPy reference of mmcv hard voxelization (deterministic)."""
    pmin = [np.float32(point_cloud_range[i]) for i in range(3)]
    inv = [np.float32(np.float32(1.0) / np.float32(voxel_size[i])) for i in range(3)]
    grid = [int(round((point_cloud_range[3 + i] - point_cloud_range[i])
                      / voxel_size[i])) for i in range(3)]
    N, C = pts_np.shape
    voxels = np.zeros((V, K, C), np.float32)
    coors = -np.ones((V, 3), np.int32)
    npts = np.zeros((V,), np.int32)
    key_to_idx = {}
    nvox = 0
    for i in range(N):
        c = [int(np.floor((np.float32(pts_np[i, j]) - pmin[j]) * inv[j]))
             for j in range(3)]
        if any(c[j] < 0 or c[j] >= grid[j] for j in range(3)):
            continue
        key = (c[2], c[1], c[0])
        idx = key_to_idx.get(key, -1)
        if idx == -1:
            if nvox >= V:
                continue
            idx = nvox
            nvox += 1
            key_to_idx[key] = idx
            coors[idx] = key
        if npts[idx] < K:
            voxels[idx, npts[idx]] = pts_np[i]
            npts[idx] += 1
    return voxels, coors, npts, nvox


if __name__ == "__main__":
    # Same voxel_size / range as the PyTorch defaults, but small caps so
    # everything is tiny on-chip.
    voxel_size = [0.16, 0.16, 4.0]
    point_cloud_range = [0.0, -39.68, -3.0, 69.12, 39.68, 1.0]
    max_num_points = 8
    max_voxels = (64, 64)
    N, C = 128, 4

    key = jax.random.PRNGKey(0)
    k1, k2 = jax.random.split(key)
    # 96 spread-out points (some out of range in x and z) + 32 clustered points
    # (exercises per-voxel point capping and the max_voxels cap).
    lo1 = jnp.array([-1.0, -4.0, -4.0, 0.0], jnp.float32)
    hi1 = jnp.array([8.0, 4.0, 2.0, 1.0], jnp.float32)
    pts_main = lo1 + jax.random.uniform(k1, (96, C), jnp.float32) * (hi1 - lo1)
    lo2 = jnp.array([0.0, -0.32, -3.0, 0.0], jnp.float32)
    hi2 = jnp.array([0.32, 0.0, 1.0, 1.0], jnp.float32)
    pts_dense = lo2 + jax.random.uniform(k2, (32, C), jnp.float32) * (hi2 - lo2)
    pts = jnp.concatenate([pts_main, pts_dense], axis=0)

    voxels, coors, num_points, num_voxels = jax.block_until_ready(
        pointpillars_forward(pts, voxel_size=voxel_size,
                             point_cloud_range=point_cloud_range,
                             max_num_points=max_num_points,
                             max_voxels=max_voxels))

    # Check against a sequential NumPy reference.
    ref_vox, ref_coors, ref_npts, ref_nvox = _ref_voxelize(
        np.asarray(pts), voxel_size, point_cloud_range,
        max_num_points, max_voxels[0])
    np.testing.assert_allclose(np.asarray(voxels), ref_vox, rtol=1e-6, atol=1e-6)
    np.testing.assert_array_equal(np.asarray(coors), ref_coors)
    np.testing.assert_array_equal(np.asarray(num_points), ref_npts)
    assert int(num_voxels) == ref_nvox

    print("KERNEL_OK")
</pallas_src>

<mosaic_0001>
module attributes {stable_mosaic.version = 11 : i64} {
  func.func @_voxelize_kernel(%arg0: memref<128x4xf32, #tpu.memory_space<vmem>>, %arg1: memref<4x128xf32, #tpu.memory_space<vmem>>, %arg2: memref<32x128xf32, #tpu.memory_space<vmem>>, %arg3: memref<3x128xi32, #tpu.memory_space<vmem>>, %arg4: memref<1x128xi32, #tpu.memory_space<vmem>>, %arg5: memref<1xi32, #tpu.memory_space<smem>>) attributes {dimension_semantics = [], scalar_prefetch = 0 : i64, scratch_operands = 0 : i64, tpu.core_type = #tpu.core_type<tc>} {
    %c0 = arith.constant 0 : index
    %c0_0 = arith.constant 0 : index
    %0 = vector.load %arg0[%c0, %c0_0] : memref<128x4xf32, #tpu.memory_space<vmem>>, vector<128x4xf32>
    %c0_1 = arith.constant 0 : index
    %c0_2 = arith.constant 0 : index
    %1 = vector.load %arg1[%c0_1, %c0_2] : memref<4x128xf32, #tpu.memory_space<vmem>>, vector<4x128xf32>
    %2 = vector.extract_strided_slice %0 {offsets = [0, 0], sizes = [128, 1], strides = [1, 1]} : vector<128x4xf32> to vector<128x1xf32>
    %3 = vector.extract_strided_slice %0 {offsets = [0, 1], sizes = [128, 1], strides = [1, 1]} : vector<128x4xf32> to vector<128x1xf32>
    %4 = vector.extract_strided_slice %0 {offsets = [0, 2], sizes = [128, 1], strides = [1, 1]} : vector<128x4xf32> to vector<128x1xf32>
    %cst = arith.constant 0.000000e+00 : f32
    %5 = vector.broadcast %cst : f32 to vector<128x1xf32>
    %6 = arith.subf %2, %5 : vector<128x1xf32>
    %cst_3 = arith.constant 6.250000e+00 : f32
    %7 = vector.broadcast %cst_3 : f32 to vector<128x1xf32>
    %8 = arith.mulf %6, %7 : vector<128x1xf32>
    %9 = math.floor %8 : vector<128x1xf32>
    %10 = arith.fptosi %9 : vector<128x1xf32> to vector<128x1xi32>
    %cst_4 = arith.constant -3.968000e+01 : f32
    %11 = vector.broadcast %cst_4 : f32 to vector<128x1xf32>
    %12 = arith.subf %3, %11 : vector<128x1xf32>
    %cst_5 = arith.constant 6.250000e+00 : f32
    %13 = vector.broadcast %cst_5 : f32 to vector<128x1xf32>
    %14 = arith.mulf %12, %13 : vector<128x1xf32>
    %15 = math.floor %14 : vector<128x1xf32>
    %16 = arith.fptosi %15 : vector<128x1xf32> to vector<128x1xi32>
    %cst_6 = arith.constant -3.000000e+00 : f32
    %17 = vector.broadcast %cst_6 : f32 to vector<128x1xf32>
    %18 = arith.subf %4, %17 : vector<128x1xf32>
    %cst_7 = arith.constant 2.500000e-01 : f32
    %19 = vector.broadcast %cst_7 : f32 to vector<128x1xf32>
    %20 = arith.mulf %18, %19 : vector<128x1xf32>
    %21 = math.floor %20 : vector<128x1xf32>
    %22 = arith.fptosi %21 : vector<128x1xf32> to vector<128x1xi32>
    %c0_i32 = arith.constant 0 : i32
    %23 = vector.broadcast %c0_i32 : i32 to vector<128x1xi32>
    %24 = arith.cmpi sge, %10, %23 : vector<128x1xi32>
    %c432_i32 = arith.constant 432 : i32
    %25 = vector.broadcast %c432_i32 : i32 to vector<128x1xi32>
    %26 = arith.cmpi slt, %10, %25 : vector<128x1xi32>
    %27 = arith.andi %24, %26 : vector<128x1xi1>
    %c0_i32_8 = arith.constant 0 : i32
    %28 = vector.broadcast %c0_i32_8 : i32 to vector<128x1xi32>
    %29 = arith.cmpi sge, %16, %28 : vector<128x1xi32>
    %30 = arith.andi %27, %29 : vector<128x1xi1>
    %c496_i32 = arith.constant 496 : i32
    %31 = vector.broadcast %c496_i32 : i32 to vector<128x1xi32>
    %32 = arith.cmpi slt, %16, %31 : vector<128x1xi32>
    %33 = arith.andi %30, %32 : vector<128x1xi1>
    %c0_i32_9 = arith.constant 0 : i32
    %34 = vector.broadcast %c0_i32_9 : i32 to vector<128x1xi32>
    %35 = arith.cmpi sge, %22, %34 : vector<128x1xi32>
    %36 = arith.andi %33, %35 : vector<128x1xi1>
    %c1_i32 = arith.constant 1 : i32
    %37 = vector.broadcast %c1_i32 : i32 to vector<128x1xi32>
    %38 = arith.cmpi slt, %22, %37 : vector<128x1xi32>
    %39 = arith.andi %36, %38 : vector<128x1xi1>
    %c262144_i32 = arith.constant 262144 : i32
    %40 = vector.broadcast %c262144_i32 : i32 to vector<128x1xi32>
    %41 = arith.muli %22, %40 : vector<128x1xi32>
    %c512_i32 = arith.constant 512 : i32
    %42 = vector.broadcast %c512_i32 : i32 to vector<128x1xi32>
    %43 = arith.muli %16, %42 : vector<128x1xi32>
    %44 = arith.addi %41, %43 : vector<128x1xi32>
    %45 = arith.addi %44, %10 : vector<128x1xi32>
    %46 = vector.extract_strided_slice %1 {offsets = [0, 0], sizes = [1, 128], strides = [1, 1]} : vector<4x128xf32> to vector<1x128xf32>
    %47 = vector.extract_strided_slice %1 {offsets = [1, 0], sizes = [1, 128], strides = [1, 1]} : vector<4x128xf32> to vector<1x128xf32>
    %48 = vector.extract_strided_slice %1 {offsets = [2, 0], sizes = [1, 128], strides = [1, 1]} : vector<4x128xf32> to vector<1x128xf32>
    %cst_10 = arith.constant 0.000000e+00 : f32
    %49 = vector.broadcast %cst_10 : f32 to vector<1x128xf32>
    %50 = arith.subf %46, %49 : vector<1x128xf32>
    %cst_11 = arith.constant 6.250000e+00 : f32
    %51 = vector.broadcast %cst_11 : f32 to vector<1x128xf32>
    %52 = arith.mulf %50, %51 : vector<1x128xf32>
    %53 = math.floor %52 : vector<1x128xf32>
    %54 = arith.fptosi %53 : vector<1x128xf32> to vector<1x128xi32>
    %cst_12 = arith.constant -3.968000e+01 : f32
    %55 = vector.broadcast %cst_12 : f32 to vector<1x128xf32>
    %56 = arith.subf %47, %55 : vector<1x128xf32>
    %cst_13 = arith.constant 6.250000e+00 : f32
    %57 = vector.broadcast %cst_13 : f32 to vector<1x128xf32>
    %58 = arith.mulf %56, %57 : vector<1x128xf32>
    %59 = math.floor %58 : vector<1x128xf32>
    %60 = arith.fptosi %59 : vector<1x128xf32> to vector<1x128xi32>
    %cst_14 = arith.constant -3.000000e+00 : f32
    %61 = vector.broadcast %cst_14 : f32 to vector<1x128xf32>
    %62 = arith.subf %48, %61 : vector<1x128xf32>
    %cst_15 = arith.constant 2.500000e-01 : f32
    %63 = vector.broadcast %cst_15 : f32 to vector<1x128xf32>
    %64 = arith.mulf %62, %63 : vector<1x128xf32>
    %65 = math.floor %64 : vector<1x128xf32>
    %66 = arith.fptosi %65 : vector<1x128xf32> to vector<1x128xi32>
    %c0_i32_16 = arith.constant 0 : i32
    %67 = vector.broadcast %c0_i32_16 : i32 to vector<1x128xi32>
    %68 = arith.cmpi sge, %54, %67 : vector<1x128xi32>
    %c432_i32_17 = arith.constant 432 : i32
    %69 = vector.broadcast %c432_i32_17 : i32 to vector<1x128xi32>
    %70 = arith.cmpi slt, %54, %69 : vector<1x128xi32>
    %71 = arith.andi %68, %70 : vector<1x128xi1>
    %c0_i32_18 = arith.constant 0 : i32
    %72 = vector.broadcast %c0_i32_18 : i32 to vector<1x128xi32>
    %73 = arith.cmpi sge, %60, %72 : vector<1x128xi32>
    %74 = arith.andi %71, %73 : vector<1x128xi1>
    %c496_i32_19 = arith.constant 496 : i32
    %75 = vector.broadcast %c496_i32_19 : i32 to vector<1x128xi32>
    %76 = arith.cmpi slt, %60, %75 : vector<1x128xi32>
    %77 = arith.andi %74, %76 : vector<1x128xi1>
    %c0_i32_20 = arith.constant 0 : i32
    %78 = vector.broadcast %c0_i32_20 : i32 to vector<1x128xi32>
    %79 = arith.cmpi sge, %66, %78 : vector<1x128xi32>
    %80 = arith.andi %77, %79 : vector<1x128xi1>
    %c1_i32_21 = arith.constant 1 : i32
    %81 = vector.broadcast %c1_i32_21 : i32 to vector<1x128xi32>
    %82 = arith.cmpi slt, %66, %81 : vector<1x128xi32>
    %83 = arith.andi %80, %82 : vector<1x128xi1>
    %c262144_i32_22 = arith.constant 262144 : i32
    %84 = vector.broadcast %c262144_i32_22 : i32 to vector<1x128xi32>
    %85 = arith.muli %66, %84 : vector<1x128xi32>
    %c512_i32_23 = arith.constant 512 : i32
    %86 = vector.broadcast %c512_i32_23 : i32 to vector<1x128xi32>
    %87 = arith.muli %60, %86 : vector<1x128xi32>
    %88 = arith.addi %85, %87 : vector<1x128xi32>
    %89 = arith.addi %88, %54 : vector<1x128xi32>
    %90 = vector.broadcast %45 : vector<128x1xi32> to vector<128x128xi32>
    %91 = vector.broadcast %89 : vector<1x128xi32> to vector<128x128xi32>
    %92 = arith.cmpi eq, %90, %91 : vector<128x128xi32>
    %93 = vector.broadcast %39 : vector<128x1xi1> to vector<128x128xi1>
    %94 = arith.andi %92, %93 : vector<128x128xi1>
    %95 = vector.broadcast %83 : vector<1x128xi1> to vector<128x128xi1>
    %96 = arith.andi %94, %95 : vector<128x128xi1>
    %97 = tpu.iota {dimensions = array<i32: 0>} : vector<128x128xi32>
    %98 = tpu.iota {dimensions = array<i32: 1>} : vector<128x128xi32>
    %99 = arith.cmpi slt, %97, %98 : vector<128x128xi32>
    %100 = arith.andi %96, %99 : vector<128x128xi1>
    %101 = arith.extui %100 : vector<128x128xi1> to vector<128x128xi32>
    %cst_24 = arith.constant dense<0> : vector<128xi32>
    %102 = vector.multi_reduction <add>, %101, %cst_24 [0] : vector<128x128xi32> to vector<128xi32>
    %103 = vector.shape_cast %102 : vector<128xi32> to vector<1x128xi32>
    %104 = arith.cmpi slt, %98, %97 : vector<128x128xi32>
    %105 = arith.andi %96, %104 : vector<128x128xi1>
    %106 = arith.extui %105 : vector<128x128xi1> to vector<128x128xi32>
    %cst_25 = arith.constant dense<0> : vector<128xi32>
    %107 = vector.multi_reduction <add>, %106, %cst_25 [1] : vector<128x128xi32> to vector<128xi32>
    %108 = vector.shape_cast %107 : vector<128xi32> to vector<128x1xi32>
    %c0_i32_26 = arith.constant 0 : i32
    %109 = vector.broadcast %c0_i32_26 : i32 to vector<128x1xi32>
    %110 = arith.cmpi eq, %108, %109 : vector<128x1xi32>
    %111 = arith.andi %39, %110 : vector<128x1xi1>
    %c128_i32 = arith.constant 128 : i32
    %112 = vector.broadcast %c128_i32 : i32 to vector<128x128xi32>
    %113 = arith.select %96, %97, %112 : vector<128x128xi1>, vector<128x128xi32>
    %cst_27 = arith.constant dense<2147483647> : vector<128xi32>
    %114 = vector.multi_reduction <minsi>, %113, %cst_27 [0] : vector<128x128xi32> to vector<128xi32>
    %115 = vector.shape_cast %114 : vector<128xi32> to vector<1x128xi32>
    %116 = vector.broadcast %115 : vector<1x128xi32> to vector<128x128xi32>
    %117 = arith.cmpi slt, %97, %116 : vector<128x128xi32>
    %118 = vector.broadcast %111 : vector<128x1xi1> to vector<128x128xi1>
    %119 = arith.andi %118, %117 : vector<128x128xi1>
    %120 = arith.extui %119 : vector<128x128xi1> to vector<128x128xi32>
    %cst_28 = arith.constant dense<0> : vector<128xi32>
    %121 = vector.multi_reduction <add>, %120, %cst_28 [0] : vector<128x128xi32> to vector<128xi32>
    %122 = vector.shape_cast %121 : vector<128xi32> to vector<1x128xi32>
    %c1073741824_i32 = arith.constant 1073741824 : i32
    %123 = vector.shape_cast %122 : vector<1x128xi32> to vector<1x128xi32>
    %124 = vector.broadcast %123 : vector<1x128xi32> to vector<128x128xi32>
    %125 = vector.broadcast %c1073741824_i32 : i32 to vector<128x128xi32>
    %126 = arith.select %96, %124, %125 : vector<128x128xi1>, vector<128x128xi32>
    %cst_29 = arith.constant dense<2147483647> : vector<128xi32>
    %127 = vector.multi_reduction <minsi>, %126, %cst_29 [1] : vector<128x128xi32> to vector<128xi32>
    %128 = vector.shape_cast %127 : vector<128xi32> to vector<128x1xi32>
    %c64_i32 = arith.constant 64 : i32
    %129 = vector.broadcast %c64_i32 : i32 to vector<1x128xi32>
    %130 = arith.cmpi slt, %122, %129 : vector<1x128xi32>
    %131 = arith.andi %83, %130 : vector<1x128xi1>
    %c8_i32 = arith.constant 8 : i32
    %132 = vector.broadcast %c8_i32 : i32 to vector<1x128xi32>
    %133 = arith.cmpi slt, %103, %132 : vector<1x128xi32>
    %134 = arith.andi %131, %133 : vector<1x128xi1>
    %c64_i32_30 = arith.constant 64 : i32
    %135 = vector.broadcast %c64_i32_30 : i32 to vector<128x1xi32>
    %136 = arith.cmpi slt, %128, %135 : vector<128x1xi32>
    %137 = arith.andi %39, %136 : vector<128x1xi1>
    %c8_i32_31 = arith.constant 8 : i32
    %138 = vector.broadcast %c8_i32_31 : i32 to vector<128x1xi32>
    %139 = arith.cmpi slt, %108, %138 : vector<128x1xi32>
    %140 = arith.andi %137, %139 : vector<128x1xi1>
    %141 = tpu.iota {dimensions = array<i32: 1>} : vector<128x128xi32>
    %142 = vector.broadcast %128 : vector<128x1xi32> to vector<128x128xi32>
    %143 = arith.cmpi eq, %141, %142 : vector<128x128xi32>
    %144 = vector.broadcast %140 : vector<128x1xi1> to vector<128x128xi1>
    %145 = arith.andi %143, %144 : vector<128x128xi1>
    %146 = arith.extui %145 : vector<128x128xi1> to vector<128x128xi32>
    %cst_32 = arith.constant dense<0> : vector<128xi32>
    %147 = vector.multi_reduction <add>, %146, %cst_32 [0] : vector<128x128xi32> to vector<128xi32>
    %148 = vector.shape_cast %147 : vector<128xi32> to vector<1x128xi32>
    %c0_33 = arith.constant 0 : index
    %c0_34 = arith.constant 0 : index
    %149 = vector.load %arg4[%c0_33, %c0_34] : memref<1x128xi32, #tpu.memory_space<vmem>>, vector<1x128xi32>
    tpu.vector_store %arg4[%c0_33, %c0_34], %148 {strides = array<i32>} : memref<1x128xi32, #tpu.memory_space<vmem>>, vector<1x128xi32>,
    %150 = tpu.iota {dimensions = array<i32: 0>} : vector<32x128xi32>
    %c4_i32 = arith.constant 4 : i32
    %151 = vector.broadcast %c4_i32 : i32 to vector<1x128xi32>
    %152 = arith.muli %103, %151 : vector<1x128xi32>
    %c32_i32 = arith.constant 32 : i32
    %153 = vector.broadcast %c32_i32 : i32 to vector<1x128xi32>
    %154 = arith.select %134, %152, %153 : vector<1x128xi1>, vector<1x128xi32>
    %cst_35 = arith.constant 0.000000e+00 : f32
    %155 = vector.broadcast %cst_35 : f32 to vector<32x128xf32>
    %c0_i32_36 = arith.constant 0 : i32
    %156 = vector.broadcast %c0_i32_36 : i32 to vector<1x128xi32>
    %157 = arith.addi %154, %156 : vector<1x128xi32>
    %158 = vector.broadcast %157 : vector<1x128xi32> to vector<32x128xi32>
    %159 = arith.cmpi eq, %150, %158 : vector<32x128xi32>
    %160 = vector.extract_strided_slice %1 {offsets = [0, 0], sizes = [1, 128], strides = [1, 1]} : vector<4x128xf32> to vector<1x128xf32>
    %161 = vector.shape_cast %160 : vector<1x128xf32> to vector<1x128xf32>
    %162 = vector.broadcast %161 : vector<1x128xf32> to vector<32x128xf32>
    %163 = arith.select %159, %162, %155 : vector<32x128xi1>, vector<32x128xf32>
    %c1_i32_37 = arith.constant 1 : i32
    %164 = vector.broadcast %c1_i32_37 : i32 to vector<1x128xi32>
    %165 = arith.addi %154, %164 : vector<1x128xi32>
    %166 = vector.broadcast %165 : vector<1x128xi32> to vector<32x128xi32>
    %167 = arith.cmpi eq, %150, %166 : vector<32x128xi32>
    %168 = vector.extract_strided_slice %1 {offsets = [1, 0], sizes = [1, 128], strides = [1, 1]} : vector<4x128xf32> to vector<1x128xf32>
    %169 = vector.shape_cast %168 : vector<1x128xf32> to vector<1x128xf32>
    %170 = vector.broadcast %169 : vector<1x128xf32> to vector<32x128xf32>
    %171 = arith.select %167, %170, %163 : vector<32x128xi1>, vector<32x128xf32>
    %c2_i32 = arith.constant 2 : i32
    %172 = vector.broadcast %c2_i32 : i32 to vector<1x128xi32>
    %173 = arith.addi %154, %172 : vector<1x128xi32>
    %174 = vector.broadcast %173 : vector<1x128xi32> to vector<32x128xi32>
    %175 = arith.cmpi eq, %150, %174 : vector<32x128xi32>
    %176 = vector.extract_strided_slice %1 {offsets = [2, 0], sizes = [1, 128], strides = [1, 1]} : vector<4x128xf32> to vector<1x128xf32>
    %177 = vector.shape_cast %176 : vector<1x128xf32> to vector<1x128xf32>
    %178 = vector.broadcast %177 : vector<1x128xf32> to vector<32x128xf32>
    %179 = arith.select %175, %178, %171 : vector<32x128xi1>, vector<32x128xf32>
    %c3_i32 = arith.constant 3 : i32
    %180 = vector.broadcast %c3_i32 : i32 to vector<1x128xi32>
    %181 = arith.addi %154, %180 : vector<1x128xi32>
    %182 = vector.broadcast %181 : vector<1x128xi32> to vector<32x128xi32>
    %183 = arith.cmpi eq, %150, %182 : vector<32x128xi32>
    %184 = vector.extract_strided_slice %1 {offsets = [3, 0], sizes = [1, 128], strides = [1, 1]} : vector<4x128xf32> to vector<1x128xf32>
    %185 = vector.shape_cast %184 : vector<1x128xf32> to vector<1x128xf32>
    %186 = vector.broadcast %185 : vector<1x128xf32> to vector<32x128xf32>
    %187 = arith.select %183, %186, %179 : vector<32x128xi1>, vector<32x128xf32>
    %188 = arith.truncf %187 : vector<32x128xf32> to vector<32x128xbf16>
    %189 = arith.extf %188 : vector<32x128xbf16> to vector<32x128xf32>
    %190 = arith.subf %187, %189 : vector<32x128xf32>
    %191 = arith.truncf %190 : vector<32x128xf32> to vector<32x128xbf16>
    %192 = arith.extf %191 : vector<32x128xbf16> to vector<32x128xf32>
    %193 = arith.subf %190, %192 : vector<32x128xf32>
    %194 = arith.truncf %193 : vector<32x128xf32> to vector<32x128xbf16>
    %195 = arith.extui %145 : vector<128x128xi1> to vector<128x128xi32>
    %196 = arith.sitofp %195 : vector<128x128xi32> to vector<128x128xf32>
    %197 = arith.truncf %196 : vector<128x128xf32> to vector<128x128xbf16>
    %cst_38 = arith.constant dense<0.000000e+00> : vector<32x128xf32>
    %198 = tpu.matmul %188, %197, %cst_38 {dimension_numbers = #tpu.dot_dimension_numbers<[1], [0], [0], [1], [0, 0, 1, 1], [], []>} : vector<32x128xbf16>, vector<128x128xbf16>, vector<32x128xf32> -> vector<32x128xf32>
    %cst_39 = arith.constant dense<0.000000e+00> : vector<32x128xf32>
    %199 = tpu.matmul %191, %197, %cst_39 {dimension_numbers = #tpu.dot_dimension_numbers<[1], [0], [0], [1], [0, 0, 1, 1], [], []>} : vector<32x128xbf16>, vector<128x128xbf16>, vector<32x128xf32> -> vector<32x128xf32>
    %200 = arith.addf %198, %199 : vector<32x128xf32>
    %cst_40 = arith.constant dense<0.000000e+00> : vector<32x128xf32>
    %201 = tpu.matmul %194, %197, %cst_40 {dimension_numbers = #tpu.dot_dimension_numbers<[1], [0], [0], [1], [0, 0, 1, 1], [], []>} : vector<32x128xbf16>, vector<128x128xbf16>, vector<32x128xf32> -> vector<32x128xf32>
    %202 = arith.addf %200, %201 : vector<32x128xf32>
    %c0_41 = arith.constant 0 : index
    %c0_42 = arith.constant 0 : index
    %203 = vector.load %arg2[%c0_41, %c0_42] : memref<32x128xf32, #tpu.memory_space<vmem>>, vector<32x128xf32>
    tpu.vector_store %arg2[%c0_41, %c0_42], %202 {strides = array<i32>} : memref<32x128xf32, #tpu.memory_space<vmem>>, vector<32x128xf32>,
    %c1073741824_i32_43 = arith.constant 1073741824 : i32
    %204 = vector.shape_cast %45 : vector<128x1xi32> to vector<128x1xi32>
    %205 = vector.broadcast %204 : vector<128x1xi32> to vector<128x128xi32>
    %206 = vector.broadcast %c1073741824_i32_43 : i32 to vector<128x128xi32>
    %207 = arith.select %145, %205, %206 : vector<128x128xi1>, vector<128x128xi32>
    %cst_44 = arith.constant dense<2147483647> : vector<128xi32>
    %208 = vector.multi_reduction <minsi>, %207, %cst_44 [0] : vector<128x128xi32> to vector<128xi32>
    %209 = vector.shape_cast %208 : vector<128xi32> to vector<1x128xi32>
    %c511_i32 = arith.constant 511 : i32
    %210 = vector.broadcast %c511_i32 : i32 to vector<1x128xi32>
    %211 = arith.andi %209, %210 : vector<1x128xi32>
    %c9_i32 = arith.constant 9 : i32
    %212 = vector.broadcast %c9_i32 : i32 to vector<1x128xi32>
    %213 = arith.shrsi %209, %212 : vector<1x128xi32>
    %c511_i32_45 = arith.constant 511 : i32
    %214 = vector.broadcast %c511_i32_45 : i32 to vector<1x128xi32>
    %215 = arith.andi %213, %214 : vector<1x128xi32>
    %c18_i32 = arith.constant 18 : i32
    %216 = vector.broadcast %c18_i32 : i32 to vector<1x128xi32>
    %217 = arith.shrsi %209, %216 : vector<1x128xi32>
    %218 = arith.extui %111 : vector<128x1xi1> to vector<128x1xi32>
    %219 = vector.shape_cast %218 : vector<128x1xi32> to vector<1x128x1xi32>
    %cst_46 = arith.constant dense<0> : vector<1xi32>
    %220 = vector.multi_reduction <add>, %219, %cst_46 [1, 2] : vector<1x128x1xi32> to vector<1xi32>
    %221 = vector.shape_cast %220 : vector<1xi32> to vector<1x1x1xi32>
    %222 = vector.extract %221[0, 0, 0] : i32 from vector<1x1x1xi32>
    %c64_i32_47 = arith.constant 64 : i32
    %223 = arith.minsi %222, %c64_i32_47 : i32
    %224 = tpu.iota {dimensions = array<i32: 0>} : vector<3x128xi32>
    %225 = tpu.iota {dimensions = array<i32: 1>} : vector<3x128xi32>
    %c0_i32_48 = arith.constant 0 : i32
    %226 = vector.broadcast %c0_i32_48 : i32 to vector<3x128xi32>
    %227 = arith.cmpi eq, %224, %226 : vector<3x128xi32>
    %c1_i32_49 = arith.constant 1 : i32
    %228 = vector.broadcast %c1_i32_49 : i32 to vector<3x128xi32>
    %229 = arith.cmpi eq, %224, %228 : vector<3x128xi32>
    %230 = vector.shape_cast %215 : vector<1x128xi32> to vector<1x128xi32>
    %231 = vector.broadcast %230 : vector<1x128xi32> to vector<3x128xi32>
    %232 = vector.shape_cast %211 : vector<1x128xi32> to vector<1x128xi32>
    %233 = vector.broadcast %232 : vector<1x128xi32> to vector<3x128xi32>
    %234 = arith.select %229, %231, %233 : vector<3x128xi1>, vector<3x128xi32>
    %235 = vector.shape_cast %217 : vector<1x128xi32> to vector<1x128xi32>
    %236 = vector.broadcast %235 : vector<1x128xi32> to vector<3x128xi32>
    %237 = arith.select %227, %236, %234 : vector<3x128xi1>, vector<3x128xi32>
    %238 = vector.broadcast %223 : i32 to vector<3x128xi32>
    %239 = arith.cmpi slt, %225, %238 : vector<3x128xi32>
    %c-1_i32 = arith.constant -1 : i32
    %240 = vector.broadcast %c-1_i32 : i32 to vector<3x128xi32>
    %241 = arith.select %239, %237, %240 : vector<3x128xi1>, vector<3x128xi32>
    %c0_50 = arith.constant 0 : index
    %c0_51 = arith.constant 0 : index
    %242 = vector.load %arg3[%c0_50, %c0_51] : memref<3x128xi32, #tpu.memory_space<vmem>>, vector<3x128xi32>
    tpu.vector_store %arg3[%c0_50, %c0_51], %241 {strides = array<i32>} : memref<3x128xi32, #tpu.memory_space<vmem>>, vector<3x128xi32>,
    %c0_52 = arith.constant 0 : index
    %243 = memref.load %arg5[%c0_52] : memref<1xi32, #tpu.memory_space<smem>>
    memref.store %223, %arg5[%c0_52] : memref<1xi32, #tpu.memory_space<smem>>
    return
  }
}

</mosaic_0001>

<bundles_post_ra>
// kernel: tpu_custom_call.1
= control target key start
LH: loop header
LB: loop body
LE: loop exit
PB: predicated region body
PF: predicated region fallthrough
CT: control target
= control target key end

     0   :  { %11 = vsyncpa [#allocation3], 0  ;;  %s5723_s0 = inlined_call_operand.vmem [shape: f32[128,4], index: 0, kind: input, shape index: {}]   ;;  %s5724_s1 = inlined_call_operand.vmem [shape: f32[4,128], index: 1, kind: input, shape index: {}]   ;;  %s5725_s2 = inlined_call_operand.hbm [shape: f32[32,128], index: 2, kind: output, shape index: {0}]   ;;  %s5726_s3 = inlined_call_operand.hbm [shape: s32[3,128], index: 3, kind: output, shape index: {1}]   ;;  %s5727_s4 = inlined_call_operand.hbm [shape: s32[1,128], index: 4, kind: output, shape index: {2}]   ;;  %s5728_s5 = inlined_call_operand.hbm [shape: s32[1], index: 5, kind: output, shape index: {3}]  }
   0x1   :  { %12 = vsyncpa [#allocation6], 0  ;;  %v2902_v0 = vld [vmem:[%s5723_s0 + $0x10] sm:$0xff]  ;;  %v2907_v1 = vld [vmem:[%s5723_s0] sm:$0xff] }
   0x2   :  { %v2912_v2 = vld [vmem:[%s5723_s0 + $0x18] sm:$0xff]  ;;  %v2470_v3 = vadd.f32 39.68, %v2902_v0  ;;  %v2468_v4 = vadd.f32 39.68, %v2907_v1  ;;  %v2920_v6 = vld [vmem:[%s5723_s0 + $0x8] sm:$0xff] }
   0x3   :  { %v2471_v5 = vadd.f32 39.68, %v2912_v2  ;;  %v2925_v7 = vld [vmem:[%s5723_s0 + $0x28] sm:$0xff]  ;;  %v2930_v8 = vld [vmem:[%s5723_s0 + $0x20] sm:$0xff]  ;;  %v2469_v12 = vadd.f32 39.68, %v2920_v6 }
   0x4   :  { %v102_v9 = vmul.f32 6.25, %v2470_v3  ;;  %v100_v10 = vmul.f32 6.25, %v2468_v4  ;;  %v2936_v13 = vld [vmem:[%s5723_s0 + $0x38] sm:$0xff]  ;;  %v2473_v14 = vadd.f32 39.68, %v2925_v7  ;;  %v2944_v21 = vld [vmem:[%s5723_s0 + $0x30] sm:$0xff] }
   0x5   :  { %v103_v11 = vmul.f32 6.25, %v2471_v5  ;;  %v2472_v15 = vadd.f32 39.68, %v2930_v8  ;;  %v2475_v16 = vadd.f32 39.68, %v2936_v13  ;;  %v101_v20 = vmul.f32 6.25, %v2469_v12 }
   0x6   :  { %v118_v17 = vfloor.f32 %v102_v9  ;;  %v116_v18 = vfloor.f32 %v100_v10  ;;  %v105_v22 = vmul.f32 6.25, %v2473_v14  ;;  %v2474_v25 = vadd.f32 39.68, %v2944_v21 }
   0x7   :  { %v119_v19 = vfloor.f32 %v103_v11  ;;  %v104_v23 = vmul.f32 6.25, %v2472_v15  ;;  %v107_v24 = vmul.f32 6.25, %v2475_v16  ;;  %v117_v29 = vfloor.f32 %v101_v20 }
   0x8   :  { %v2692_v26 = vtrunc.f32 %v118_v17  ;;  %v2688_v27 = vtrunc.f32 %v116_v18  ;;  %v121_v30 = vfloor.f32 %v105_v22  ;;  %v106_v33 = vmul.f32 6.25, %v2474_v25 }
   0x9   :  { %v2694_v28 = vtrunc.f32 %v119_v19  ;;  %v120_v31 = vfloor.f32 %v104_v23  ;;  %v123_v32 = vfloor.f32 %v107_v24 }
   0xa   :  { %13 = vsyncpa [#allocation4], 0  ;;  %v2947_v34 = vcvt.f32.s32 %v2692_v26  ;;  %v2949_v35 = vcvt.f32.s32 %v2688_v27  ;;  %v2690_v37 = vtrunc.f32 %v117_v29  ;;  %v2698_v38 = vtrunc.f32 %v121_v30  ;;  %s2857_s9 = smov 127   ;;  %v2978_v53 = vld [vmem:[%s5723_s0 + $0x48] sm:$0xff]  ;;  %v2985_v54 = vld [vmem:[%s5723_s0 + $0x40] sm:$0xff]  ;;  %s2858_s18 = smov 126  }
   0xb   :  { %v2951_v36 = vcvt.f32.s32 %v2694_v28  ;;  %v2696_v39 = vtrunc.f32 %v120_v31  ;;  %v2702_v40 = vtrunc.f32 %v123_v32  ;;  %v122_v41 = vfloor.f32 %v106_v33  ;;  %v2995_v58 = vld [vmem:[%s5723_s0 + $0x58] sm:$0xff]  ;;  %v3000_v59 = vld [vmem:[%s5723_s0 + $0x50] sm:$0xff]  ;;  %s2859_s19 = smov 1   ;;  %s2863_s7 = smov [#allocation5]  }
   0xc   :  { %vm262_vm0 = vcmp.ge.s32.totalorder %v2947_v34, 0  ;;  %vm260_vm1 = vcmp.ge.s32.totalorder %v2949_v35, 0  ;;  %v2956_v42 = vcvt.f32.s32 %v2690_v37  ;;  %v5734_v43 = vmov 0   ;;  %s2430_s8 = sshll.u32 %s2863_s7, 4  ;;  %s2865_s11 = smov [#allocation8]   ;;  %s2431_s8 = int_to_ptr.vmem [resolvable:$true] %s2430_s8 }
   0xd   :  { %vm263_vm2 = vcmp.ge.s32.totalorder %v2951_v36, 0  ;;  %v278_v44 = vsel %vm262_vm0, 1, %v5734_v43  ;;  %v276_v45 = vsel %vm260_vm1, 1, %v5734_v43  ;;  %v2960_v46 = vcvt.f32.s32 %v2698_v38  ;;  %s2790_s14 = scalar_lea.vmem %s2431_s8, 64  ;;  %p2795_p2 = scmp.lt.s32.totalorder %s2431_s8, %s2431_s8 }
   0xe   :  { %296 = vrot.lane.b32.xlu1 %v278_v44, %s2857_s9  ;;  %292 = vrot.lane.b32.xlu0 %v276_v45, %s2857_s9  ;;  %vm261_vm3 = vcmp.ge.s32.totalorder %v2956_v42, 0  ;;  %v2965_v47 = vcvt.f32.s32 %v2696_v39  ;;  %v2700_v48 = vtrunc.f32 %v122_v41  ;;  %v279_v49 = vsel %vm263_vm2, 1, %v5734_v43  ;;  %p2791_p1 = scmp.ne.s32.totalorder %s2431_s8, %s2790_s14  ;;  %p2796_p3 = scmp.lt.s32.totalorder %s2790_s14, %s2790_s14 }
   0xf   :  { %v277_v50 = vsel %vm261_vm3, 1, %v5734_v43  ;;  %v2969_v51 = vcvt.f32.s32 %v2702_v40  ;;  %vm265_vm4 = vcmp.ge.s32.totalorder %v2960_v46, 0  ;;  %v2477_v57 = vadd.f32 39.68, %v2978_v53 }
  0x10   :  { %vm264_vm5 = vcmp.ge.s32.totalorder %v2965_v47, 0  ;;  %v2973_v52 = vcvt.f32.s32 %v2700_v48  ;;  %v281_v55 = vsel %vm265_vm4, 1, %v5734_v43  ;;  %v2476_v60 = vadd.f32 39.68, %v2985_v54  ;;  %p2797_p4 = por %p2796_p3, %p2795_p2 }
  0x11   :  { %v280_v56 = vsel %vm264_vm5, 1, %v5734_v43  ;;  %vm267_vm6 = vcmp.ge.s32.totalorder %v2969_v51, 0  ;;  %vm357_vm8 = vcmp.lt.s32.totalorder %v2956_v42, 496  ;;  %vm356_vm9 = vcmp.lt.s32.totalorder %v2949_v35, 496 }
  0x12   :  { %298 = vrot.lane.b32.xlu1 %v279_v49, %s2857_s9  ;;  %294 = vrot.lane.b32.xlu0 %v277_v50, %s2857_s9  ;;  %vm266_vm7 = vcmp.ge.s32.totalorder %v2973_v52, 0  ;;  %v283_v61 = vsel %vm267_vm6, 1, %v5734_v43  ;;  %v109_v63 = vmul.f32 6.25, %v2477_v57  ;;  %v108_v3 = vmul.f32 6.25, %v2476_v60  ;;  %p2798_p5 = pnand %p2797_p4, %p2791_p1 }
  0x13   :  { %v282_v62 = vsel %vm266_vm7, 1, %v5734_v43  ;;  %v2479_v4 = vadd.f32 39.68, %v2995_v58  ;;  %v2478_v5 = vadd.f32 39.68, %v3000_v59  ;;  %v373_v9 = vsel %vm357_vm8, 1, %v5734_v43 }
  0x14   :  { %v2484_v10 = vadd.f32 3.0, %v2907_v1  ;;  %v372_v11 = vsel %vm356_vm9, 1, %v5734_v43  ;;  %vm359_vm10 = vcmp.lt.s32.totalorder %v2951_v36, 496  ;;  %vm358_vm11 = vcmp.lt.s32.totalorder %v2947_v34, 496 }
  0x15   :  { %v2485_v12 = vadd.f32 3.0, %v2920_v6  ;;  %v125_v14 = vfloor.f32 %v109_v63  ;;  %v124_v15 = vfloor.f32 %v108_v3  ;;  %v111_v16 = vmul.f32 6.25, %v2479_v4 }
  0x16   :  { %302 = vrot.lane.b32.xlu1 %v281_v55, %s2857_s9  ;;  %300 = vrot.lane.b32.xlu0 %v280_v56, %s2857_s9  ;;  %v110_v17 = vmul.f32 6.25, %v2478_v5  ;;  %v375_v18 = vsel %vm359_vm10, 1, %v5734_v43  ;;  %vm361_vm12 = vcmp.lt.s32.totalorder %v2960_v46, 496  ;;  %v2487_v19 = vadd.f32 3.0, %v2912_v2 }
  0x17   :  { %v2486_v20 = vadd.f32 3.0, %v2902_v0  ;;  %v374_v22 = vsel %vm358_vm11, 1, %v5734_v43  ;;  %vm360_vm13 = vcmp.lt.s32.totalorder %v2965_v47, 496  ;;  %v165_v23 = vmul.f32 0.25, %v2485_v12 }
  0x18   :  { %v164_v24 = vmul.f32 0.25, %v2484_v10  ;;  %v2706_v25 = vtrunc.f32 %v125_v14  ;;  %v2704_v26 = vtrunc.f32 %v124_v15  ;;  %v127_v27 = vfloor.f32 %v111_v16 }
  0x19   :  { %v126_v28 = vfloor.f32 %v110_v17  ;;  %v377_v29 = vsel %vm361_vm12, 1, %v5734_v43  ;;  %v376_v30 = vsel %vm360_vm13, 1, %v5734_v43  ;;  %vm363_vm14 = vcmp.lt.s32.totalorder %v2969_v51, 496 }
  0x1a   :  { %306 = vrot.lane.b32.xlu1 %v283_v61, %s2857_s9  ;;  %304 = vrot.lane.b32.xlu0 %v282_v62, %s2857_s9  ;;  %vm362_vm15 = vcmp.lt.s32.totalorder %v2973_v52, 496  ;;  %v181_v31 = vfloor.f32 %v165_v23  ;;  %v180_v32 = vfloor.f32 %v164_v24  ;;  %v167_v33 = vmul.f32 0.25, %v2487_v19 }
  0x1b   :  { %v166_v37 = vmul.f32 0.25, %v2486_v20  ;;  %v3033_v38 = vcvt.f32.s32 %v2706_v25  ;;  %v3035_v39 = vcvt.f32.s32 %v2704_v26  ;;  %v2710_v40 = vtrunc.f32 %v127_v27 }
  0x1c   :  { %v2708_v41 = vtrunc.f32 %v126_v28  ;;  %v2489_v44 = vadd.f32 3.0, %v2925_v7  ;;  %v2488_v45 = vadd.f32 3.0, %v2930_v8  ;;  %v379_v48 = vsel %vm363_vm14, 1, %v5734_v43 }
  0x1d   :  { %v378_v49 = vsel %vm362_vm15, 1, %v5734_v43  ;;  %v2722_v50 = vtrunc.f32 %v181_v31  ;;  %v2720_v55 = vtrunc.f32 %v180_v32  ;;  %v183_v56 = vfloor.f32 %v167_v33 }
  0x1e   :  { %390 = vrot.lane.b32.xlu1 %v373_v9, %s2857_s9  ;;  %388 = vrot.lane.b32.xlu0 %v372_v11, %s2857_s9  ;;  %v182_v57 = vfloor.f32 %v166_v37  ;;  %vm269_vm0 = vcmp.ge.s32.totalorder %v3033_v38, 0  ;;  %vm268_vm1 = vcmp.ge.s32.totalorder %v3035_v39, 0  ;;  %v3045_v60 = vcvt.f32.s32 %v2710_v40 }
  0x1f   :  { %v3047_v61 = vcvt.f32.s32 %v2708_v41  ;;  %v169_v62 = vmul.f32 0.25, %v2489_v44  ;;  %v168_v63 = vmul.f32 0.25, %v2488_v45  ;;  %v2491_v3 = vadd.f32 3.0, %v2936_v13 }
  0x20   :  { %v2490_v4 = vadd.f32 3.0, %v2944_v21  ;;  %v3053_v5 = vcvt.f32.s32 %v2722_v50  ;;  %v3055_v9 = vcvt.f32.s32 %v2720_v55  ;;  %v2726_v10 = vtrunc.f32 %v183_v56 }
  0x21   :  { %v2724_v11 = vtrunc.f32 %v182_v57  ;;  %v285_v12 = vsel %vm269_vm0, 1, %v5734_v43  ;;  %v284_v14 = vsel %vm268_vm1, 1, %v5734_v43  ;;  %vm271_vm2 = vcmp.ge.s32.totalorder %v3045_v60, 0 }
  0x22   :  { %394 = vrot.lane.b32.xlu1 %v375_v18, %s2857_s9  ;;  %392 = vrot.lane.b32.xlu0 %v374_v22, %s2857_s9  ;;  %vm270_vm3 = vcmp.ge.s32.totalorder %v3047_v61, 0  ;;  %v185_v15 = vfloor.f32 %v169_v62  ;;  %v184_v16 = vfloor.f32 %v168_v63  ;;  %v171_v17 = vmul.f32 0.25, %v2491_v3 }
  0x23   :  { %v170_v18 = vmul.f32 0.25, %v2490_v4  ;;  %v3063_v19 = vcvt.f32.s32 %v2726_v10  ;;  %v3065_v20 = vcvt.f32.s32 %v2724_v11  ;;  %v287_v22 = vsel %vm271_vm2, 1, %v5734_v43  ;;  %v3140_v4 = vld [vmem:[%s5723_s0 + $0x78] sm:$0xff]  ;;  %v3145_v10 = vld [vmem:[%s5723_s0 + $0x70] sm:$0xff] }
  0x24   :  { %v286_v23 = vsel %vm270_vm3, 1, %v5734_v43  ;;  %vm453_vm4 = vcmp.ge.s32.totalorder %v3053_v5, 0  ;;  %vm452_vm5 = vcmp.ge.s32.totalorder %v3055_v9, 0  ;;  %v2730_v24 = vtrunc.f32 %v185_v15 }
  0x25   :  { %v2728_v25 = vtrunc.f32 %v184_v16  ;;  %v187_v26 = vfloor.f32 %v171_v17  ;;  %v186_v27 = vfloor.f32 %v170_v18  ;;  %v469_v28 = vsel %vm453_vm4, 1, %v5734_v43 }
  0x26   :  { %398 = vrot.lane.b32.xlu1 %v377_v29, %s2857_s9  ;;  %396 = vrot.lane.b32.xlu0 %v376_v30, %s2857_s9  ;;  %v468_v29 = vsel %vm452_vm5, 1, %v5734_v43  ;;  %vm455_vm6 = vcmp.ge.s32.totalorder %v3063_v19, 0  ;;  %vm454_vm7 = vcmp.ge.s32.totalorder %v3065_v20, 0  ;;  %v3077_v30 = vcvt.f32.s32 %v2730_v24 }
  0x27   :  { %v3079_v31 = vcvt.f32.s32 %v2728_v25  ;;  %v2734_v32 = vtrunc.f32 %v187_v26  ;;  %v2732_v33 = vtrunc.f32 %v186_v27  ;;  %v471_v37 = vsel %vm455_vm6, 1, %v5734_v43 }
  0x28   :  { %v470_v40 = vsel %vm454_vm7, 1, %v5734_v43  ;;  %vm457_vm8 = vcmp.ge.s32.totalorder %v3077_v30, 0  ;;  %v661_v55 = vmul.u32 512, %v2956_v42  ;;  %v660_v56 = vmul.u32 512, %v2949_v35 }
  0x29   :  { %vm456_vm9 = vcmp.ge.s32.totalorder %v3079_v31, 0  ;;  %v3087_v41 = vcvt.f32.s32 %v2734_v32  ;;  %v3089_v44 = vcvt.f32.s32 %v2732_v33  ;;  %v473_v45 = vsel %vm457_vm8, 1, %v5734_v43 }
  0x2a   :  { %402 = vrot.lane.b32.xlu1 %v379_v48, %s2857_s9  ;;  %400 = vrot.lane.b32.xlu0 %v378_v49, %s2857_s9  ;;  %v472_v48 = vsel %vm456_vm9, 1, %v5734_v43  ;;  %v663_v57 = vmul.u32 512, %v2951_v36  ;;  %v662_v62 = vmul.u32 512, %v2947_v34  ;;  %vm365_vm12 = vcmp.lt.s32.totalorder %v3033_v38, 496  ;;  %v3122_v34 = vld [vmem:[%s5723_s0 + $0x68] sm:$0xff]  ;;  %v3127_v36 = vld [vmem:[%s5723_s0 + $0x60] sm:$0xff] }
  0x2b   :  { %vm459_vm10 = vcmp.ge.s32.totalorder %v3087_v41, 0  ;;  %vm458_vm11 = vcmp.ge.s32.totalorder %v3089_v44, 0  ;;  %v665_v63 = vmul.u32 512, %v2960_v46  ;;  %v664_v3 = vmul.u32 512, %v2965_v47  ;;  %s2861_s0 = smov 2  }
  0x2c   :  { %v475_v49 = vsel %vm459_vm10, 1, %v5734_v43  ;;  %v474_v50 = vsel %vm458_vm11, 1, %v5734_v43  ;;  %v667_v35 = vmul.u32 512, %v2969_v51  ;;  %v666_v42 = vmul.u32 512, %v2973_v52 }
  0x2d   :  { %vm364_vm13 = vcmp.lt.s32.totalorder %v3035_v39, 496  ;;  %v381_v46 = vsel %vm365_vm12, 1, %v5734_v43  ;;  %vm367_vm14 = vcmp.lt.s32.totalorder %v3045_v60, 496  ;;  %vm366_vm15 = vcmp.lt.s32.totalorder %v3047_v61, 496 }
  0x2e   :  { %310 = vrot.lane.b32.xlu1 %v285_v12, %s2857_s9  ;;  %308 = vrot.lane.b32.xlu0 %v284_v14, %s2857_s9  ;;  %v380_v47 = vsel %vm364_vm13, 1, %v5734_v43  ;;  %v2481_v51 = vadd.f32 39.68, %v3122_v34  ;;  %v2480_v52 = vadd.f32 39.68, %v3127_v36  ;;  %v383_v11 = vsel %vm367_vm14, 1, %v5734_v43 }
  0x2f   :  { %v382_v12 = vsel %vm366_vm15, 1, %v5734_v43  ;;  %vm549_vm0 = vcmp.lt.s32.totalorder %v3053_v5, 1  ;;  %vm548_vm1 = vcmp.lt.s32.totalorder %v3055_v9, 1  ;;  %v2483_v16 = vadd.f32 39.68, %v3140_v4 }
  0x30   :  { %v113_v14 = vmul.f32 6.25, %v2481_v51  ;;  %v112_v15 = vmul.f32 6.25, %v2480_v52  ;;  %v2482_v17 = vadd.f32 39.68, %v3145_v10  ;;  %v565_v18 = vsel %vm549_vm0, 1, %v5734_v43 }
  0x31   :  { %vm551_vm2 = vcmp.lt.s32.totalorder %v3063_v19, 1  ;;  %vm550_vm3 = vcmp.lt.s32.totalorder %v3065_v20, 1  ;;  %v2492_v24 = vadd.f32 3.0, %v2985_v54  ;;  %v115_v27 = vmul.f32 6.25, %v2483_v16 }
  0x32   :  { %314 = vrot.lane.b32.xlu1 %v287_v22, %s2857_s9  ;;  %312 = vrot.lane.b32.xlu0 %v286_v23, %s2857_s9  ;;  %v564_v22 = vsel %vm548_vm1, 1, %v5734_v43  ;;  %v2493_v23 = vadd.f32 3.0, %v2978_v53  ;;  %v129_v25 = vfloor.f32 %v113_v14  ;;  %v128_v26 = vfloor.f32 %v112_v15 }
  0x33   :  { %v566_v32 = vsel %vm550_vm3, 1, %v5734_v43  ;;  %vm553_vm4 = vcmp.lt.s32.totalorder %v3077_v30, 1  ;;  %vm552_vm5 = vcmp.lt.s32.totalorder %v3079_v31, 1  ;;  %vm555_vm6 = vcmp.lt.s32.totalorder %v3087_v41, 1 }
  0x34   :  { %v173_v33 = vmul.f32 0.25, %v2493_v23  ;;  %vm554_vm7 = vcmp.lt.s32.totalorder %v3089_v44, 1  ;;  %v571_v52 = vsel %vm555_vm6, 1, %v5734_v43 }
  0x36   :  { %486 = vrot.lane.b32.xlu1 %v469_v28, %s2858_s18  ;;  %484 = vrot.lane.b32.xlu0 %v468_v29, %s2858_s18  ;;  %v114_v28 = vmul.f32 6.25, %v2482_v17  ;;  %v567_v29 = vsel %vm551_vm2, 1, %v5734_v43 }
  0x3a   :  { %490 = vrot.lane.b32.xlu1 %v471_v37, %s2858_s18  ;;  %488 = vrot.lane.b32.xlu0 %v470_v40, %s2858_s18  ;;  %v172_v37 = vmul.f32 0.25, %v2492_v24  ;;  %v2495_v40 = vadd.f32 3.0, %v2995_v58 }
  0x3e   :  { %494 = vrot.lane.b32.xlu1 %v473_v45, %s2858_s18  ;;  %492 = vrot.lane.b32.xlu0 %v472_v48, %s2858_s18  ;;  %v2494_v45 = vadd.f32 3.0, %v3000_v59  ;;  %v2714_v48 = vtrunc.f32 %v129_v25 }
  0x42   :  { %498 = vrot.lane.b32.xlu1 %v475_v49, %s2858_s18  ;;  %496 = vrot.lane.b32.xlu0 %v474_v50, %s2858_s18  ;;  %v2712_v49 = vtrunc.f32 %v128_v26  ;;  %v131_v50 = vfloor.f32 %v115_v27 }
  0x46   :  { %678 = vrot.lane.b32.xlu1 %v661_v55, %s2859_s19  ;;  %676 = vrot.lane.b32.xlu0 %v660_v56, %s2859_s19  ;;  %v130_v55 = vfloor.f32 %v114_v28  ;;  %v569_v56 = vsel %vm553_vm4, 1, %v5734_v43 }
  0x48   :  { %v2716_v51 = vtrunc.f32 %v130_v55  ;;  %v669_v55 = vmul.u32 512, %v3033_v38  ;;  %v670_v38 = vmul.u32 512, %v3047_v61  ;;  %v43_v61 = vmul.f32 6.25, %v2936_v13 }
  0x4a   :  { %682 = vrot.lane.b32.xlu1 %v663_v57, %s2859_s19  ;;  %680 = vrot.lane.b32.xlu0 %v662_v62, %s2859_s19  ;;  %v568_v57 = vsel %vm552_vm5, 1, %v5734_v43  ;;  %v189_v62 = vfloor.f32 %v173_v33  ;;  %v59_v13 = vfloor.f32 %v43_v61 }
  0x4e   :  { %686 = vrot.lane.b32.xlu1 %v665_v63, %s2859_s19  ;;  %684 = vrot.lane.b32.xlu0 %v664_v3, %s2859_s19  ;;  %v188_v63 = vfloor.f32 %v172_v37  ;;  %v175_v3 = vmul.f32 0.25, %v2495_v40 }
  0x50   :  { %v2736_v14 = vtrunc.f32 %v188_v63  ;;  %v191_v15 = vfloor.f32 %v175_v3 }
  0x52   :  { %690 = vrot.lane.b32.xlu1 %v667_v35, %s2859_s19  ;;  %688 = vrot.lane.b32.xlu0 %v666_v42, %s2859_s19  ;;  %v174_v35 = vmul.f32 0.25, %v2494_v45  ;;  %v3177_v42 = vcvt.f32.s32 %v2714_v48  ;;  %v2742_v25 = vtrunc.f32 %v191_v15  ;;  %v3199_v26 = vcvt.f32.s32 %v2736_v14 }
  0x53   :  { %v42_v14 = vmul.f32 6.25, %v2944_v21 }
  0x54   :  { %v190_v16 = vfloor.f32 %v174_v35  ;;  %vm273_vm8 = vcmp.ge.s32.totalorder %v3177_v42, 0  ;;  %vm460_vm13 = vcmp.ge.s32.totalorder %v3199_v26, 0  ;;  %vm369_vm0 = vcmp.lt.s32.totalorder %v3177_v42, 496 }
  0x55   :  { %v476_v40 = vsel %vm460_vm13, 1, %v5734_v43  ;;  %vm556_vm5 = vcmp.lt.s32.totalorder %v3199_v26, 1 }
  0x56   :  { %406 = vrot.lane.b32.xlu1 %v381_v46, %s2857_s9  ;;  %404 = vrot.lane.b32.xlu0 %v380_v47, %s2857_s9  ;;  %v3179_v46 = vcvt.f32.s32 %v2712_v49  ;;  %v2718_v47 = vtrunc.f32 %v131_v50  ;;  %v2740_v27 = vtrunc.f32 %v190_v16  ;;  %v36_v49 = vmul.f32 6.25, %v2907_v1 }
  0x57   :  { %v37_v50 = vmul.f32 6.25, %v2920_v6  ;;  %v39_v1 = vmul.f32 6.25, %v2912_v2  ;;  %v671_v6 = vmul.u32 512, %v3045_v60  ;;  %v40_v2 = vmul.f32 6.25, %v2930_v8 }
  0x58   :  { %vm272_vm9 = vcmp.ge.s32.totalorder %v3179_v46, 0  ;;  %v3187_v17 = vcvt.f32.s32 %v2718_v47  ;;  %v3209_v33 = vcvt.f32.s32 %v2740_v27  ;;  %v52_v63 = vfloor.f32 %v36_v49 }
  0x59   :  { %v288_v23 = vsel %vm272_vm9, 1, %v5734_v43  ;;  %v53_v3 = vfloor.f32 %v37_v50  ;;  %v56_v8 = vfloor.f32 %v40_v2  ;;  %vm368_vm1 = vcmp.lt.s32.totalorder %v3179_v46, 496 }
  0x5a   :  { %410 = vrot.lane.b32.xlu1 %v383_v11, %s2857_s9  ;;  %408 = vrot.lane.b32.xlu0 %v382_v12, %s2857_s9  ;;  %v570_v11 = vsel %vm554_vm7, 1, %v5734_v43  ;;  %v2738_v12 = vtrunc.f32 %v189_v62  ;;  %vm275_vm10 = vcmp.ge.s32.totalorder %v3187_v17, 0  ;;  %5903 = vst [vmem:[#allocation12_spill] sm:$0xff] %v3209_v33  ;;  %vm462_vm15 = vcmp.ge.s32.totalorder %v3209_v33, 0 }
  0x5b   :  { %v291_v28 = vsel %vm275_vm10, 1, %v5734_v43  ;;  %v478_v48 = vsel %vm462_vm15, 1, %v5734_v43  ;;  %v5729_v62 = vmov 2   ;;  %v384_v2 = vsel %vm368_vm1, 1, %v5734_v43 }
  0x5c   :  { %v3195_v24 = vcvt.f32.s32 %v2738_v12  ;;  %2774 = vset.pattern.permute.xlu1 %v5729_v62  ;;  %2773 = vset.pattern.permute.xlu0 %v5729_v62  ;;  %vm371_vm2 = vcmp.lt.s32.totalorder %v3187_v17, 496  ;;  %vm558_vm7 = vcmp.lt.s32.totalorder %v3209_v33, 1 }
  0x5e   :  { %582 = vrot.lane.b32.xlu1 %v565_v18, %s2858_s18  ;;  %580 = vrot.lane.b32.xlu0 %v564_v22, %s2858_s18  ;;  %v3189_v18 = vcvt.f32.s32 %v2716_v51  ;;  %v289_v22 = vsel %vm273_vm8, 1, %v5734_v43  ;;  %vm461_vm12 = vcmp.ge.s32.totalorder %v3195_v24, 0  ;;  %v2656_v51 = vtrunc.f32 %v52_v63 }
  0x5f   :  { %v477_v37 = vsel %vm461_vm12, 1, %v5734_v43  ;;  %v2496_v63 = vadd.f32 3.0, %v3127_v36  ;;  %vm557_vm4 = vcmp.lt.s32.totalorder %v3195_v24, 1 }
  0x60   :  { %vm274_vm11 = vcmp.ge.s32.totalorder %v3189_v18, 0  ;;  %vm370_vm3 = vcmp.lt.s32.totalorder %v3189_v18, 496 }
  0x62   :  { %586 = vrot.lane.b32.xlu1 %v567_v29, %s2858_s18  ;;  %584 = vrot.lane.b32.xlu0 %v566_v32, %s2858_s18  ;;  %v290_v29 = vsel %vm274_vm11, 1, %v5734_v43  ;;  %v3207_v32 = vcvt.f32.s32 %v2742_v25  ;;  %v58_v25 = vfloor.f32 %v42_v14 }
  0x64   :  { %vm463_vm14 = vcmp.ge.s32.totalorder %v3207_v32, 0  ;;  %vm559_vm6 = vcmp.lt.s32.totalorder %v3207_v32, 1 }
  0x65   :  { %v479_v45 = vsel %vm463_vm14, 1, %v5734_v43 }
  0x66   :  { %590 = vrot.lane.b32.xlu1 %v569_v56, %s2858_s18  ;;  %588 = vrot.lane.b32.xlu0 %v568_v57, %s2858_s18  ;;  %v668_v56 = vmul.u32 512, %v3035_v39  ;;  %v38_v57 = vmul.f32 6.25, %v2902_v0  ;;  %v41_v0 = vmul.f32 6.25, %v2925_v7  ;;  %v3245_v7 = vcvt.f32.s32 %v2656_v51 }
  0x67   :  { %v2499_v51 = vadd.f32 3.0, %v3140_v4 }
  0x68   :  { %v54_v39 = vfloor.f32 %v38_v57  ;;  %v57_v60 = vfloor.f32 %v41_v0  ;;  %v2497_v57 = vadd.f32 3.0, %v3122_v34  ;;  %v176_v0 = vmul.f32 0.25, %v2496_v63 }
  0x69   :  { %vm228_vm1 = vcmp.lt.s32.totalorder %v3245_v7, 432 }
  0x6a   :  { %594 = vrot.lane.b32.xlu1 %v571_v52, %s2858_s18  ;;  %592 = vrot.lane.b32.xlu0 %v570_v11, %s2858_s18  ;;  %v55_v52 = vfloor.f32 %v39_v1  ;;  %v2658_v11 = vtrunc.f32 %v53_v3  ;;  %v2660_v12 = vtrunc.f32 %v54_v39  ;;  %v177_v39 = vmul.f32 0.25, %v2497_v57 }
  0x6b   :  { %v192_v14 = vfloor.f32 %v176_v0  ;;  %v572_v0 = vsel %vm556_vm5, 1, %v5734_v43 }
  0x6c   :  { %v2662_v15 = vtrunc.f32 %v55_v52  ;;  %v3257_v21 = vcvt.f32.s32 %v2660_v12  ;;  %v2498_v52 = vadd.f32 3.0, %v3145_v10  ;;  %v193_v61 = vfloor.f32 %v177_v39 }
  0x6d   :  { %v573_v39 = vsel %vm557_vm4, 1, %v5734_v43 }
  0x6e   :  { %318 = vrot.lane.b32.xlu1 %v289_v22, %s2857_s9  ;;  %316 = vrot.lane.b32.xlu0 %v288_v23, %s2857_s9  ;;  %v3249_v22 = vcvt.f32.s32 %v2658_v11  ;;  %v3259_v27 = vcvt.f32.s32 %v2662_v15  ;;  %v385_v11 = vsel %vm369_vm0, 1, %v5734_v43  ;;  %v179_v15 = vmul.f32 0.25, %v2499_v51 }
  0x6f   :  { %vm212_vm0 = vcmp.ge.s32.totalorder %v3245_v7, 0 }
  0x70   :  { %v195_v57 = vfloor.f32 %v179_v15  ;;  %v575_v15 = vsel %vm559_vm6, 1, %v5734_v43  ;;  %vm215_vm4 = vcmp.ge.s32.totalorder %v3259_v27, 0  ;;  %vm231_vm5 = vcmp.lt.s32.totalorder %v3259_v27, 432  ;;  %vm244_vm6 = vmand %vm212_vm0, %vm228_vm1 }
  0x72   :  { %322 = vrot.lane.b32.xlu1 %v291_v28, %s2857_s9  ;;  %320 = vrot.lane.b32.xlu0 %v290_v29, %s2857_s9  ;;  %v2666_v28 = vtrunc.f32 %v57_v60 }
  0x74   :  { %v3269_v49 = vcvt.f32.s32 %v2666_v28 }
  0x76   :  { %502 = vrot.lane.b32.xlu1 %v477_v37, %s2858_s18  ;;  %500 = vrot.lane.b32.xlu0 %v476_v40, %s2858_s18  ;;  %v2664_v37 = vtrunc.f32 %v56_v8  ;;  %v178_v8 = vmul.f32 0.25, %v2498_v52 }
  0x78   :  { %v3271_v50 = vcvt.f32.s32 %v2664_v37  ;;  %v194_v63 = vfloor.f32 %v178_v8  ;;  %v574_v8 = vsel %vm558_vm7, 1, %v5734_v43 }
  0x7a   :  { %506 = vrot.lane.b32.xlu1 %v479_v45, %s2858_s18  ;;  %504 = vrot.lane.b32.xlu0 %v478_v48, %s2858_s18  ;;  %v2670_v45 = vtrunc.f32 %v59_v13  ;;  %v2668_v48 = vtrunc.f32 %v58_v25  ;;  %v387_v13 = vsel %vm371_vm2, 1, %v5734_v43  ;;  %v386_v25 = vsel %vm370_vm3, 1, %v5734_v43 }
  0x7b   :  { %vm214_vm2 = vcmp.ge.s32.totalorder %v3257_v21, 0  ;;  %vm230_vm3 = vcmp.lt.s32.totalorder %v3257_v21, 432 }
  0x7c   :  { %v3283_v1 = vcvt.f32.s32 %v2670_v45  ;;  %v3285_v3 = vcvt.f32.s32 %v2668_v48  ;;  %v2746_v45 = vtrunc.f32 %v193_v61  ;;  %v2744_v48 = vtrunc.f32 %v192_v14 }
  0x7d   :  { %v2750_v61 = vtrunc.f32 %v195_v57  ;;  %v2748_v14 = vtrunc.f32 %v194_v63 }
  0x7e   :  { %694 = vrot.lane.b32.xlu1 %v669_v55, %s2859_s19  ;;  %692 = vrot.lane.b32.xlu0 %v668_v56, %s2859_s19 }
  0x80   :  { %v3236_v35 = vpop.permute.xlu1 %296  ;;  %v3238_v47 = vpop.permute.xlu0 %292 }
  0x81   :  { %vm324_vm7 = vcmp.ne.s32.totalorder %v3238_v47, 0  ;;  %vm326_vm0 = vcmp.ne.s32.totalorder %v3236_v35, 0  ;;  %v5952_v35 = vmov 0 }
  0x82   :  { %698 = vrot.lane.b32.xlu1 %v671_v6, %s2859_s19  ;;  %696 = vrot.lane.b32.xlu0 %v670_v38, %s2859_s19 }
  0x84   :  { %v3247_v16 = vpop.permute.xlu1 %298  ;;  %v3251_v23 = vpop.permute.xlu0 %294 }
  0x85   :  { %5904 = vst [vmem:[#allocation13_spill] sm:$0xff] %v3251_v23 }
  0x86   :  { %726 = vrot.lane.b32.xlu1 %v3249_v22, %s2861_s0  ;;  %724 = vrot.lane.b32.xlu0 %v3245_v7, %s2861_s0  ;;  %v5948_v7 = vmov 0 }
  0x88   :  { %v3261_v29 = vpop.permute.xlu1 %302  ;;  %v3263_v40 = vpop.permute.xlu0 %300 }
  0x89   :  { %5905 = vst [vmem:[#allocation14_spill] sm:$0xff] %v3263_v40 }
  0x8a   :  { %730 = vrot.lane.b32.xlu1 %v3259_v27, %s2861_s0  ;;  %728 = vrot.lane.b32.xlu0 %v3257_v21, %s2861_s0 }
  0x8c   :  { %v3273_v55 = vpop.permute.xlu1 %306  ;;  %v3275_v56 = vpop.permute.xlu0 %304 }
  0x8d   :  { %5906 = vst [vmem:[#allocation15_spill] sm:$0xff] %v3275_v56 }
  0x8e   :  { %734 = vrot.lane.b32.xlu1 %v3269_v49, %s2861_s0  ;;  %732 = vrot.lane.b32.xlu0 %v3271_v50, %s2861_s0 }
  0x90   :  { %v3289_v6 = vpop.permute.xlu1 %390  ;;  %v3291_v38 = vpop.permute.xlu0 %388 }
  0x91   :  { %5907 = vst [vmem:[#allocation16_spill] sm:$0xff] %v3289_v6 }
  0x92   :  { %738 = vrot.lane.b32.xlu1 %v3283_v1, %s2861_s0  ;;  %736 = vrot.lane.b32.xlu0 %v3285_v3, %s2861_s0 }
  0x94   :  { %v3303_v12 = vpop.permute.xlu1 %394  ;;  %v3305_v60 = vpop.permute.xlu0 %392 }
  0x96   :  { %414 = vrot.lane.b32.xlu1 %v385_v11, %s2857_s9  ;;  %412 = vrot.lane.b32.xlu0 %v384_v2, %s2857_s9  ;;  %v3327_v11 = vcvt.f32.s32 %v2746_v45  ;;  %v3329_v2 = vcvt.f32.s32 %v2744_v48  ;;  %v3341_v45 = vcvt.f32.s32 %v2750_v61  ;;  %v3343_v48 = vcvt.f32.s32 %v2748_v14 }
  0x98   :  { %v3313_v28 = vpop.permute.xlu1 %398  ;;  %v3315_v37 = vpop.permute.xlu0 %396  ;;  %5910 = vst [vmem:[#allocation19_spill] sm:$0xff] %v3327_v11  ;;  %5911 = vst [vmem:[#allocation20_spill] sm:$0xff] %v3329_v2  ;;  %vm465_vm8 = vcmp.ge.s32.totalorder %v3327_v11, 0  ;;  %vm464_vm9 = vcmp.ge.s32.totalorder %v3329_v2, 0  ;;  %vm467_vm10 = vcmp.ge.s32.totalorder %v3341_v45, 0  ;;  %vm466_vm11 = vcmp.ge.s32.totalorder %v3343_v48, 0 }
  0x99   :  { %5908 = vst [vmem:[#allocation17_spill] sm:$0xff] %v3315_v37  ;;  %5914 = vst [vmem:[#allocation23_spill] sm:$0xff] %v3341_v45  ;;  %v481_v57 = vsel %vm465_vm8, 1, %v5734_v43  ;;  %v480_v63 = vsel %vm464_vm9, 1, %v5734_v43  ;;  %v483_v61 = vsel %vm467_vm10, 1, %v5734_v43  ;;  %v482_v14 = vsel %vm466_vm11, 1, %v5734_v43 }
  0x9a   :  { %418 = vrot.lane.b32.xlu1 %v387_v13, %s2857_s9  ;;  %416 = vrot.lane.b32.xlu0 %v386_v25, %s2857_s9  ;;  %5915 = vst [vmem:[#allocation24_spill] sm:$0xff] %v3343_v48  ;;  %v47_v43 = vmul.f32 6.25, %v2995_v58  ;;  %vm561_vm12 = vcmp.lt.s32.totalorder %v3327_v11, 1  ;;  %vm560_vm13 = vcmp.lt.s32.totalorder %v3329_v2, 1  ;;  %vm563_vm14 = vcmp.lt.s32.totalorder %v3341_v45, 1  ;;  %vm3515_vm9 = vmand %vm214_vm2, %vm230_vm3  ;;  %s2864_s9 = smov [#allocation7]  }
  0x9b   :  { %vm562_vm15 = vcmp.lt.s32.totalorder %v3343_v48, 1  ;;  %vm217_vm8 = vcmp.ge.s32.totalorder %v3269_v49, 0  ;;  %vm233_vm10 = vcmp.lt.s32.totalorder %v3269_v49, 432  ;;  %vm420_vm11 = vcmp.ne.s32.totalorder %v3291_v38, 0  ;;  %s2440_s10 = sshll.u32 %s2864_s9, 4  ;;  %s2441_s10 = int_to_ptr.vmem [resolvable:$true] %s2440_s10 }
  0x9c   :  { %v3323_v51 = vpop.permute.xlu1 %402  ;;  %v3325_v52 = vpop.permute.xlu0 %400  ;;  %vm3534_vm1 = vmand %vm217_vm8, %vm233_vm10  ;;  %vm219_vm3 = vcmp.ge.s32.totalorder %v3283_v1, 0 }
  0x9d   :  { %5909 = vst [vmem:[#allocation18_spill] sm:$0xff] %v3325_v52  ;;  %vm342_vm8 = vmand %vm3515_vm9, %vm326_vm0 }
  0x9e   :  { %598 = vrot.lane.b32.xlu1 %v573_v39, %s2858_s18  ;;  %596 = vrot.lane.b32.xlu0 %v572_v0, %s2858_s18 }
  0xa0   :  { %v3335_v13 = vpop.permute.xlu1 %310  ;;  %v3337_v25 = vpop.permute.xlu0 %308 }
  0xa1   :  { %5912 = vst [vmem:[#allocation21_spill] sm:$0xff] %v3335_v13  ;;  %5913 = vst [vmem:[#allocation22_spill] sm:$0xff] %v3337_v25 }
  0xa2   :  { %602 = vrot.lane.b32.xlu1 %v575_v15, %s2858_s18  ;;  %600 = vrot.lane.b32.xlu0 %v574_v8, %s2858_s18  ;;  %v45_v15 = vmul.f32 6.25, %v2978_v53  ;;  %v44_v8 = vmul.f32 6.25, %v2985_v54  ;;  %v46_v53 = vmul.f32 6.25, %v3000_v59 }
  0xa4   :  { %v3349_v39 = vpop.permute.xlu1 %314  ;;  %v3351_v0 = vpop.permute.xlu0 %312  ;;  %v60_v52 = vfloor.f32 %v44_v8  ;;  %v62_v8 = vfloor.f32 %v46_v53 }
  0xa5   :  { %5916 = vst [vmem:[#allocation25_spill] sm:$0xff] %v3349_v39  ;;  %5917 = vst [vmem:[#allocation26_spill] sm:$0xff] %v3351_v0  ;;  %v61_v39 = vfloor.f32 %v45_v15  ;;  %v63_v15 = vfloor.f32 %v47_v43  ;;  %v49_v43 = vmul.f32 6.25, %v3122_v34 }
  0xa6   :  { %510 = vrot.lane.b32.xlu1 %v481_v57, %s2858_s18  ;;  %508 = vrot.lane.b32.xlu0 %v480_v63, %s2858_s18  ;;  %v673_v57 = vmul.u32 512, %v3177_v42  ;;  %v672_v63 = vmul.u32 512, %v3179_v46  ;;  %v2672_v46 = vtrunc.f32 %v60_v52  ;;  %v48_v52 = vmul.f32 6.25, %v3127_v36 }
  0xa7   :  { %v674_v42 = vmul.u32 512, %v3189_v18  ;;  %v65_v34 = vfloor.f32 %v49_v43 }
  0xa8   :  { %v3361_v62 = vpop.permute.xlu1 %486  ;;  %v3363_v13 = vpop.permute.xlu0 %484  ;;  %v64_v36 = vfloor.f32 %v48_v52 }
  0xa9   :  { %5918 = vst [vmem:[#allocation27_spill] sm:$0xff] %v3361_v62  ;;  %v2682_v43 = vtrunc.f32 %v65_v34 }
  0xaa   :  { %514 = vrot.lane.b32.xlu1 %v483_v61, %s2858_s18  ;;  %512 = vrot.lane.b32.xlu0 %v482_v14, %s2858_s18  ;;  %v675_v61 = vmul.u32 512, %v3187_v17  ;;  %v2674_v14 = vtrunc.f32 %v61_v39  ;;  %v2676_v17 = vtrunc.f32 %v62_v8  ;;  %v2680_v52 = vtrunc.f32 %v64_v36 }
  0xab   :  { %v3425_v45 = vcvt.f32.s32 %v2682_v43 }
  0xac   :  { %v3371_v37 = vpop.permute.xlu1 %490  ;;  %v3373_v54 = vpop.permute.xlu0 %488  ;;  %v3385_v59 = vcvt.f32.s32 %v2674_v14  ;;  %v3401_v53 = vcvt.f32.s32 %v2676_v17  ;;  %v51_v14 = vmul.f32 6.25, %v3140_v4  ;;  %v3427_v48 = vcvt.f32.s32 %v2680_v52 }
  0xad   :  { %5923 = vst [vmem:[#allocation31_spill] sm:$0xff] %v3425_v45  ;;  %vm519_vm9 = vcmp.ne.s32.totalorder %v3371_v37, 0  ;;  %v5961_v37 = vmov 0 }
  0xae   :  { %702 = vrot.lane.b32.xlu1 %v673_v57, %s2859_s19  ;;  %700 = vrot.lane.b32.xlu0 %v672_v63, %s2859_s19  ;;  %5920 = vst [vmem:[#allocation29_spill] sm:$0xff] %v3385_v59  ;;  %v3387_v57 = vcvt.f32.s32 %v2672_v46  ;;  %v2678_v63 = vtrunc.f32 %v63_v15  ;;  %v50_v46 = vmul.f32 6.25, %v3145_v10  ;;  %v5922_v15 = vmov 0   ;;  %5924 = vst [vmem:[#allocation32_spill] sm:$0xff] %v3427_v48 }
  0xaf   :  { %v577_v8 = vsel %vm561_vm12, 1, %v5922_v15  ;;  %v579_v10 = vsel %vm563_vm14, 1, %v5922_v15  ;;  %vm3523_vm12 = vmand %vm215_vm4, %vm231_vm5  ;;  %vm235_vm4 = vcmp.lt.s32.totalorder %v3283_v1, 432  ;;  %vm422_vm5 = vcmp.ne.s32.totalorder %v3305_v60, 0 }
  0xb0   :  { %v3379_v62 = vpop.permute.xlu1 %494  ;;  %v3381_v58 = vpop.permute.xlu0 %492  ;;  %v3399_v39 = vcvt.f32.s32 %v2678_v63  ;;  %v576_v63 = vsel %vm560_vm13, 1, %v5922_v15  ;;  %v66_v4 = vfloor.f32 %v50_v46  ;;  %v5949_v7 = vsel %vm3523_vm12, 4294967295, %v5948_v7  ;;  %vm340_vm14 = vmand %vm244_vm6, %vm324_vm7 }
  0xb1   :  { %5919 = vst [vmem:[#allocation28_spill] sm:$0xff] %v3381_v58  ;;  %v578_v58 = vsel %vm562_vm15, 1, %v5922_v15  ;;  %vm516_vm13 = vcmp.ne.s32.totalorder %v3363_v13, 0  ;;  %vm436_vm2 = vmand %vm340_vm14, %vm420_vm11  ;;  %vm518_vm7 = vcmp.ne.s32.totalorder %v3373_v54, 0  ;;  %vm327_vm11 = vcmp.ne.s32.totalorder %v3247_v16, 0 }
  0xb2   :  { %706 = vrot.lane.b32.xlu1 %v675_v61, %s2859_s19  ;;  %704 = vrot.lane.b32.xlu0 %v674_v42, %s2859_s19  ;;  %vm532_vm6 = vmand %vm436_vm2, %vm516_vm13  ;;  %v5957_v60 = vmov 0 }
  0xb3   :  { %vm3556_vm13 = vmand %vm219_vm3, %vm235_vm4  ;;  %vm5960_vm3 = vnez %v5949_v7 }
  0xb4   :  { %v3389_v0 = vpop.permute.xlu1 %498  ;;  %v3391_v18 = vpop.permute.xlu0 %496  ;;  %vm438_vm14 = vmand %vm342_vm8, %vm422_vm5  ;;  %vm425_vm8 = vcmp.ne.s32.totalorder %v3313_v28, 0 }
  0xb5   :  { %5921 = vst [vmem:[#allocation30_spill] sm:$0xff] %v3391_v18  ;;  %v67_v18 = vfloor.f32 %v51_v14  ;;  %vm534_vm2 = vmand %vm438_vm14, %vm518_vm7 }
  0xb6   :  { %742 = vrot.lane.b32.xlu1 %v3385_v59, %s2861_s0  ;;  %740 = vrot.lane.b32.xlu0 %v3387_v57, %s2861_s0  ;;  %vm343_vm4 = vmand %vm5960_vm3, %vm327_vm11 }
  0xb8   :  { %v3403_v61 = vpop.permute.xlu1 %678  ;;  %v3405_v42 = vpop.permute.xlu0 %676 }
  0xba   :  { %746 = vrot.lane.b32.xlu1 %v3399_v39, %s2861_s0  ;;  %744 = vrot.lane.b32.xlu0 %v3401_v53, %s2861_s0 }
  0xbc   :  { %v683_v17 = vpop.permute.xlu1 %682  ;;  %v681_v11 = vpop.permute.xlu0 %680 }
  0xbe   :  { %606 = vrot.lane.b32.xlu1 %v577_v8, %s2858_s18  ;;  %604 = vrot.lane.b32.xlu0 %v576_v63, %s2858_s18  ;;  %v2686_v8 = vtrunc.f32 %v67_v18  ;;  %v2684_v63 = vtrunc.f32 %v66_v4 }
  0xc0   :  { %v687_v2 = vpop.permute.xlu1 %686  ;;  %v685_v6 = vpop.permute.xlu0 %684  ;;  %v3437_v14 = vcvt.f32.s32 %v2686_v8  ;;  %v3439_v46 = vcvt.f32.s32 %v2684_v63 }
  0xc2   :  { %610 = vrot.lane.b32.xlu1 %v579_v10, %s2858_s18  ;;  %608 = vrot.lane.b32.xlu0 %v578_v58, %s2858_s18  ;;  %5925 = vst [vmem:[#allocation33_spill] sm:$0xff] %v3437_v14  ;;  %5926 = vst [vmem:[#allocation34_spill] sm:$0xff] %v3439_v46 }
  0xc4   :  { %v3429_v34 = vpop.permute.xlu1 %690  ;;  %v3431_v36 = vpop.permute.xlu0 %688 }
  0xc6   :  { %750 = vrot.lane.b32.xlu1 %v3425_v45, %s2861_s0  ;;  %748 = vrot.lane.b32.xlu0 %v3427_v48, %s2861_s0 }
  0xc8   :  { %v3441_v58 = vpop.permute.xlu1 %406  ;;  %v3443_v43 = vpop.permute.xlu0 %404 }
  0xc9   :  { %5927 = vst [vmem:[#allocation35_spill] sm:$0xff] %v3441_v58  ;;  %5928 = vst [vmem:[#allocation36_spill] sm:$0xff] %v3443_v43 }
  0xca   :  { %754 = vrot.lane.b32.xlu1 %v3437_v14, %s2861_s0  ;;  %752 = vrot.lane.b32.xlu0 %v3439_v46, %s2861_s0 }
  0xcc   :  { %v3449_v18 = vpop.permute.xlu1 %410  ;;  %v3451_v52 = vpop.permute.xlu0 %408 }
  0xcd   :  { %5929 = vst [vmem:[#allocation37_spill] sm:$0xff] %v3449_v18  ;;  %5930 = vst [vmem:[#allocation38_spill] sm:$0xff] %v3451_v52 }
  0xd0   :  { %v3453_v4 = vpop.permute.xlu1 %582  ;;  %v3455_v10 = vpop.permute.xlu0 %580 }
  0xd1   :  { %5931 = vst [vmem:[#allocation39_spill] sm:$0xff] %v3453_v4  ;;  %vm612_vm15 = vcmp.ne.s32.totalorder %v3455_v10, 0 }
  0xd2   :  { %vm3544_vm12 = vmand %vm532_vm6, %vm612_vm15  ;;  %vm423_vm15 = vcmp.ne.s32.totalorder %v3303_v12, 0  ;;  %vm329_vm6 = vcmp.ne.s32.totalorder %v3261_v29, 0  ;;  %v5964_v29 = vmov 0 }
  0xd3   :  { %v5953_v35 = vsel %vm3544_vm12, 4294967295, %v5952_v35  ;;  %v880_v38 = vsel %vm3544_vm12, 1, %v5922_v15  ;;  %vm439_vm7 = vmand %vm343_vm4, %vm423_vm15  ;;  %vm427_vm4 = vcmp.ne.s32.totalorder %v3323_v51, 0  ;;  %v5967_v51 = vmov 0 }
  0xd4   :  { %v3457_v8 = vpop.permute.xlu1 %586  ;;  %v3459_v63 = vpop.permute.xlu0 %584  ;;  %5954 = vst [vmem:[#allocation54_spill] sm:$0xff] %v5953_v35  ;;  %vm535_vm14 = vmand %vm439_vm7, %vm519_vm9  ;;  %vm331_vm9 = vcmp.ne.s32.totalorder %v3273_v55, 0  ;;  %vm222_vm12 = vcmp.ge.s32.totalorder %v3401_v53, 0 }
  0xd5   :  { %vm614_vm10 = vcmp.ne.s32.totalorder %v3459_v63, 0  ;;  %vm615_vm5 = vcmp.ne.s32.totalorder %v3457_v8, 0  ;;  %vm345_vm11 = vmand %vm3534_vm1, %vm329_vm6  ;;  %v6013_v8 = vmov 0 }
  0xd6   :  { %vm3566_vm0 = vmand %vm534_vm2, %vm614_vm10  ;;  %vm521_vm10 = vcmp.ne.s32.totalorder %v3379_v62, 0 }
  0xd7   :  { %v5958_v60 = vsel %vm3566_vm0, 4294967295, %v5957_v60  ;;  %v882_v12 = vsel %vm3566_vm0, 1, %v5922_v15  ;;  %vm3583_vm2 = vmand %vm535_vm14, %vm615_vm5  ;;  %vm523_vm5 = vcmp.ne.s32.totalorder %v3389_v0, 0  ;;  %vm239_vm0 = vcmp.lt.s32.totalorder %v3399_v39, 432 }
  0xd8   :  { %v3461_v58 = vpop.permute.xlu1 %590  ;;  %v3463_v48 = vpop.permute.xlu0 %588  ;;  %5959 = vst [vmem:[#allocation55_spill] sm:$0xff] %v5958_v60  ;;  %v5962_v37 = vsel %vm3583_vm2, 4294967295, %v5961_v37  ;;  %vm441_vm3 = vmand %vm345_vm11, %vm425_vm8  ;;  %v883_v62 = vsel %vm3583_vm2, 1, %v5922_v15 }
  0xd9   :  { %5932 = vst [vmem:[#allocation40_spill] sm:$0xff] %v3463_v48  ;;  %5963 = vst [vmem:[#allocation56_spill] sm:$0xff] %v5962_v37  ;;  %vm617_vm15 = vcmp.ne.s32.totalorder %v3461_v58, 0 }
  0xda   :  { %vm537_vm7 = vmand %vm441_vm3, %vm521_vm10  ;;  %vm232_vm3 = vcmp.lt.s32.totalorder %v3271_v50, 432 }
  0xdb   :  { %vm3600_vm14 = vmand %vm537_vm7, %vm617_vm15  ;;  %vm229_vm15 = vcmp.lt.s32.totalorder %v3249_v22, 432  ;;  %vm234_vm7 = vcmp.lt.s32.totalorder %v3285_v3, 432 }
  0xdc   :  { %v3465_v14 = vpop.permute.xlu1 %594  ;;  %v3467_v45 = vpop.permute.xlu0 %592  ;;  %v5965_v29 = vsel %vm3600_vm14, 4294967295, %v5964_v29  ;;  %vm347_vm1 = vmand %vm3556_vm13, %vm331_vm9  ;;  %v885_v55 = vsel %vm3600_vm14, 1, %v5922_v15  ;;  %vm213_vm13 = vcmp.ge.s32.totalorder %v3249_v22, 0  ;;  %vm216_vm9 = vcmp.ge.s32.totalorder %v3271_v50, 0  ;;  %v5975_v22 = vld [vmem:[#allocation13_spill] sm:$0xff]  ;;  %v6019_v50 = vld [vmem:[#allocation31_spill] sm:$0xff] }
  0xdd   :  { %5933 = vst [vmem:[#allocation41_spill] sm:$0xff] %v3467_v45  ;;  %5966 = vst [vmem:[#allocation57_spill] sm:$0xff] %v5965_v29  ;;  %vm619_vm6 = vcmp.ne.s32.totalorder %v3465_v14, 0 }
  0xde   :  { %vm443_vm8 = vmand %vm347_vm1, %vm427_vm4  ;;  %vm218_vm4 = vcmp.ge.s32.totalorder %v3285_v3, 0  ;;  %vm220_vm1 = vcmp.ge.s32.totalorder %v3387_v57, 0 }
  0xdf   :  { %vm539_vm10 = vmand %vm443_vm8, %vm523_vm5  ;;  %vm5991_vm8 = vcmp.ge.s32.totalorder %v3399_v39, 0  ;;  %v6000_v39 = vmov 0 }
  0xe0   :  { %v3469_v46 = vpop.permute.xlu1 %318  ;;  %v3471_v18 = vpop.permute.xlu0 %316  ;;  %vm3614_vm11 = vmand %vm539_vm10, %vm619_vm6  ;;  %vm236_vm6 = vcmp.lt.s32.totalorder %v3387_v57, 432 }
  0xe1   :  { %5934 = vst [vmem:[#allocation42_spill] sm:$0xff] %v3469_v46  ;;  %5935 = vst [vmem:[#allocation43_spill] sm:$0xff] %v3471_v18  ;;  %v645_v46 = vmul.u32 262144, %v3053_v5  ;;  %v644_v18 = vmul.u32 262144, %v3055_v9  ;;  %v5968_v51 = vsel %vm3614_vm11, 4294967295, %v5967_v51 }
  0xe2   :  { %v649_v9 = vmul.u32 262144, %v3077_v30  ;;  %5969 = vst [vmem:[#allocation58_spill] sm:$0xff] %v5968_v51  ;;  %vm3646_vm5 = vmand %vm213_vm13, %vm229_vm15  ;;  %vm325_vm13 = vcmp.ne.s32.totalorder %v5975_v22, 0  ;;  %v6016_v22 = vmov 0 }
  0xe3   :  { %vm3653_vm10 = vmand %vm216_vm9, %vm232_vm3 }
  0xe4   :  { %v3473_v52 = vpop.permute.xlu1 %322  ;;  %v3475_v4 = vpop.permute.xlu0 %320  ;;  %vm3662_vm15 = vmand %vm218_vm4, %vm234_vm7 }
  0xe5   :  { %5936 = vst [vmem:[#allocation44_spill] sm:$0xff] %v3473_v52  ;;  %5937 = vst [vmem:[#allocation45_spill] sm:$0xff] %v3475_v4  ;;  %v708_v4 = vadd.s32 %v3405_v42, %v644_v18  ;;  %v653_v18 = vmul.u32 262144, %v3195_v24 }
  0xe6   :  { %vm3670_vm3 = vmand %vm220_vm1, %vm236_vm6 }
  0xe7   :  { %vm3681_vm7 = vmand %vm3646_vm5, %vm325_vm13 }
  0xe8   :  { %v3477_v43 = vpop.permute.xlu1 %502  ;;  %v3479_v25 = vpop.permute.xlu0 %500 }
  0xe9   :  { %5938 = vst [vmem:[#allocation46_spill] sm:$0xff] %v3477_v43  ;;  %5939 = vst [vmem:[#allocation47_spill] sm:$0xff] %v3479_v25  ;;  %v709_v43 = vadd.s32 %v3403_v61, %v645_v46 }
  0xec   :  { %v3481_v59 = vpop.permute.xlu1 %506  ;;  %v3483_v56 = vpop.permute.xlu0 %504 }
  0xed   :  { %5940 = vst [vmem:[#allocation48_spill] sm:$0xff] %v3481_v59  ;;  %5941 = vst [vmem:[#allocation49_spill] sm:$0xff] %v3483_v56  ;;  %v647_v59 = vmul.u32 262144, %v3063_v19  ;;  %v646_v56 = vmul.u32 262144, %v3065_v20  ;;  %v713_v19 = vadd.s32 %v687_v2, %v649_v9  ;;  %v5980_v9 = vld [vmem:[#allocation12_spill] sm:$0xff] }
  0xef   :  { %v711_v23 = vadd.s32 %v683_v17, %v647_v59  ;;  %v710_v5 = vadd.s32 %v681_v11, %v646_v56  ;;  %v650_v56 = vmul.u32 262144, %v3089_v44  ;;  %v887_v17 = vsel %vm3614_vm11, 1, %v5922_v15 }
  0xf0   :  { %v3485_v48 = vpop.permute.xlu1 %694  ;;  %v3487_v40 = vpop.permute.xlu0 %692  ;;  %vm238_vm11 = vcmp.lt.s32.totalorder %v3401_v53, 432 }
  0xf1   :  { %5942 = vst [vmem:[#allocation50_spill] sm:$0xff] %v3485_v48  ;;  %5943 = vst [vmem:[#allocation51_spill] sm:$0xff] %v3487_v40  ;;  %v714_v21 = vadd.s32 %v3431_v36, %v650_v56 }
  0xf2   :  { %vm3675_vm4 = vmand %vm222_vm12, %vm238_vm11 }
  0xf3   :  { %vm3691_vm12 = vmand %vm5991_vm8, %vm239_vm0 }
  0xf4   :  { %v3491_v45 = vpop.permute.xlu1 %698  ;;  %v3493_v52 = vpop.permute.xlu0 %696 }
  0xf5   :  { %5944 = vst [vmem:[#allocation52_spill] sm:$0xff] %v3491_v45  ;;  %5945 = vst [vmem:[#allocation53_spill] sm:$0xff] %v3493_v52  ;;  %v648_v45 = vmul.u32 262144, %v3079_v31 }
  0xf7   :  { %v712_v20 = vadd.s32 %v685_v6, %v648_v45 }
  0xf8   :  { %v727_v25 = vpop.permute.xlu1 %726  ;;  %v725_v33 = vpop.permute.xlu0 %724  ;;  %v5978_v3 = vld [vmem:[#allocation50_spill] sm:$0xff]  ;;  %v5979_v63 = vld [vmem:[#allocation51_spill] sm:$0xff] }
  0xf9   :  { %v757_v48 = vadd.s32 %v727_v25, %v709_v43  ;;  %v756_v40 = vadd.s32 %v725_v33, %v708_v4  ;;  %v651_v33 = vmul.u32 262144, %v3087_v41  ;;  %v5970_v43 = vmov 2  }
  0xfa   :  { %v717_v57 = vadd.s32 %v5978_v3, %v653_v18  ;;  %v6011_v18 = vld [vmem:[#allocation18_spill] sm:$0xff]  ;;  %v6021_v3 = vmov 0 }
  0xfb   :  { %816 = vperm.xlu1 %2774, %v757_v48   ;;  %813 = vperm.xlu0 %2773, %v756_v40   ;;  %v715_v44 = vadd.s32 %v3429_v34, %v651_v33 }
  0xfc   :  { %v731_v52 = vpop.permute.xlu1 %730  ;;  %v729_v61 = vpop.permute.xlu0 %728 }
  0xfd   :  { %v759_v46 = vadd.s32 %v731_v52, %v711_v23  ;;  %v758_v42 = vadd.s32 %v729_v61, %v710_v5  ;;  %v652_v52 = vmul.u32 262144, %v3199_v26  ;;  %v655_v26 = vmul.u32 262144, %v3207_v32 }
  0xfe   :  { %v654_v61 = vmul.u32 262144, %v5980_v9  ;;  %v6029_v9 = vld [vmem:[#allocation37_spill] sm:$0xff] }
  0xff   :  { %822 = vperm.xlu0 %2773, %v759_v46   ;;  %819 = vperm.xlu1 %2774, %v758_v42   ;;  %v716_v5 = vadd.s32 %v5979_v63, %v652_v52  ;;  %v5981_v46 = vld [vmem:[#allocation14_spill] sm:$0xff]  ;;  %v6012_v52 = vld [vmem:[#allocation49_spill] sm:$0xff]  ;;  %v6024_v63 = vld [vmem:[#allocation32_spill] sm:$0xff] }
 0x100   :  { %v735_v30 = vpop.permute.xlu1 %734  ;;  %v733_v31 = vpop.permute.xlu0 %732  ;;  %vm328_vm9 = vcmp.ne.s32.totalorder %v5981_v46, 0  ;;  %v6032_v46 = vld [vmem:[#allocation20_spill] sm:$0xff] }
 0x101   :  { %v761_v23 = vadd.s32 %v735_v30, %v713_v19  ;;  %v760_v40 = vadd.s32 %v733_v31, %v712_v20  ;;  %v5984_v19 = vld [vmem:[#allocation15_spill] sm:$0xff]  ;;  %v5989_v31 = vld [vmem:[#allocation29_spill] sm:$0xff]  ;;  %vm3697_vm11 = vmand %vm3653_vm10, %vm328_vm9  ;;  %v656_v42 = vmul.u32 262144, %v6032_v46  ;;  %v6036_v20 = vmov 0 }
 0x102   :  { %vm237_vm5 = vcmp.lt.s32.totalorder %v5989_v31, 432  ;;  %vm5999_vm0 = vcmp.ne.s32.totalorder %v5984_v19, 0  ;;  %v6034_v19 = vld [vmem:[#allocation48_spill] sm:$0xff]  ;;  %v6043_v30 = vld [vmem:[#allocation21_spill] sm:$0xff]  ;;  %v6083_v46 = vmov 0 }
 0x103   :  { %828 = vperm.xlu0 %2773, %v761_v23   ;;  %825 = vperm.xlu1 %2774, %v760_v40   ;;  %v5990_v23 = vld [vmem:[#allocation22_spill] sm:$0xff]  ;;  %v5992_v40 = vmov 0  ;;  %vm3709_vm8 = vmand %vm3662_vm15, %vm5999_vm0  ;;  %vm6004_vm15 = vcmp.ge.s32.totalorder %v5989_v31, 0  ;;  %v35_v31 = vld [vmem:[%s5724_s1] sm:$0xf] }
 0x104   :  { %v739_v47 = vpop.permute.xlu1 %738  ;;  %v737_v27 = vpop.permute.xlu0 %736  ;;  %vm332_vm6 = vcmp.ne.s32.totalorder %v5990_v23, 0  ;;  %v5993_v40 = vsel %vm3691_vm12, 4294967295, %v5992_v40  ;;  %v6001_v39 = vsel %vm3709_vm8, 4294967295, %v6000_v39  ;;  %vm3722_vm0 = vmand %vm6004_vm15, %vm237_vm5  ;;  %v6049_v23 = vld [vmem:[#allocation27_spill] sm:$0xff] }
 0x105   :  { %v763_v6 = vadd.s32 %v739_v47, %v715_v44  ;;  %v762_v11 = vadd.s32 %v737_v27, %v714_v21  ;;  %v5996_v44 = vld [vmem:[#allocation36_spill] sm:$0xff]  ;;  %v5998_v47 = vld [vmem:[#allocation53_spill] sm:$0xff]  ;;  %vm348_vm9 = vmand %vm3670_vm3, %vm332_vm6 }
 0x106   :  { %v5997_v21 = vld [vmem:[#allocation52_spill] sm:$0xff]  ;;  %v718_v27 = vadd.s32 %v5998_v47, %v654_v61  ;;  %vm6008_vm2 = vcmp.ne.s32.totalorder %v5996_v44, 0  ;;  %v6030_v61 = vld [vmem:[#allocation33_spill] sm:$0xff]  ;;  %v6057_v44 = vld [vmem:[#allocation23_spill] sm:$0xff] }
 0x107   :  { %834 = vperm.xlu0 %2773, %v763_v6   ;;  %831 = vperm.xlu1 %2774, %v762_v11   ;;  %v719_v7 = vadd.s32 %v5997_v21, %v655_v26  ;;  %v6002_v6 = vld [vmem:[#allocation47_spill] sm:$0xff]  ;;  %vm444_vm12 = vmand %vm348_vm9, %vm6008_vm2  ;;  %vm6026_vm9 = vnez %v6001_v39  ;;  %v659_v21 = vmul.u32 262144, %v6057_v44  ;;  %v6058_v47 = vld [vmem:[#allocation28_spill] sm:$0xff] }
 0x108   :  { %v3548_v49 = vpop.permute.xlu1 %414  ;;  %v3550_v13 = vpop.permute.xlu0 %412  ;;  %vm524_vm10 = vcmp.ne.s32.totalorder %v6002_v6, 0 }
 0x109   :  { %vm540_vm8 = vmand %vm444_vm12, %vm524_vm10 }
 0x10a   :  { %vm6018_vm12 = vmmov %vm3675_vm4 }
 0x10b   :  { %2775 = vset.pattern.permute.xlu1 %v5922_v15 }
 0x10c   :  { %v3570_v16 = vpop.permute.xlu1 %418  ;;  %v3572_v25 = vpop.permute.xlu0 %416  ;;  %897 = vperm.xlu1 %2775, %v880_v38  }
 0x110   :  { %v3587_v45 = vpop.permute.xlu1 %598  ;;  %v3589_v48 = vpop.permute.xlu0 %596  ;;  %903 = vperm.xlu1 %2775, %v882_v12   ;;  %v6003_v12 = vld [vmem:[#allocation16_spill] sm:$0xff] }
 0x111   :  { %vm620_vm13 = vcmp.ne.s32.totalorder %v3589_v48, 0  ;;  %vm421_vm1 = vcmp.ne.s32.totalorder %v6003_v12, 0  ;;  %v6010_v48 = vld [vmem:[#allocation38_spill] sm:$0xff] }
 0x112   :  { %vm430_vm6 = vcmp.ne.s32.totalorder %v6010_v48, 0  ;;  %vm3733_vm5 = vmand %vm540_vm8, %vm620_vm13 }
 0x113   :  { %v6014_v8 = vsel %vm3733_vm5, 4294967295, %v6013_v8  ;;  %vm3743_vm2 = vmand %vm3681_vm7, %vm421_vm1  ;;  %vm241_vm1 = vcmp.lt.s32.totalorder %v6019_v50, 432 }
 0x114   :  { %v3604_v28 = vpop.permute.xlu1 %602  ;;  %v3606_v54 = vpop.permute.xlu0 %600  ;;  %906 = vperm.xlu1 %2775, %v883_v62   ;;  %6015 = vst [vmem:[#allocation13_spill] sm:$0xff] %v6014_v8  ;;  %v6017_v22 = vsel %vm3743_vm2, 4294967295, %v6016_v22  ;;  %vm6020_vm8 = vmmov %vm3697_vm11  ;;  %vm6046_vm2 = vcmp.ge.s32.totalorder %v6024_v63, 0 }
 0x118   :  { %v3618_v0 = vpop.permute.xlu1 %510  ;;  %v3620_v59 = vpop.permute.xlu0 %508  ;;  %912 = vperm.xlu1 %2775, %v885_v55   ;;  %v6007_v55 = vld [vmem:[#allocation26_spill] sm:$0xff] }
 0x119   :  { %vm334_vm14 = vcmp.ne.s32.totalorder %v6007_v55, 0  ;;  %v6069_v55 = vld [vmem:[#allocation35_spill] sm:$0xff] }
 0x11a   :  { %vm350_vm10 = vmand %vm6018_vm12, %vm334_vm14  ;;  %vm6025_vm12 = vcmp.ne.s32.totalorder %v6011_v18, 0  ;;  %vm527_vm14 = vcmp.ne.s32.totalorder %v6034_v19, 0  ;;  %v6091_v19 = vld [vmem:[#allocation45_spill] sm:$0xff] }
 0x11b   :  { %vm446_vm7 = vmand %vm350_vm10, %vm430_vm6  ;;  %vm6031_vm6 = vcmp.ne.s32.totalorder %v6012_v52, 0 }
 0x11c   :  { %v3625_v34 = vpop.permute.xlu1 %514  ;;  %v3627_v36 = vpop.permute.xlu0 %512  ;;  %918 = vperm.xlu1 %2775, %v887_v17   ;;  %v6009_v17 = vld [vmem:[#allocation17_spill] sm:$0xff]  ;;  %vm3767_vm13 = vmand %vm6026_vm9, %vm6025_vm12  ;;  %vm6040_vm12 = vcmp.ge.s32.totalorder %v6019_v50, 0  ;;  %v6078_v50 = vld [vmem:[#allocation24_spill] sm:$0xff] }
 0x11d   :  { %vm424_vm3 = vcmp.ne.s32.totalorder %v6009_v17, 0  ;;  %vm542_vm10 = vmand %vm446_vm7, %vm6031_vm6  ;;  %vm6039_vm7 = vnez %v5993_v40  ;;  %v6073_v17 = vld [vmem:[#allocation39_spill] sm:$0xff]  ;;  %v2500_v40 = vadd.f32 39.68, %v35_v31 }
 0x11e   :  { %vm3753_vm15 = vmand %vm6020_vm8, %vm424_vm3  ;;  %vm6035_vm8 = vcmp.ne.s32.totalorder %v3606_v54, 0  ;;  %v6041_v54 = vmov 0 }
 0x11f   :  { %v6022_v3 = vsel %vm3753_vm15, 4294967295, %v6021_v3  ;;  %vm3786_vm3 = vmand %vm542_vm10, %vm6035_vm8  ;;  %vm623_vm8 = vcmp.ne.s32.totalorder %v3604_v28, 0  ;;  %vm333_vm10 = vcmp.ne.s32.totalorder %v6043_v30, 0  ;;  %vm6045_vm15 = vcmp.lt.s32.totalorder %v6024_v63, 432  ;;  %v6081_v63 = vld [vmem:[#allocation41_spill] sm:$0xff] }
 0x120   :  { %v3629_v14 = vpop.permute.xlu1 %702  ;;  %v3631_v58 = vpop.permute.xlu0 %700  ;;  %2776 = vset.pattern.permute.xlu1 %v5970_v43  ;;  %v6037_v20 = vsel %vm3786_vm3, 4294967295, %v6036_v20  ;;  %vm3802_vm9 = vmand %vm6040_vm12, %vm241_vm1  ;;  %vm517_vm1 = vcmp.ne.s32.totalorder %v6049_v23, 0  ;;  %vm6050_vm12 = vcmp.lt.s32.totalorder %v6030_v61, 432  ;;  %v6092_v30 = vmov 0 }
 0x121   :  { %6038 = vst [vmem:[#allocation50_spill] sm:$0xff] %v6037_v20  ;;  %v6042_v54 = vsel %vm3802_vm9, 4294967295, %v6041_v54  ;;  %v720_v41 = vadd.s32 %v3631_v58, %v656_v42  ;;  %v6086_v42 = vld [vmem:[#allocation43_spill] sm:$0xff] }
 0x124   :  { %v3642_v4 = vpop.permute.xlu1 %706  ;;  %v3644_v10 = vpop.permute.xlu0 %704 }
 0x125   :  { %v723_v48 = vadd.s32 %v3642_v4, %v659_v21 }
 0x128   :  { %v743_v53 = vpop.permute.xlu1 %742  ;;  %v741_v32 = vpop.permute.xlu0 %740 }
 0x129   :  { %v765_v33 = vadd.s32 %v743_v53, %v717_v57  ;;  %v764_v56 = vadd.s32 %v741_v32, %v716_v5  ;;  %v6023_v57 = vld [vmem:[#allocation25_spill] sm:$0xff]  ;;  %v6027_v5 = vmov 0  ;;  %v888_v53 = vsel %vm3733_vm5, 1, %v5922_v15  ;;  %v6033_v32 = vld [vmem:[#allocation34_spill] sm:$0xff] }
 0x12a   :  { %vm335_vm4 = vcmp.ne.s32.totalorder %v6023_v57, 0  ;;  %v6028_v5 = vsel %vm3767_vm13, 4294967295, %v6027_v5  ;;  %vm242_vm11 = vcmp.lt.s32.totalorder %v6033_v32, 432  ;;  %vm6044_vm5 = vcmp.ne.s32.totalorder %v6029_v9, 0  ;;  %v6082_v9 = vld [vmem:[#allocation42_spill] sm:$0xff] }
 0x12b   :  { %837 = vperm.xlu0 %2773, %v764_v56   ;;  %840 = vperm.xlu1 %2776, %v765_v33   ;;  %vm351_vm6 = vmand %vm6039_vm7, %vm335_vm4  ;;  %vm6051_vm7 = vcmp.ge.s32.totalorder %v6030_v61, 0 }
 0x12c   :  { %v747_v11 = vpop.permute.xlu1 %746  ;;  %v745_v2 = vpop.permute.xlu0 %744  ;;  %vm447_vm13 = vmand %vm351_vm6, %vm6044_vm5  ;;  %vm6054_vm5 = vcmp.ge.s32.totalorder %v6033_v32, 0  ;;  %v6090_v32 = vld [vmem:[#allocation44_spill] sm:$0xff] }
 0x12d   :  { %v767_v1 = vadd.s32 %v747_v11, %v719_v7  ;;  %v766_v38 = vadd.s32 %v745_v2, %v718_v27  ;;  %vm3814_vm4 = vmand %vm6046_vm2, %vm6045_vm15  ;;  %v890_v7 = vsel %vm3786_vm3, 1, %v5922_v15  ;;  %vm520_vm15 = vcmp.ne.s32.totalorder %v6058_v47, 0  ;;  %v6064_v11 = vld [vmem:[#allocation30_spill] sm:$0xff]  ;;  %v6065_v2 = vld [vmem:[#allocation19_spill] sm:$0xff] }
 0x12e   :  { %vm3823_vm9 = vmand %vm6051_vm7, %vm6050_vm12  ;;  %v6059_v27 = vmov 0  ;;  %vm429_vm7 = vcmp.ne.s32.totalorder %v6069_v55, 0  ;;  %vm337_vm3 = vcmp.ne.s32.totalorder %v6082_v9, 0  ;;  %v776_v47 = vmul.f32 6.25, %v2500_v40 }
 0x12f   :  { %846 = vperm.xlu0 %2773, %v767_v1   ;;  %843 = vperm.xlu1 %2776, %v766_v38   ;;  %vm3829_vm6 = vmand %vm6054_vm5, %vm242_vm11  ;;  %v657_v1 = vmul.u32 262144, %v6065_v2  ;;  %vm613_vm5 = vcmp.ne.s32.totalorder %v6073_v17, 0 }
 0x130   :  { %v3737_v24 = vpop.permute.xlu1 %606  ;;  %v3739_v26 = vpop.permute.xlu0 %604  ;;  %vm543_vm2 = vmand %vm447_vm13, %vm527_vm14  ;;  %vm522_vm13 = vcmp.ne.s32.totalorder %v6064_v11, 0  ;;  %vm6066_vm14 = vnez %v6017_v22  ;;  %v6077_v22 = vld [vmem:[#allocation40_spill] sm:$0xff]  ;;  %v772_v11 = vmul.f32 6.25, %v35_v31 }
 0x131   :  { %vm3839_vm12 = vmand %vm543_vm2, %vm623_vm8 }
 0x132   :  { %v6060_v27 = vsel %vm3839_vm12, 4294967295, %v6059_v27  ;;  %vm3847_vm11 = vmand %vm3722_vm0, %vm333_vm10  ;;  %vm6070_vm0 = vnez %v6022_v3  ;;  %v891_v18 = vsel %vm3839_vm12, 1, %v5922_v15  ;;  %v658_v3 = vmul.u32 262144, %v6078_v50 }
 0x133   :  { %2777 = vset.pattern.permute.xlu1 %v5922_v15  ;;  %6061 = vst [vmem:[#allocation51_spill] sm:$0xff] %v6060_v27  ;;  %vm3857_vm8 = vmand %vm6066_vm14, %vm517_vm1  ;;  %vm6074_vm1 = vnez %v6028_v5  ;;  %v721_v5 = vadd.s32 %v3629_v14, %v657_v1  ;;  %vm338_vm12 = vcmp.ne.s32.totalorder %v6091_v19, 0 }
 0x134   :  { %v3790_v33 = vpop.permute.xlu1 %610  ;;  %v3792_v56 = vpop.permute.xlu0 %608  ;;  %921 = vperm.xlu1 %2777, %v888_v53   ;;  %vm3864_vm10 = vmand %vm6070_vm0, %vm520_vm15  ;;  %vm616_vm15 = vcmp.ne.s32.totalorder %v6077_v22, 0  ;;  %vm618_vm0 = vcmp.ne.s32.totalorder %v6081_v63, 0  ;;  %v6087_v53 = vmov 0  ;;  %v722_v21 = vadd.s32 %v3644_v10, %v658_v3 }
 0x135   :  { %vm3875_vm2 = vmand %vm6074_vm1, %vm522_vm13  ;;  %vm336_vm1 = vcmp.ne.s32.totalorder %v6086_v42, 0 }
 0x136   :  { %vm3883_vm14 = vmand %vm3847_vm11, %vm429_vm7  ;;  %vm339_vm7 = vcmp.ne.s32.totalorder %v6090_v32, 0  ;;  %v860_v32 = vlaneseq }
 0x137   :  { %vm3892_vm13 = vmand %vm3857_vm8, %vm613_vm5  ;;  %vm6095_vm5 = vnez %v6042_v54 }
 0x138   :  { %v751_v39 = vpop.permute.xlu1 %750  ;;  %v749_v6 = vpop.permute.xlu0 %748  ;;  %927 = vperm.xlu1 %2777, %v890_v7   ;;  %v6084_v46 = vsel %vm3892_vm13, 4294967295, %v6083_v46  ;;  %vm3899_vm11 = vmand %vm3864_vm10, %vm616_vm15 }
 0x139   :  { %v768_v38 = vadd.s32 %v749_v6, %v720_v41  ;;  %6085 = vst [vmem:[#allocation12_spill] sm:$0xff] %v6084_v46  ;;  %v6088_v53 = vsel %vm3899_vm11, 4294967295, %v6087_v53  ;;  %v769_v14 = vadd.s32 %v751_v39, %v721_v5  ;;  %vm3907_vm8 = vmand %vm3875_vm2, %vm618_vm0  ;;  %v6098_v41 = vld [vmem:[#allocation46_spill] sm:$0xff]  ;;  %vm432_vm11 = vcmp.ne.s32.totalorder %v3550_v13, 0 }
 0x13a   :  { %6089 = vst [vmem:[#allocation14_spill] sm:$0xff] %v6088_v53  ;;  %v6093_v30 = vsel %vm3907_vm8, 4294967295, %v6092_v30  ;;  %vm3913_vm13 = vmand %vm6095_vm5, %vm337_vm3  ;;  %vm525_vm10 = vcmp.ne.s32.totalorder %v6098_v41, 0  ;;  %vm528_vm0 = vcmp.ne.s32.totalorder %v3620_v59, 0  ;;  %v6103_v13 = vmov 0 }
 0x13b   :  { %849 = vperm.xlu0 %2773, %v768_v38   ;;  %6094 = vst [vmem:[#allocation15_spill] sm:$0xff] %v6093_v30  ;;  %vm352_vm15 = vmand %vm3814_vm4, %vm336_vm1  ;;  %vm624_vm1 = vcmp.ne.s32.totalorder %v3739_v26, 0  ;;  %v6106_v59 = vmov 0  ;;  %v2501_v39 = vadd.f32 3.0, %v35_v31  ;;  %v777_v6 = vfloor.f32 %v776_v47 }
 0x13c   :  { %v755_v57 = vpop.permute.xlu1 %754  ;;  %930 = vperm.xlu1 %2777, %v891_v18   ;;  %v753_v44 = vpop.permute.xlu0 %752  ;;  %vm3925_vm2 = vmand %vm3823_vm9, %vm339_vm7  ;;  %vm6105_vm9 = vnez %v6084_v46  ;;  %vm434_vm7 = vcmp.ne.s32.totalorder %v3572_v25, 0  ;;  %v773_v38 = vfloor.f32 %v772_v11  ;;  %v4024_v41 = vshrl.u32 %v860_v32, 7 }
 0x13d   :  { %v771_v61 = vadd.s32 %v755_v57, %v723_v48  ;;  %vm3931_vm3 = vmand %vm3829_vm6, %vm338_vm12  ;;  %v881_v10 = vsel %vm6105_vm9, 1, %v5922_v15  ;;  %vm433_vm6 = vcmp.ne.s32.totalorder %v3548_v49, 0  ;;  %vm626_vm9 = vcmp.ne.s32.totalorder %v3792_v56, 0 }
 0x13e   :  { %vm3938_vm4 = vmand %vm3883_vm14, %vm525_vm10  ;;  %vm530_vm14 = vcmp.ne.s32.totalorder %v3627_v36, 0  ;;  %v6112_v36 = vmov 0  ;;  %v6121_v56 = vmov 0  ;;  %v780_v58 = vmul.f32 0.25, %v2501_v39 }
 0x13f   :  { %858 = vperm.xlu0 %2773, %v771_v61   ;;  %v6104_v13 = vsel %vm3938_vm4, 4294967295, %v6103_v13  ;;  %vm448_vm12 = vmand %vm352_vm15, %vm432_vm11  ;;  %vm6111_vm11 = vnez %v6088_v53  ;;  %vm435_vm15 = vcmp.ne.s32.totalorder %v3570_v16, 0  ;;  %v886_v16 = vsel %vm3907_vm8, 1, %v5922_v15 }
 0x140   :  { %2778 = vset.pattern.permute.xlu1 %v5970_v43  ;;  %v770_v43 = vadd.s32 %v753_v44, %v722_v21  ;;  %vm544_vm5 = vmand %vm448_vm12, %vm528_vm0  ;;  %v884_v49 = vsel %vm6111_vm11, 1, %v5922_v15  ;;  %v2754_v2 = vtrunc.f32 %v777_v6  ;;  %v781_v1 = vfloor.f32 %v780_v58 }
 0x141   :  { %852 = vperm.xlu1 %2778, %v769_v14   ;;  %vm3950_vm10 = vmand %vm544_vm5, %vm624_vm1  ;;  %vm621_vm1 = vcmp.ne.s32.totalorder %v3587_v45, 0  ;;  %vm6115_vm5 = vnez %v6104_v13  ;;  %v6116_v45 = vmov 0  ;;  %v2752_v62 = vtrunc.f32 %v773_v38 }
 0x142   :  { %v6107_v59 = vsel %vm3950_vm10, 4294967295, %v6106_v59  ;;  %vm3956_vm4 = vmand %vm3913_vm13, %vm433_vm6  ;;  %v892_v25 = vsel %vm3950_vm10, 1, %v5922_v15  ;;  %vm531_vm13 = vcmp.ne.s32.totalorder %v3625_v34, 0  ;;  %v2755_v12 = vcvt.f32.s32 %v2754_v2 }
 0x143   :  { %2779 = vset.pattern.permute.xlu0 %v5922_v15  ;;  %6108 = vst [vmem:[#allocation29_spill] sm:$0xff] %v6107_v59  ;;  %vm450_vm0 = vmand %vm3931_vm3, %vm434_vm7  ;;  %vm627_vm7 = vcmp.ne.s32.totalorder %v3790_v33, 0  ;;  %v6119_v33 = vmov 0  ;;  %v2756_v55 = vtrunc.f32 %v781_v1  ;;  %v2753_v18 = vcvt.f32.s32 %v2752_v62 }
 0x144   :  { %900 = vperm.xlu0 %2779, %v881_v10   ;;  %vm546_vm12 = vmand %vm450_vm0, %vm530_vm14  ;;  %v807_v63 = vmul.u32 512, %v2755_v12  ;;  %v6126_v44 = vmov 0  ;;  %v4033_v54 = vsub.s32 0, %v4024_v41  ;;  %v5784_v13 = vsub.s32 2, %v4024_v41 }
 0x145   :  { %855 = vperm.xlu1 %2778, %v770_v43   ;;  %vm3973_vm6 = vmand %vm546_vm12, %vm626_vm9  ;;  %vm529_vm9 = vcmp.ne.s32.totalorder %v3618_v0, 0  ;;  %vm625_vm12 = vcmp.ne.s32.totalorder %v3737_v24, 0  ;;  %v2757_v48 = vcvt.f32.s32 %v2756_v55  ;;  %v810_v23 = vrot.slane %v2753_v18, 6 }
 0x146   :  { %v6113_v36 = vsel %vm3973_vm6, 4294967295, %v6112_v36  ;;  %vm451_vm3 = vmand %vm3925_vm2, %vm435_vm15  ;;  %v894_v34 = vsel %vm3973_vm6, 1, %v5922_v15  ;;  %v808_v42 = vrot.slane %v807_v63, 7  ;;  %6130 = vst [vmem:[#allocation17_spill] sm:$0xff] %v4033_v54  ;;  %v4059_v31 = vadd.s32 16, %v4024_v41 }
 0x147   :  { %6114 = vst [vmem:[#allocation22_spill] sm:$0xff] %v6113_v36  ;;  %vm3985_vm14 = vmand %vm6115_vm5, %vm621_vm1  ;;  %vm784_vm5 = vcmp.lt.s32.totalorder %v2753_v18, 432  ;;  %v806_v61 = vmul.u32 262144, %v2757_v48  ;;  %v4074_v47 = vadd.s32 24, %v4024_v41  ;;  %v6139_v6 = vmov 0 }
 0x148   :  { %909 = vperm.xlu0 %2779, %v884_v49   ;;  %v6117_v45 = vsel %vm3985_vm14, 4294967295, %v6116_v45  ;;  %vm547_vm0 = vmand %vm451_vm3, %vm531_vm13  ;;  %v889_v0 = vsel %vm3985_vm14, 1, %v5922_v15  ;;  %vm791_vm13 = vcmp.lt.s32.totalorder %v2755_v12, 496  ;;  %vm796_vm3 = vcmp.ge.s32.totalorder %v2757_v48, 0 }
 0x149   :  { %2780 = vset.pattern.permute.xlu1 %v5922_v15  ;;  %6118 = vst [vmem:[#allocation36_spill] sm:$0xff] %v6117_v45  ;;  %vm3994_vm2 = vmand %vm547_vm0, %vm627_vm7  ;;  %v792_v22 = vsel %vm791_vm13, 1, %v5922_v15  ;;  %vm783_vm7 = vcmp.ge.s32.totalorder %v2753_v18, 0  ;;  %v797_v3 = vsel %vm796_vm3, 1, %v5922_v15  ;;  %v809_v14 = vadd.s32 %v808_v42, %v806_v61 }
 0x14a   :  { %933 = vperm.xlu1 %2780, %v892_v25   ;;  %v6120_v33 = vsel %vm3994_vm2, 4294967295, %v6119_v33  ;;  %vm545_vm15 = vmand %vm3956_vm4, %vm529_vm9  ;;  %v895_v24 = vsel %vm3994_vm2, 1, %v5922_v15  ;;  %vm786_vm4 = vcmp.ge.s32.totalorder %v2755_v12, 0  ;;  %v793_v50 = vrot.slane %v792_v22, 1 }
 0x14b   :  { %vm4003_vm1 = vmand %vm545_vm15, %vm625_vm12  ;;  %v787_v17 = vsel %vm786_vm4, 1, %v5922_v15  ;;  %vm801_vm9 = vcmp.lt.s32.totalorder %v2757_v48, 1  ;;  %v798_v57 = vrot.slane %v797_v3, 2  ;;  %v811_v7 = vadd.s32 %v810_v23, %v809_v14 }
 0x14c   :  { %915 = vperm.xlu0 %2779, %v886_v16   ;;  %v6122_v56 = vsel %vm4003_vm1, 4294967295, %v6121_v56  ;;  %v893_v28 = vsel %vm4003_vm1, 1, %v5922_v15  ;;  %v788_v52 = vrot.slane %v787_v17, 1  ;;  %vm785_vm0 = vmand %vm783_vm7, %vm784_vm5  ;;  %v802_v4 = vsel %vm801_vm9, 1, %v5922_v15 }
 0x14d   :  { %6123 = vst [vmem:[#allocation52_spill] sm:$0xff] %v6122_v56  ;;  %vm794_vm4 = vcmp.ne.s32.totalorder %v793_v50, 0  ;;  %v803_v5 = vrot.slane %v802_v4, 2  ;;  %vm799_vm13 = vcmp.ne.s32.totalorder %v798_v57, 0  ;;  %v4046_v25 = vrot.slane %v811_v7, %v5784_v13 }
 0x14e   :  { %939 = vperm.xlu1 %2780, %v894_v34   ;;  %vm789_vm12 = vcmp.ne.s32.totalorder %v788_v52, 0  ;;  %v4048_v16 = vand.u32 127, %v860_v32  ;;  %v4095_v38 = vadd.s32 40, %v4024_v41  ;;  %v6142_v55 = vmov 0 }
 0x14f   :  { %vm790_vm15 = vmand %vm785_vm0, %vm789_vm12  ;;  %vm804_vm10 = vcmp.ne.s32.totalorder %v803_v5, 0  ;;  %v4116_v52 = vadd.s32 56, %v4024_v41  ;;  %v6145_v50 = vmov 0  ;;  %v6147_v5 = vmov 0 }
 0x150   :  { %924 = vperm.xlu0 %2779, %v889_v0   ;;  %vm795_vm6 = vmand %vm790_vm15, %vm794_vm4  ;;  %6133 = vst [vmem:[#allocation49_spill] sm:$0xff] %v4048_v16  ;;  %vm1086_vm0 = vcmp.lt.s32.totalorder %v4048_v16, %v4024_v41 }
 0x151   :  { %vm800_vm3 = vmand %vm795_vm6, %vm799_vm13 }
 0x152   :  { %942 = vperm.xlu1 %2780, %v895_v24   ;;  %vm4026_vm7 = vmand %vm800_vm3, %vm804_vm10 }
 0x153   :  { %v6127_v44 = vsel %vm4026_vm7, 4294967295, %v6126_v44  ;;  %v976_v43 = vsel %vm4026_vm7, 1, %v5922_v15 }
 0x154   :  { %936 = vperm.xlu0 %2779, %v893_v28   ;;  %6128 = vst [vmem:[#allocation16_spill] sm:$0xff] %v6127_v44  ;;  %v980_v49 = vrot.slane %v976_v43, %v4033_v54  ;;  %v6137_v28 = vmov 0  ;;  %v4260_v54 = vadd.s32 64, %v4024_v41 }
 0x156   :  { %vm4050_vm10 = vcmp.eq.s32.totalorder %v980_v49, 1 }
 0x176   :  { %v4020_v9 = vpop.permute.xlu1 %816  ;;  %v4041_v26 = vpop.permute.xlu0 %813 }
 0x177   :  { %6124 = vst [vmem:[#allocation53_spill] sm:$0xff] %v4020_v9  ;;  %6132 = vst [vmem:[#allocation18_spill] sm:$0xff] %v4041_v26  ;;  %vm864_vm6 = vcmp.eq.s32.totalorder %v4041_v26, %v4046_v25 }
 0x17a   :  { %v4022_v19 = vpop.permute.xlu1 %819  ;;  %v4056_v24 = vpop.permute.xlu0 %822 }
 0x17b   :  { %6125 = vst [vmem:[#allocation47_spill] sm:$0xff] %v4022_v19  ;;  %6136 = vst [vmem:[#allocation31_spill] sm:$0xff] %v4056_v24  ;;  %vm866_vm15 = vcmp.eq.s32.totalorder %v4022_v19, %v4046_v25 }
 0x17e   :  { %v4030_v21 = vpop.permute.xlu1 %825  ;;  %v4088_v11 = vpop.permute.xlu0 %828 }
 0x17f   :  { %6129 = vst [vmem:[#allocation26_spill] sm:$0xff] %v4030_v21  ;;  %6141 = vst [vmem:[#allocation25_spill] sm:$0xff] %v4088_v11 }
 0x182   :  { %v4039_v10 = vpop.permute.xlu1 %831  ;;  %v4113_v18 = vpop.permute.xlu0 %834 }
 0x183   :  { %6131 = vst [vmem:[#allocation38_spill] sm:$0xff] %v4039_v10  ;;  %6144 = vst [vmem:[#allocation32_spill] sm:$0xff] %v4113_v18 }
 0x187   :  { %v898_v0 = vpop.permute.xlu1 %897 }
 0x188   :  { %vm944_vm5 = vcmp.eq.s32.totalorder %v898_v0, 1 }
 0x189   :  { %vm960_vm9 = vmand %vm864_vm6, %vm944_vm5  ;;  %vm1088_vm6 = vcmp.lt.s32.totalorder %v4048_v16, %v4059_v31 }
 0x18a   :  { %vm4065_vm12 = vmand %vm960_vm9, %vm4050_vm10  ;;  %vm867_vm9 = vcmp.eq.s32.totalorder %v4056_v24, %v4046_v25  ;;  %v4182_v24 = vadd.s32 32, %v4024_v41 }
 0x18b   :  { %v6138_v28 = vsel %vm4065_vm12, 4294967295, %v6137_v28  ;;  %v904_v40 = vpop.permute.xlu1 %903  ;;  %vm1102_vm13 = vmand %vm4065_vm12, %vm1086_vm0 }
 0x18c   :  { %vm946_vm4 = vcmp.eq.s32.totalorder %v904_v40, 1  ;;  %v4077_v39 = vsel %vm1102_vm13, 1, %v5922_v15  ;;  %vm1089_vm13 = vcmp.lt.s32.totalorder %v4048_v16, %v4074_v47 }
 0x18d   :  { %vm962_vm3 = vmand %vm866_vm15, %vm946_vm4  ;;  %v1135_v58 = vshrl.u32 %v4077_v39, 16 }
 0x18e   :  { %vm4083_vm5 = vmand %vm962_vm3, %vm4050_vm10 }
 0x18f   :  { %v6140_v6 = vsel %vm4083_vm5, 4294967295, %v6139_v6  ;;  %v907_v2 = vpop.permute.xlu1 %906  ;;  %v1137_v1 = vcvt.s32.f32 %v1135_v58  ;;  %vm1104_vm15 = vmand %vm4083_vm5, %vm1088_vm6  ;;  %vm869_vm6 = vcmp.eq.s32.totalorder %v4088_v11, %v4046_v25 }
 0x190   :  { %vm947_vm0 = vcmp.eq.s32.totalorder %v907_v2, 1  ;;  %v4098_v12 = vsel %vm1104_vm15, 1, %v5922_v15 }
 0x191   :  { %vm963_vm4 = vmand %vm867_vm9, %vm947_vm0  ;;  %1140 = vadd.xlane.f32.xlu0 %v1137_v1  ;;  %v1159_v62 = vshrl.u32 %v4098_v12, 16 }
 0x192   :  { %vm4104_vm3 = vmand %vm963_vm4, %vm4050_vm10  ;;  %vm1091_vm4 = vcmp.lt.s32.totalorder %v4048_v16, %v4095_v38 }
 0x193   :  { %v6143_v55 = vsel %vm4104_vm3, 4294967295, %v6142_v55  ;;  %v913_v17 = vpop.permute.xlu1 %912  ;;  %v1161_v48 = vcvt.s32.f32 %v1159_v62  ;;  %vm1105_vm0 = vmand %vm4104_vm3, %vm1089_vm13  ;;  %vm871_vm13 = vcmp.eq.s32.totalorder %v4113_v18, %v4046_v25  ;;  %v4160_v62 = vadd.s32 8, %v4024_v41 }
 0x194   :  { %vm949_vm9 = vcmp.eq.s32.totalorder %v913_v17, 1  ;;  %v1121_v22 = vsel %vm1105_vm0, 1, %v5922_v15 }
 0x195   :  { %vm965_vm15 = vmand %vm869_vm6, %vm949_vm9  ;;  %1164 = vadd.xlane.f32.xlu0 %v1161_v48  ;;  %v1171_v3 = vshrl.u32 %v1121_v22, 16  ;;  %v1170_v13 = vand.u32 65535, %v1121_v22  ;;  %v6159_v22 = vmov 0 }
 0x196   :  { %vm4123_vm7 = vmand %vm965_vm15, %vm4050_vm10  ;;  %vm1093_vm15 = vcmp.lt.s32.totalorder %v4048_v16, %v4116_v52 }
 0x197   :  { %v6146_v50 = vsel %vm4123_vm7, 4294967295, %v6145_v50  ;;  %v919_v57 = vpop.permute.xlu1 %918  ;;  %v1173_v4 = vcvt.s32.f32 %v1171_v3  ;;  %vm1107_vm9 = vmand %vm4123_vm7, %vm1091_vm4  ;;  %v6155_v3 = vmov 0  ;;  %v1172_v26 = vcvt.s32.f32 %v1170_v13 }
 0x198   :  { %vm951_vm6 = vcmp.eq.s32.totalorder %v919_v57, 1  ;;  %v1123_v63 = vsel %vm1107_vm9, 1, %v5922_v15 }
 0x199   :  { %vm967_vm0 = vmand %vm871_vm13, %vm951_vm6  ;;  %1176 = vadd.xlane.f32.xlu0 %v1173_v4  ;;  %v1195_v61 = vshrl.u32 %v1123_v63, 16  ;;  %vm1087_vm6 = vcmp.lt.s32.totalorder %v4048_v16, %v4160_v62  ;;  %v1194_v18 = vand.u32 65535, %v1123_v63  ;;  %v4202_v63 = vadd.s32 48, %v4024_v41 }
 0x19a   :  { %vm4136_vm3 = vmand %vm967_vm0, %vm4050_vm10 }
 0x19b   :  { %v6148_v5 = vsel %vm4136_vm3, 4294967295, %v6147_v5  ;;  %v1197_v42 = vcvt.s32.f32 %v1195_v61  ;;  %vm1109_vm5 = vmand %vm4136_vm3, %vm1093_vm15 }
 0x19c   :  { %v1125_v32 = vsel %vm1109_vm5, 1, %v5922_v15  ;;  %vm865_vm5 = vcmp.eq.s32.totalorder %v4020_v9, %v4046_v25 }
 0x19d   :  { %1200 = vadd.xlane.f32.xlu0 %v1197_v42  ;;  %v1219_v14 = vshrl.u32 %v1125_v32, 16 }
 0x19f   :  { %v1221_v23 = vcvt.s32.f32 %v1219_v14 }
 0x1a1   :  { %1224 = vadd.xlane.f32.xlu0 %v1221_v23 }
 0x1a6   :  { %v4143_v7 = vpop.permute.xlu1 %840  ;;  %v4145_v43 = vpop.permute.xlu0 %837 }
 0x1a7   :  { %6149 = vst [vmem:[#allocation37_spill] sm:$0xff] %v4143_v7  ;;  %6150 = vst [vmem:[#allocation33_spill] sm:$0xff] %v4145_v43  ;;  %vm873_vm12 = vcmp.eq.s32.totalorder %v4143_v7, %v4046_v25  ;;  %vm872_vm1 = vcmp.eq.s32.totalorder %v4145_v43, %v4046_v25  ;;  %v6167_v43 = vmov 0 }
 0x1aa   :  { %v4147_v49 = vpop.permute.xlu1 %843  ;;  %v4149_v0 = vpop.permute.xlu0 %846 }
 0x1ab   :  { %6151 = vst [vmem:[#allocation20_spill] sm:$0xff] %v4147_v49  ;;  %6152 = vst [vmem:[#allocation34_spill] sm:$0xff] %v4149_v0  ;;  %vm875_vm3 = vcmp.eq.s32.totalorder %v4149_v0, %v4046_v25 }
 0x1af   :  { %v4151_v40 = vpop.permute.xlu1 %921 }
 0x1b3   :  { %v4155_v2 = vpop.permute.xlu1 %927 }
 0x1b6   :  { %v4153_v58 = vpop.permute.xlu0 %849 }
 0x1b7   :  { %6153 = vst [vmem:[#allocation48_spill] sm:$0xff] %v4153_v58  ;;  %v931_v48 = vpop.permute.xlu1 %930 }
 0x1ba   :  { %v4157_v1 = vpop.permute.xlu0 %858 }
 0x1bb   :  { %6154 = vst [vmem:[#allocation21_spill] sm:$0xff] %v4157_v1 }
 0x1bc   :  { %v4175_v61 = vpop.permute.xlu1 %852 }
 0x1bd   :  { %6157 = vst [vmem:[#allocation27_spill] sm:$0xff] %v4175_v61 }
 0x1bf   :  { %v901_v17 = vpop.permute.xlu0 %900 }
 0x1c0   :  { %vm945_vm4 = vcmp.eq.s32.totalorder %v901_v17, 1  ;;  %v4177_v11 = vpop.permute.xlu1 %855 }
 0x1c1   :  { %vm961_vm13 = vmand %vm865_vm5, %vm945_vm4  ;;  %6158 = vst [vmem:[#allocation23_spill] sm:$0xff] %v4177_v11  ;;  %vm868_vm5 = vcmp.eq.s32.totalorder %v4030_v21, %v4046_v25 }
 0x1c2   :  { %vm4168_vm9 = vmand %vm961_vm13, %vm4050_vm10  ;;  %vm955_vm13 = vcmp.eq.s32.totalorder %v931_v48, 1 }
 0x1c3   :  { %v6156_v3 = vsel %vm4168_vm9, 4294967295, %v6155_v3  ;;  %v910_v57 = vpop.permute.xlu0 %909  ;;  %vm1103_vm0 = vmand %vm4168_vm9, %vm1087_vm6 }
 0x1c4   :  { %v1119_v4 = vsel %vm1103_vm0, 1, %v5922_v15  ;;  %vm948_vm15 = vcmp.eq.s32.totalorder %v910_v57, 1  ;;  %vm1090_vm0 = vcmp.lt.s32.totalorder %v4048_v16, %v4182_v24  ;;  %v1196_v57 = vcvt.s32.f32 %v1194_v18 }
 0x1c5   :  { %v1147_v42 = vshrl.u32 %v1119_v4, 16  ;;  %v1146_v14 = vand.u32 65535, %v1119_v4  ;;  %vm964_vm4 = vmand %vm868_vm5, %vm948_vm15  ;;  %v4194_v13 = vpop.permute.xlu1 %933 }
 0x1c6   :  { %vm4186_vm6 = vmand %vm964_vm4, %vm4050_vm10  ;;  %vm870_vm4 = vcmp.eq.s32.totalorder %v4039_v10, %v4046_v25 }
 0x1c7   :  { %v1149_v23 = vcvt.s32.f32 %v1147_v42  ;;  %v1148_v17 = vcvt.s32.f32 %v1146_v14  ;;  %v916_v9 = vpop.permute.xlu0 %915  ;;  %v6160_v22 = vsel %vm4186_vm6, 4294967295, %v6159_v22  ;;  %v1218_v42 = vand.u32 65535, %v1125_v32  ;;  %vm971_vm5 = vmand %vm875_vm3, %vm955_vm13 }
 0x1c8   :  { %vm950_vm15 = vcmp.eq.s32.totalorder %v916_v9, 1  ;;  %vm1106_vm9 = vmand %vm4186_vm6, %vm1090_vm0  ;;  %v4209_v9 = vadd.s32 72, %v4024_v41  ;;  %v6161_v14 = vmov 0 }
 0x1c9   :  { %1152 = vadd.xlane.f32.xlu1 %v1149_v23  ;;  %1150 = vadd.xlane.f32.xlu0 %v1148_v17  ;;  %vm966_vm2 = vmand %vm870_vm4, %vm950_vm15  ;;  %v4212_v18 = vsel %vm1106_vm9, 1, %v5922_v15  ;;  %v1220_v32 = vcvt.s32.f32 %v1218_v42  ;;  %v6163_v23 = vmov 0  ;;  %v4229_v17 = vpop.permute.xlu1 %939  ;;  %vm952_vm4 = vcmp.eq.s32.totalorder %v4151_v40, 1 }
 0x1ca   :  { %v1183_v48 = vshrl.u32 %v4212_v18, 16  ;;  %vm4217_vm13 = vmand %vm971_vm5, %vm4050_vm10  ;;  %vm1095_vm9 = vcmp.lt.s32.totalorder %v4048_v16, %v4209_v9  ;;  %v4256_v40 = vadd.s32 104, %v4024_v41 }
 0x1cb   :  { %v925_v4 = vpop.permute.xlu0 %924  ;;  %v6162_v14 = vsel %vm4217_vm13, 4294967295, %v6161_v14  ;;  %vm4225_vm15 = vmand %vm966_vm2, %vm4050_vm10 }
 0x1cc   :  { %vm953_vm7 = vcmp.eq.s32.totalorder %v925_v4, 1  ;;  %v6164_v23 = vsel %vm4225_vm15, 4294967295, %v6163_v23  ;;  %v1185_v4 = vcvt.s32.f32 %v1183_v48 }
 0x1cd   :  { %1174 = vadd.xlane.f32.xlu0 %v1172_v26  ;;  %v4197_v26 = vadd.s32 88, %v4024_v41  ;;  %vm969_vm3 = vmand %vm873_vm12, %vm953_vm7  ;;  %vm1092_vm7 = vcmp.lt.s32.totalorder %v4048_v16, %v4202_v63  ;;  %v943_v21 = vpop.permute.xlu1 %942 }
 0x1ce   :  { %vm4235_vm12 = vmand %vm969_vm3, %vm4050_vm10  ;;  %1188 = vadd.xlane.f32.xlu1 %v1185_v4 }
 0x1cf   :  { %vm1097_vm0 = vcmp.lt.s32.totalorder %v4048_v16, %v4197_v26  ;;  %v937_v42 = vpop.permute.xlu0 %936  ;;  %vm1108_vm5 = vmand %vm4225_vm15, %vm1092_vm7  ;;  %vm877_vm7 = vcmp.eq.s32.totalorder %v4175_v61, %v4046_v25 }
 0x1d0   :  { %vm1113_vm2 = vmand %vm4217_vm13, %vm1097_vm0  ;;  %vm957_vm6 = vcmp.eq.s32.totalorder %v937_v42, 1  ;;  %v1134_v42 = vand.u32 65535, %v4077_v39  ;;  %v1158_v39 = vand.u32 65535, %v4098_v12  ;;  %v6172_v12 = vmov 0 }
 0x1d1   :  { %1198 = vadd.xlane.f32.xlu0 %v1196_v57  ;;  %v6165_v57 = vmov 0  ;;  %vm1111_vm3 = vmand %vm4235_vm12, %vm1095_vm9  ;;  %v1129_v4 = vsel %vm1113_vm2, 1, %v5922_v15  ;;  %vm959_vm2 = vcmp.eq.s32.totalorder %v943_v21, 1  ;;  %v6170_v21 = vmov 0 }
 0x1d2   :  { %v6166_v57 = vsel %vm4235_vm12, 4294967295, %v6165_v57  ;;  %v1127_v7 = vsel %vm1111_vm3, 1, %v5922_v15  ;;  %vm968_vm0 = vmand %vm872_vm1, %vm952_vm4  ;;  %v1267_v44 = vshrl.u32 %v1129_v4, 16  ;;  %vm1099_vm3 = vcmp.lt.s32.totalorder %v4048_v16, %v4256_v40 }
 0x1d3   :  { %v1243_v0 = vshrl.u32 %v1127_v7, 16  ;;  %vm973_vm9 = vmand %vm877_vm7, %vm957_vm6  ;;  %vm879_vm6 = vcmp.eq.s32.totalorder %v4157_v1, %v4046_v25 }
 0x1d4   :  { %vm4264_vm1 = vmand %vm968_vm0, %vm4050_vm10  ;;  %vm874_vm0 = vcmp.eq.s32.totalorder %v4147_v49, %v4046_v25 }
 0x1d5   :  { %1222 = vadd.xlane.f32.xlu0 %v1220_v32  ;;  %v1124_v32 = vsel %vm1108_vm5, 1, %v5922_v15  ;;  %v1245_v10 = vcvt.s32.f32 %v1243_v0  ;;  %v6168_v43 = vsel %vm4264_vm1, 4294967295, %v6167_v43  ;;  %vm954_vm5 = vcmp.eq.s32.totalorder %v4155_v2, 1  ;;  %vm4276_vm4 = vmand %vm973_vm9, %vm4050_vm10 }
 0x1d6   :  { %v1207_v48 = vshrl.u32 %v1124_v32, 16  ;;  %v6171_v21 = vsel %vm4276_vm4, 4294967295, %v6170_v21  ;;  %vm975_vm7 = vmand %vm879_vm6, %vm959_vm2  ;;  %v1242_v0 = vand.u32 65535, %v1127_v7  ;;  %vm1094_vm9 = vcmp.lt.s32.totalorder %v4048_v16, %v4260_v54 }
 0x1d7   :  { %vm970_vm13 = vmand %vm874_vm0, %vm954_vm5  ;;  %v4288_v2 = vadd.s32 80, %v4024_v41  ;;  %v1182_v7 = vand.u32 65535, %v4212_v18 }
 0x1d8   :  { %v1209_v19 = vcvt.s32.f32 %v1207_v48  ;;  %v4270_v48 = vadd.s32 120, %v4024_v41  ;;  %vm1115_vm12 = vmand %vm4276_vm4, %vm1099_vm3 }
 0x1d9   :  { %1248 = vadd.xlane.f32.xlu0 %v1245_v10  ;;  %v1269_v10 = vcvt.s32.f32 %v1267_v44  ;;  %vm4294_vm15 = vmand %vm975_vm7, %vm4050_vm10  ;;  %v1160_v44 = vcvt.s32.f32 %v1158_v39  ;;  %v1131_v61 = vsel %vm1115_vm12, 1, %v5922_v15  ;;  %vm1096_vm3 = vcmp.lt.s32.totalorder %v4048_v16, %v4288_v2 }
 0x1da   :  { %1212 = vadd.xlane.f32.xlu1 %v1209_v19  ;;  %6169 = vst [vmem:[#allocation28_spill] sm:$0xff] %v4270_v48  ;;  %v1136_v19 = vcvt.s32.f32 %v1134_v42  ;;  %v6173_v12 = vsel %vm4294_vm15, 4294967295, %v6172_v12  ;;  %vm1101_vm2 = vcmp.lt.s32.totalorder %v4048_v16, %v4270_v48  ;;  %v1244_v42 = vcvt.s32.f32 %v1242_v0  ;;  %vm1110_vm5 = vmand %vm4264_vm1, %vm1094_vm9 }
 0x1db   :  { %6174 = vst [vmem:[#allocation30_spill] sm:$0xff] %v6173_v12  ;;  %vm4305_vm6 = vmand %vm970_vm13, %vm4050_vm10  ;;  %v1184_v18 = vcvt.s32.f32 %v1182_v7  ;;  %v1206_v39 = vand.u32 65535, %v1124_v32  ;;  %v1291_v49 = vshrl.u32 %v1131_v61, 16  ;;  %vm956_vm12 = vcmp.eq.s32.totalorder %v4194_v13, 1 }
 0x1dc   :  { %vm1117_vm0 = vmand %vm4294_vm15, %vm1101_vm2  ;;  %vm876_vm7 = vcmp.eq.s32.totalorder %v4153_v58, %v4046_v25  ;;  %v4323_v32 = vadd.s32 96, %v4024_v41  ;;  %vm958_vm2 = vcmp.eq.s32.totalorder %v4229_v17, 1  ;;  %v4335_v13 = vadd.s32 112, %v4024_v41 }
 0x1dd   :  { %1272 = vadd.xlane.f32.xlu0 %v1269_v10  ;;  %v6175_v10 = vmov 0  ;;  %vm1112_vm13 = vmand %vm4305_vm6, %vm1096_vm3  ;;  %v1293_v48 = vcvt.s32.f32 %v1291_v49  ;;  %v6178_v49 = vmov 0 }
 0x1de   :  { %1138 = vadd.xlane.f32.xlu1 %v1136_v19  ;;  %v1266_v19 = vand.u32 65535, %v1129_v4  ;;  %v6176_v10 = vsel %vm4305_vm6, 4294967295, %v6175_v10  ;;  %v1126_v4 = vsel %vm1110_vm5, 1, %v5922_v15  ;;  %v1128_v12 = vsel %vm1112_vm13, 1, %v5922_v15  ;;  %6177 = vst [vmem:[#allocation19_spill] sm:$0xff] %v4323_v32  ;;  %vm972_vm9 = vmand %vm876_vm7, %vm956_vm12 }
 0x1df   :  { %v1231_v1 = vshrl.u32 %v1126_v4, 16  ;;  %vm878_vm5 = vcmp.eq.s32.totalorder %v4177_v11, %v4046_v25  ;;  %vm4330_vm3 = vmand %vm972_vm9, %vm4050_vm10  ;;  %6181 = vst [vmem:[#allocation39_spill] sm:$0xff] %v4335_v13  ;;  %v6182_v25 = vmov 0  ;;  %vm1100_vm9 = vcmp.lt.s32.totalorder %v4048_v16, %v4335_v13 }
 0x1e0   :  { %v1268_v0 = vcvt.s32.f32 %v1266_v19  ;;  %v6179_v49 = vsel %vm4330_vm3, 4294967295, %v6178_v49  ;;  %vm974_vm13 = vmand %vm878_vm5, %vm958_vm2  ;;  %vm6187_vm5 = vnez %v6084_v46 }
 0x1e1   :  { %1246 = vadd.xlane.f32.xlu0 %v1244_v42  ;;  %v1208_v42 = vcvt.s32.f32 %v1206_v39  ;;  %v1233_v19 = vcvt.s32.f32 %v1231_v1  ;;  %6180 = vst [vmem:[#allocation35_spill] sm:$0xff] %v6179_v49  ;;  %vm4343_vm7 = vmand %vm974_vm13, %vm4050_vm10 }
 0x1e2   :  { %1162 = vadd.xlane.f32.xlu1 %v1160_v44  ;;  %v1133_v44 = vsel %vm1117_vm0, 1, %v5922_v15  ;;  %vm1098_vm0 = vcmp.lt.s32.totalorder %v4048_v16, %v4323_v32  ;;  %v6183_v25 = vsel %vm4343_vm7, 4294967295, %v6182_v25  ;;  %vm1116_vm2 = vmand %vm4343_vm7, %vm1100_vm9  ;;  %vm5849_vm9 = vcmask 7168  }
 0x1e3   :  { %v1315_v7 = vshrl.u32 %v1133_v44, 16  ;;  %vm1114_vm12 = vmand %vm4330_vm3, %vm1098_vm0  ;;  %6184 = vst [vmem:[#allocation40_spill] sm:$0xff] %v6183_v25 }
 0x1e5   :  { %1270 = vadd.xlane.f32.xlu0 %v1268_v0  ;;  %v1317_v39 = vcvt.s32.f32 %v1315_v7  ;;  %v1290_v0 = vand.u32 65535, %v1131_v61  ;;  %v1230_v61 = vand.u32 65535, %v1126_v4  ;;  %v1254_v7 = vand.u32 65535, %v1128_v12 }
 0x1e6   :  { %1186 = vadd.xlane.f32.xlu1 %v1184_v18  ;;  %v1255_v18 = vshrl.u32 %v1128_v12, 16  ;;  %v1130_v4 = vsel %vm1114_vm12, 1, %v5922_v15 }
 0x1e7   :  { %v1292_v17 = vcvt.s32.f32 %v1290_v0  ;;  %v1279_v34 = vshrl.u32 %v1130_v4, 16 }
 0x1e8   :  { %v1257_v1 = vcvt.s32.f32 %v1255_v18  ;;  %v1132_v18 = vsel %vm1116_vm2, 1, %v5922_v15  ;;  %vm6189_vm2 = vnez %v5962_v37 }
 0x1e9   :  { %1296 = vadd.xlane.f32.xlu0 %v1293_v48  ;;  %v1314_v48 = vand.u32 65535, %v1133_v44  ;;  %v1256_v44 = vcvt.s32.f32 %v1254_v7  ;;  %v1303_v0 = vshrl.u32 %v1132_v18, 16 }
 0x1ea   :  { %1210 = vadd.xlane.f32.xlu1 %v1208_v42  ;;  %v1232_v42 = vcvt.s32.f32 %v1230_v61  ;;  %v1302_v61 = vand.u32 65535, %v1132_v18 }
 0x1ed   :  { %1320 = vadd.xlane.f32.xlu0 %v1317_v39  ;;  %v1281_v39 = vcvt.s32.f32 %v1279_v34 }
 0x1ee   :  { %1236 = vadd.xlane.f32.xlu1 %v1233_v19  ;;  %v1316_v19 = vcvt.s32.f32 %v1314_v48  ;;  %v1304_v48 = vcvt.s32.f32 %v1302_v61 }
 0x1f1   :  { %1294 = vadd.xlane.f32.xlu0 %v1292_v17  ;;  %v1278_v17 = vand.u32 65535, %v1130_v4 }
 0x1f2   :  { %1260 = vadd.xlane.f32.xlu1 %v1257_v1  ;;  %v1305_v1 = vcvt.s32.f32 %v1303_v0 }
 0x1f3   :  { %v1280_v12 = vcvt.s32.f32 %v1278_v17 }
 0x1f5   :  { %1318 = vadd.xlane.f32.xlu0 %v1316_v19 }
 0x1f6   :  { %1234 = vadd.xlane.f32.xlu1 %v1232_v42 }
 0x1fa   :  { %1258 = vadd.xlane.f32.xlu1 %v1256_v44 }
 0x1fe   :  { %1284 = vadd.xlane.f32.xlu1 %v1281_v39 }
 0x202   :  { %1308 = vadd.xlane.f32.xlu1 %v1305_v1 }
 0x206   :  { %1282 = vadd.xlane.f32.xlu1 %v1280_v12 }
 0x20a   :  { %1306 = vadd.xlane.f32.xlu1 %v1304_v48 }
 0x21a   :  { %v1141_v42 = vpop.xlane.xlu0 %1140 }
 0x21e   :  { %v1165_v58 = vpop.xlane.xlu0 %1164 }
 0x222   :  { %v1177_v11 = vpop.xlane.xlu0 %1176 }
 0x223   :  { %v1179_v44 = vcvt.f32.s32 %v1177_v11 }
 0x225   :  { %v1180_v0 = vshll.u32 %v1179_v44, 16 }
 0x226   :  { %v1201_v19 = vpop.xlane.xlu0 %1200 }
 0x227   :  { %v1203_v1 = vcvt.f32.s32 %v1201_v19 }
 0x22a   :  { %v1225_v7 = vpop.xlane.xlu0 %1224 }
 0x22b   :  { %v1227_v11 = vcvt.f32.s32 %v1225_v7 }
 0x22d   :  { %v1228_v48 = vshll.u32 %v1227_v11, 16 }
 0x252   :  { %v1153_v16 = vpop.xlane.xlu1 %1152  ;;  %v1151_v25 = vpop.xlane.xlu0 %1150 }
 0x253   :  { %v1155_v13 = vcvt.f32.s32 %v1153_v16  ;;  %v1154_v34 = vcvt.f32.s32 %v1151_v25  ;;  %v1204_v16 = vshll.u32 %v1203_v1, 16 }
 0x255   :  { %v1156_v49 = vshll.u32 %v1155_v13, 16 }
 0x256   :  { %v1175_v4 = vpop.xlane.xlu0 %1174 }
 0x257   :  { %v4353_v39 = vadd.s32 %v1156_v49, %v1154_v34  ;;  %v1178_v18 = vcvt.f32.s32 %v1175_v4  ;;  %v1189_v34 = vpop.xlane.xlu1 %1188 }
 0x259   :  { %6185 = vst [vmem:[#allocation24_spill] sm:$0xff] %v4353_v39  ;;  %vm1327_vm10 = vcmp.eq.s32.totalorder %v4353_v39, 0  ;;  %v4356_v17 = vadd.s32 %v1180_v0, %v1178_v18  ;;  %v1167_v39 = vcvt.f32.s32 %v1165_v58 }
 0x25a   :  { %vm1343_vm0 = vmand %vm6187_vm5, %vm1327_vm10  ;;  %v1199_v12 = vpop.xlane.xlu0 %1198  ;;  %vm6190_vm5 = vnez %v5965_v29 }
 0x25b   :  { %6186 = vst [vmem:[#allocation41_spill] sm:$0xff] %v4356_v17  ;;  %v1430_v61 = vsel %vm1343_vm0, 1, %v5922_v15  ;;  %v1202_v25 = vcvt.f32.s32 %v1199_v12  ;;  %vm1329_vm13 = vcmp.eq.s32.totalorder %v4356_v17, 0 }
 0x25c   :  { %1449 = vperm.xlu0 %2779, %v1430_v61   ;;  %vm1345_vm10 = vmand %vm6189_vm2, %vm1329_vm13  ;;  %v2351_v4 = vsel %vm5849_vm9, %v1430_v61, 0  ;;  %vm6192_vm13 = vnez %v5968_v51  ;;  %v1191_v51 = vcvt.f32.s32 %v1189_v34 }
 0x25d   :  { %v4362_v49 = vadd.s32 %v1204_v16, %v1202_v25  ;;  %v1432_v1 = vsel %vm1345_vm10, 1, %v5922_v15 }
 0x25e   :  { %v1223_v13 = vpop.xlane.xlu0 %1222  ;;  %v2353_v16 = vsel %vm5849_vm9, %v1432_v1, 0 }
 0x25f   :  { %6188 = vst [vmem:[#allocation42_spill] sm:$0xff] %v4362_v49  ;;  %vm1331_vm12 = vcmp.eq.s32.totalorder %v4362_v49, 0  ;;  %v1226_v19 = vcvt.f32.s32 %v1223_v13  ;;  %v1143_v13 = vcvt.f32.s32 %v1141_v42  ;;  %v1168_v49 = vshll.u32 %v1167_v39, 16 }
 0x260   :  { %vm1347_vm0 = vmand %vm6190_vm5, %vm1331_vm12  ;;  %vm6194_vm12 = vnez %v5953_v35  ;;  %v1192_v39 = vshll.u32 %v1191_v51, 16 }
 0x261   :  { %v4369_v44 = vadd.s32 %v1228_v48, %v1226_v19  ;;  %v4372_v7 = vsel %vm1347_vm0, 1, %v5922_v15  ;;  %v1144_v46 = vshll.u32 %v1143_v13, 16 }
 0x262   :  { %v2356_v0 = vsel %vm5849_vm9, %v4372_v7, 0  ;;  %v1249_v48 = vpop.xlane.xlu0 %1248 }
 0x263   :  { %6191 = vst [vmem:[#allocation43_spill] sm:$0xff] %v4369_v44  ;;  %vm1333_vm7 = vcmp.eq.s32.totalorder %v4369_v44, 0  ;;  %v2357_v18 = vadd.s32 %v2356_v0, %v2351_v4  ;;  %v1213_v25 = vpop.xlane.xlu1 %1212  ;;  %v1251_v37 = vcvt.f32.s32 %v1249_v48 }
 0x264   :  { %vm1349_vm2 = vmand %vm6192_vm13, %vm1333_vm7  ;;  %v1215_v34 = vcvt.f32.s32 %v1213_v25 }
 0x265   :  { %v4382_v12 = vsel %vm1349_vm2, 1, %v5922_v15 }
 0x266   :  { %v2360_v11 = vsel %vm5849_vm9, %v4382_v12, 0  ;;  %v1273_v0 = vpop.xlane.xlu0 %1272 }
 0x267   :  { %v4387_v61 = vadd.s32 %v2360_v11, %v2353_v16  ;;  %v1139_v19 = vpop.xlane.xlu1 %1138  ;;  %v1252_v16 = vshll.u32 %v1251_v37, 16  ;;  %v1275_v11 = vcvt.f32.s32 %v1273_v0  ;;  %v1216_v0 = vshll.u32 %v1215_v34, 16 }
 0x268   :  { %v1142_v4 = vcvt.f32.s32 %v1139_v19 }
 0x269   :  { %v1276_v37 = vshll.u32 %v1275_v11, 16 }
 0x26a   :  { %v4389_v17 = vadd.s32 %v1144_v46, %v1142_v4  ;;  %v1247_v32 = vpop.xlane.xlu0 %1246 }
 0x26b   :  { %v1163_v29 = vpop.xlane.xlu1 %1162  ;;  %v1250_v42 = vcvt.f32.s32 %v1247_v32 }
 0x26c   :  { %6193 = vst [vmem:[#allocation44_spill] sm:$0xff] %v4389_v17  ;;  %vm1326_vm7 = vcmp.eq.s32.totalorder %v4389_v17, 0  ;;  %v1166_v44 = vcvt.f32.s32 %v1163_v29 }
 0x26d   :  { %vm1342_vm2 = vmand %vm6194_vm12, %vm1326_vm7  ;;  %v4397_v48 = vadd.s32 %v1252_v16, %v1250_v42  ;;  %vm6197_vm7 = vnez %v5958_v60 }
 0x26e   :  { %v4394_v13 = vadd.s32 %v1168_v49, %v1166_v44  ;;  %v1429_v58 = vsel %vm1342_vm2, 1, %v5922_v15  ;;  %v1271_v19 = vpop.xlane.xlu0 %1270 }
 0x26f   :  { %1446 = vperm.xlu1 %2780, %v1429_v58   ;;  %v1187_v46 = vpop.xlane.xlu1 %1186  ;;  %6196 = vst [vmem:[#allocation46_spill] sm:$0xff] %v4397_v48  ;;  %vm1335_vm0 = vcmp.eq.s32.totalorder %v4397_v48, 0  ;;  %v1274_v32 = vcvt.f32.s32 %v1271_v19 }
 0x270   :  { %6195 = vst [vmem:[#allocation45_spill] sm:$0xff] %v4394_v13  ;;  %vm1328_vm10 = vcmp.eq.s32.totalorder %v4394_v13, 0  ;;  %v1190_v29 = vcvt.f32.s32 %v1187_v46  ;;  %vm1351_vm2 = vmand %vm3985_vm14, %vm1335_vm0  ;;  %vm6202_vm0 = vnez %v6060_v27 }
 0x271   :  { %vm1344_vm9 = vmand %vm6197_vm7, %vm1328_vm10  ;;  %v4408_v25 = vadd.s32 %v1276_v37, %v1274_v32  ;;  %v1438_v4 = vsel %vm1351_vm2, 1, %v5922_v15  ;;  %vm6200_vm10 = vcmask 7168  }
 0x272   :  { %v4403_v49 = vadd.s32 %v1192_v39, %v1190_v29  ;;  %v1431_v44 = vsel %vm1344_vm9, 1, %v5922_v15  ;;  %v1297_v11 = vpop.xlane.xlu0 %1296  ;;  %v2364_v42 = vsel %vm6200_vm10, %v1438_v4, 0  ;;  %vm6203_vm7 = vmmov %vm6200_vm10 }
 0x273   :  { %1452 = vperm.xlu1 %2780, %v1431_v44   ;;  %v1211_v51 = vpop.xlane.xlu1 %1210  ;;  %6199 = vst [vmem:[#allocation60_spill] sm:$0xff] %v4408_v25  ;;  %vm1337_vm5 = vcmp.eq.s32.totalorder %v4408_v25, 0  ;;  %v2365_v46 = vadd.s32 %v2364_v42, %v2357_v18  ;;  %v2350_v34 = vsel %vm6203_vm7, %v1429_v58, 0  ;;  %vm6204_vm13 = vmmov %vm6203_vm7 }
 0x274   :  { %6198 = vst [vmem:[#allocation59_spill] sm:$0xff] %v4403_v49  ;;  %vm1330_vm12 = vcmp.eq.s32.totalorder %v4403_v49, 0  ;;  %v1214_v16 = vcvt.f32.s32 %v1211_v51  ;;  %vm1353_vm2 = vmand %vm6202_vm0, %vm1337_vm5 }
 0x275   :  { %vm1346_vm9 = vmand %vm6111_vm11, %vm1330_vm12  ;;  %v1440_v32 = vsel %vm1353_vm2, 1, %v5922_v15  ;;  %vm6210_vm2 = vnez %v6122_v56 }
 0x276   :  { %v4416_v39 = vadd.s32 %v1216_v0, %v1214_v16  ;;  %v1433_v29 = vsel %vm1346_vm9, 1, %v5922_v15  ;;  %v1321_v18 = vpop.xlane.xlu0 %1320  ;;  %v1299_v0 = vcvt.f32.s32 %v1297_v11  ;;  %vm6205_vm9 = vmmov %vm6203_vm7 }
 0x277   :  { %1455 = vperm.xlu1 %2780, %v1432_v1   ;;  %1458 = vperm.xlu0 %2779, %v1433_v29   ;;  %v2354_v19 = vsel %vm6204_vm13, %v1433_v29, 0  ;;  %v1237_v37 = vpop.xlane.xlu1 %1236  ;;  %v2368_v16 = vsel %vm6205_vm9, %v1440_v32, 0  ;;  %vm6206_vm5 = vmmov %vm6203_vm7  ;;  %v1323_v60 = vcvt.f32.s32 %v1321_v18 }
 0x278   :  { %6201 = vst [vmem:[#allocation61_spill] sm:$0xff] %v4416_v39  ;;  %vm1332_vm10 = vcmp.eq.s32.totalorder %v4416_v39, 0  ;;  %v2355_v51 = vadd.s32 %v2354_v19, %v2350_v34  ;;  %v2369_v1 = vadd.s32 %v2368_v16, %v4387_v61  ;;  %v2352_v58 = vsel %vm6206_vm5, %v1431_v44, 0  ;;  %vm6207_vm13 = vmmov %vm6206_vm5 }
 0x279   :  { %vm1348_vm12 = vmand %vm3907_vm8, %vm1332_vm10  ;;  %v1239_v34 = vcvt.f32.s32 %v1237_v37  ;;  %v1300_v17 = vshll.u32 %v1299_v0, 16 }
 0x27a   :  { %v1435_v42 = vsel %vm1348_vm12, 1, %v5922_v15  ;;  %v1295_v11 = vpop.xlane.xlu0 %1294  ;;  %vm6211_vm9 = vmmov %vm6206_vm5 }
 0x27b   :  { %1461 = vperm.xlu1 %2780, %v4372_v7   ;;  %1464 = vperm.xlu0 %2779, %v1435_v42   ;;  %v2358_v29 = vsel %vm6207_vm13, %v1435_v42, 0  ;;  %v1261_v35 = vpop.xlane.xlu1 %1260  ;;  %v1298_v13 = vcvt.f32.s32 %v1295_v11  ;;  %v1240_v61 = vshll.u32 %v1239_v34, 16  ;;  %v1324_v7 = vshll.u32 %v1323_v60, 16 }
 0x27c   :  { %v2359_v19 = vadd.s32 %v2358_v29, %v2352_v58  ;;  %v1263_v16 = vcvt.f32.s32 %v1261_v35  ;;  %vm6212_vm13 = vnez %v6014_v8 }
 0x27d   :  { %v4434_v49 = vadd.s32 %v1300_v17, %v1298_v13 }
 0x27e   :  { %v1319_v45 = vpop.xlane.xlu0 %1318 }
 0x27f   :  { %1467 = vperm.xlu1 %2780, %v4382_v12   ;;  %v1235_v53 = vpop.xlane.xlu1 %1234  ;;  %6208 = vst [vmem:[#allocation62_spill] sm:$0xff] %v4434_v49  ;;  %vm1339_vm7 = vcmp.eq.s32.totalorder %v4434_v49, 0  ;;  %v1322_v42 = vcvt.f32.s32 %v1319_v45  ;;  %v1264_v12 = vshll.u32 %v1263_v16, 16 }
 0x280   :  { %v1238_v44 = vcvt.f32.s32 %v1235_v53  ;;  %vm1355_vm10 = vmand %vm6210_vm2, %vm1339_vm7  ;;  %vm6214_vm7 = vnez %v6120_v33  ;;  %vm6231_vm2 = vnez %v6146_v50 }
 0x281   :  { %v4441_v18 = vadd.s32 %v1324_v7, %v1322_v42  ;;  %v1442_v17 = vsel %vm1355_vm10, 1, %v5922_v15  ;;  %vm6215_vm10 = vmmov %vm6211_vm9 }
 0x282   :  { %v4437_v48 = vadd.s32 %v1240_v61, %v1238_v44  ;;  %v2372_v60 = vsel %vm6211_vm9, %v1442_v17, 0  ;;  %vm6217_vm0 = vmmov %vm6215_vm10 }
 0x283   :  { %1473 = vperm.xlu1 %2780, %v1438_v4   ;;  %v1259_v37 = vpop.xlane.xlu1 %1258  ;;  %vm1341_vm5 = vcmp.eq.s32.totalorder %v4441_v18, 0  ;;  %v2373_v53 = vadd.s32 %v2372_v60, %v2365_v46 }
 0x284   :  { %6209 = vst [vmem:[#allocation63_spill] sm:$0xff] %v4437_v48  ;;  %vm1334_vm12 = vcmp.eq.s32.totalorder %v4437_v48, 0  ;;  %v1262_v35 = vcvt.f32.s32 %v1259_v37  ;;  %vm1357_vm14 = vmand %vm6214_vm7, %vm1341_vm5  ;;  %vm6233_vm7 = vnez %v6143_v55 }
 0x285   :  { %vm1350_vm11 = vmand %vm6212_vm13, %vm1334_vm12  ;;  %v1444_v58 = vsel %vm1357_vm14, 1, %v5922_v15  ;;  %vm6216_vm12 = vnez %v6037_v20 }
 0x286   :  { %v4449_v45 = vadd.s32 %v1264_v12, %v1262_v35  ;;  %v1437_v13 = vsel %vm1350_vm11, 1, %v5922_v15  ;;  %v2376_v46 = vsel %vm6217_vm0, %v1444_v58, 0  ;;  %vm6218_vm11 = vmmov %vm6217_vm0 }
 0x287   :  { %1479 = vperm.xlu1 %2780, %v1440_v32   ;;  %1470 = vperm.xlu0 %2779, %v1437_v13   ;;  %v2362_v4 = vsel %vm6215_vm10, %v1437_v13, 0  ;;  %v1285_v0 = vpop.xlane.xlu1 %1284  ;;  %v2377_v11 = vadd.s32 %v2376_v46, %v2369_v1  ;;  %vm6222_vm5 = vmmov %vm6215_vm10 }
 0x288   :  { %6213 = vst [vmem:[#allocation64_spill] sm:$0xff] %v4449_v45  ;;  %vm1336_vm9 = vcmp.eq.s32.totalorder %v4449_v45, 0  ;;  %v2363_v29 = vadd.s32 %v2362_v4, %v2355_v51  ;;  %v1287_v16 = vcvt.f32.s32 %v1285_v0  ;;  %vm6224_vm13 = vmmov %vm6222_vm5 }
 0x289   :  { %vm1352_vm8 = vmand %vm6216_vm12, %vm1336_vm9  ;;  %vm6223_vm9 = vnez %v6113_v36  ;;  %vm6232_vm12 = vnez %v6148_v5 }
 0x28a   :  { %v1439_v34 = vsel %vm1352_vm8, 1, %v5922_v15  ;;  %v1288_v42 = vshll.u32 %v1287_v16, 16  ;;  %vm6220_vm8 = vnez %v6107_v59 }
 0x28b   :  { %1485 = vperm.xlu1 %2780, %v1442_v17   ;;  %1476 = vperm.xlu0 %2779, %v1439_v34   ;;  %v2366_v32 = vsel %vm6218_vm11, %v1439_v34, 0  ;;  %v1309_v61 = vpop.xlane.xlu1 %1308 }
 0x28c   :  { %v2367_v44 = vadd.s32 %v2366_v32, %v2359_v19  ;;  %v1311_v37 = vcvt.f32.s32 %v1309_v61 }
 0x28e   :  { %v1312_v60 = vshll.u32 %v1311_v37, 16  ;;  %v1361_v37 = vsel %vm6233_vm7, %v4074_v47, 128 }
 0x28f   :  { %1491 = vperm.xlu1 %2780, %v1444_v58   ;;  %v1283_v7 = vpop.xlane.xlu1 %1282 }
 0x290   :  { %v1286_v51 = vcvt.f32.s32 %v1283_v7 }
 0x292   :  { %v4462_v12 = vadd.s32 %v1288_v42, %v1286_v51  ;;  %v1365_v42 = vsel %vm6232_vm12, %v4116_v52, 128 }
 0x293   :  { %v1307_v35 = vpop.xlane.xlu1 %1306 }
 0x294   :  { %6219 = vst [vmem:[#allocation65_spill] sm:$0xff] %v4462_v12  ;;  %vm1338_vm14 = vcmp.eq.s32.totalorder %v4462_v12, 0  ;;  %v1310_v13 = vcvt.f32.s32 %v1307_v35 }
 0x295   :  { %vm1354_vm0 = vmand %vm6220_vm8, %vm1338_vm14  ;;  %vm6226_vm14 = vnez %v6160_v22 }
 0x296   :  { %v4467_v1 = vadd.s32 %v1312_v60, %v1310_v13  ;;  %v1441_v17 = vsel %vm1354_vm0, 1, %v5922_v15  ;;  %v1362_v16 = vsel %vm6226_vm14, %v4182_v24, 128  ;;  %vm6227_vm0 = vnez %v6138_v28 }
 0x297   :  { %1482 = vperm.xlu0 %2779, %v1441_v17   ;;  %v2370_v19 = vsel %vm6222_vm5, %v1441_v17, 0  ;;  %vm6228_vm5 = vnez %v6156_v3  ;;  %v1366_v60 = vsel %vm4264_vm1, %v4260_v54, 128  ;;  %vm6235_vm14 = vnez %v6162_v14 }
 0x298   :  { %6221 = vst [vmem:[#allocation66_spill] sm:$0xff] %v4467_v1  ;;  %vm1340_vm10 = vcmp.eq.s32.totalorder %v4467_v1, 0  ;;  %v2371_v4 = vadd.s32 %v2370_v19, %v2363_v29  ;;  %v1358_v29 = vsel %vm6227_vm0, %v4024_v41, 128  ;;  %v1369_v13 = vsel %vm6235_vm14, %v4197_v26, 128 }
 0x299   :  { %vm1356_vm11 = vmand %vm6223_vm9, %vm1340_vm10  ;;  %vm6229_vm10 = vnez %v6164_v23 }
 0x29a   :  { %v2378_v0 = vadd.s32 %v2373_v53, %v2371_v4  ;;  %v1443_v58 = vsel %vm1356_vm11, 1, %v5922_v15  ;;  %v1359_v53 = vsel %vm6228_vm5, %v4160_v62, 128  ;;  %v1364_v7 = vsel %vm6229_vm10, %v4202_v63, 128 }
 0x29b   :  { %1488 = vperm.xlu0 %2779, %v1443_v58   ;;  %v2374_v46 = vsel %vm6224_vm13, %v1443_v58, 0  ;;  %vm1374_vm13 = vcmp.lt.s32.totalorder %v1358_v29, %v1362_v16  ;;  %vm6230_vm11 = vnez %v6140_v6  ;;  %vm6234_vm10 = vnez %v6166_v57 }
 0x29c   :  { %v2375_v34 = vadd.s32 %v2374_v46, %v2367_v44  ;;  %v1363_v44 = vsel %vm6231_vm2, %v4095_v38, 128  ;;  %v1375_v51 = vsel %vm1374_vm13, %v1358_v29, %v1362_v16  ;;  %v1367_v35 = vsel %vm6234_vm10, %v4209_v9, 128 }
 0x29d   :  { %vm1376_vm8 = vcmp.lt.s32.totalorder %v1359_v53, %v1363_v44  ;;  %vm1380_vm5 = vcmp.lt.s32.totalorder %v1361_v37, %v1365_v42  ;;  %vm1382_vm12 = vcmp.lt.s32.totalorder %v1375_v51, %v1366_v60  ;;  %v1368_v4 = vsel %vm4305_vm6, %v4288_v2, 128 }
 0x29e   :  { %v2379_v32 = vadd.s32 %v2377_v11, %v2375_v34  ;;  %v1360_v11 = vsel %vm6230_vm11, %v4059_v31, 128  ;;  %v1377_v19 = vsel %vm1376_vm8, %v1359_v53, %v1363_v44  ;;  %v1371_v58 = vsel %vm4276_vm4, %v4256_v40, 128  ;;  %v6236_v34 = vld [vmem:[#allocation28_spill] sm:$0xff]  ;;  %v6238_v53 = vld [vmem:[#allocation19_spill] sm:$0xff] }
 0x29f   :  { %vm1378_vm9 = vcmp.lt.s32.totalorder %v1360_v11, %v1364_v7  ;;  %vm1384_vm2 = vcmp.lt.s32.totalorder %v1377_v19, %v1367_v35  ;;  %v1383_v46 = vsel %vm1382_vm12, %v1375_v51, %v1366_v60  ;;  %v1373_v16 = vsel %vm4294_vm15, %v6236_v34, 128 }
 0x2a0   :  { %v4476_v61 = vadd.s32 %v2379_v32, %v2378_v0  ;;  %v1379_v17 = vsel %vm1378_vm9, %v1360_v11, %v1364_v7  ;;  %v1381_v0 = vsel %vm1380_vm5, %v1361_v37, %v1365_v42  ;;  %v6237_v32 = vld [vmem:[#allocation30_spill] sm:$0xff]  ;;  %v1385_v29 = vsel %vm1384_vm2, %v1377_v19, %v1367_v35  ;;  %v6239_v7 = vld [vmem:[#allocation35_spill] sm:$0xff]  ;;  %v6241_v37 = vld [vmem:[#allocation40_spill] sm:$0xff] }
 0x2a1   :  { %vm1388_vm13 = vcmp.lt.s32.totalorder %v1381_v0, %v1369_v13  ;;  %vm1386_vm10 = vcmp.lt.s32.totalorder %v1379_v17, %v1368_v4  ;;  %vm1392_vm8 = vcmp.lt.s32.totalorder %v1385_v29, %v1371_v58  ;;  %v1370_v11 = vsel %vm4330_vm3, %v6238_v53, 128  ;;  %v6240_v42 = vld [vmem:[#allocation39_spill] sm:$0xff] }
 0x2a2   :  { %6225 = vst [vmem:[#allocation67_spill] sm:$0xff] %v4476_v61  ;;  %v1387_v44 = vsel %vm1386_vm10, %v1379_v17, %v1368_v4  ;;  %v1389_v61 = vsel %vm1388_vm13, %v1381_v0, %v1369_v13  ;;  %vm1390_vm9 = vcmp.lt.s32.totalorder %v1383_v46, %v1370_v11  ;;  %vm6242_vm6 = vnez %v6241_v37  ;;  %v6243_v13 = vld [vmem:[#allocation49_spill] sm:$0xff] }
 0x2a3   :  { %vm1396_vm5 = vcmp.lt.s32.totalorder %v1389_v61, %v1373_v16  ;;  %v1372_v30 = vsel %vm6242_vm6, %v6240_v42, 128  ;;  %v1393_v39 = vsel %vm1392_vm8, %v1385_v29, %v1371_v58  ;;  %v1391_v51 = vsel %vm1390_vm9, %v1383_v46, %v1370_v11 }
 0x2a4   :  { %vm1394_vm12 = vcmp.lt.s32.totalorder %v1387_v44, %v1372_v30  ;;  %v1397_v60 = vsel %vm1396_vm5, %v1389_v61, %v1373_v16  ;;  %vm1398_vm4 = vcmp.lt.s32.totalorder %v1391_v51, %v1393_v39  ;;  %vm1017_vm13 = vcmp.lt.s32.totalorder %v4024_v41, %v6243_v13 }
 0x2a5   :  { %v1395_v27 = vsel %vm1394_vm12, %v1387_v44, %v1372_v30  ;;  %v1399_v35 = vsel %vm1398_vm4, %v1391_v51, %v1393_v39  ;;  %vm1019_vm8 = vcmp.lt.s32.totalorder %v4059_v31, %v6243_v13  ;;  %vm1020_vm9 = vcmp.lt.s32.totalorder %v4074_v47, %v6243_v13 }
 0x2a6   :  { %vm1400_vm2 = vcmp.lt.s32.totalorder %v1395_v27, %v1397_v60  ;;  %vm1022_vm4 = vcmp.lt.s32.totalorder %v4095_v38, %v6243_v13  ;;  %vm1024_vm5 = vcmp.lt.s32.totalorder %v4116_v52, %v6243_v13  ;;  %vm4548_vm12 = vmand %vm6230_vm11, %vm1019_vm8  ;;  %v6246_v39 = vmov 0 }
 0x2a7   :  { %v1401_v19 = vsel %vm1400_vm2, %v1395_v27, %v1397_v60  ;;  %v6247_v39 = vsel %vm4548_vm12, 4294967295, %v6246_v39  ;;  %vm1021_vm2 = vcmp.lt.s32.totalorder %v4182_v24, %v6243_v13  ;;  %vm1018_vm8 = vcmp.lt.s32.totalorder %v4160_v62, %v6243_v13 }
 0x2a8   :  { %vm1402_vm15 = vcmp.lt.s32.totalorder %v1399_v35, %v1401_v19  ;;  %vm6253_vm11 = vnez %v6148_v5  ;;  %v6254_v58 = vmov 0  ;;  %vm6257_vm3 = vnez %v6156_v3 }
 0x2a9   :  { %v1403_v25 = vsel %vm1402_vm15, %v1399_v35, %v1401_v19  ;;  %vm4540_vm15 = vmand %vm6227_vm0, %vm1017_vm13  ;;  %vm6250_vm13 = vnez %v6146_v50 }
 0x2aa   :  { %v1404_v8 = vrot.slane %v1403_v25, 4  ;;  %vm4564_vm0 = vmand %vm6250_vm13, %vm1022_vm4  ;;  %vm6256_vm4 = vnez %v6160_v22  ;;  %v1049_v60 = vsel %vm4540_vm15, 1, %v5922_v15  ;;  %vm6268_vm15 = vnez %v6171_v21 }
 0x2ab   :  { %vm4572_vm6 = vmand %vm6253_vm11, %vm1024_vm5  ;;  %vm1026_vm5 = vcmp.lt.s32.totalorder %v4209_v9, %v6243_v13  ;;  %vm1028_vm11 = vcmp.lt.s32.totalorder %v4197_v26, %v6243_v13 }
 0x2ac   :  { %vm1405_vm10 = vcmp.lt.s32.totalorder %v1403_v25, %v1404_v8  ;;  %v6255_v58 = vsel %vm4572_vm6, 4294967295, %v6254_v58  ;;  %vm1037_vm13 = vmand %vm6256_vm4, %vm1021_vm2  ;;  %vm6260_vm6 = vnez %v6164_v23  ;;  %vm6263_vm4 = vnez %v6166_v57 }
 0x2ad   :  { %v1406_v27 = vsel %vm1405_vm10, %v1403_v25, %v1404_v8  ;;  %vm4558_vm10 = vmand %vm6233_vm7, %vm1020_vm9  ;;  %v6248_v8 = vmov 0  ;;  %v6251_v25 = vmov 0  ;;  %vm1023_vm9 = vcmp.lt.s32.totalorder %v4202_v63, %v6243_v13 }
 0x2ae   :  { %v6249_v8 = vsel %vm4558_vm10, 4294967295, %v6248_v8  ;;  %v6252_v25 = vsel %vm4564_vm0, 4294967295, %v6251_v25  ;;  %v1407_v0 = vrot.slane %v1406_v27, 2  ;;  %vm1025_vm7 = vcmp.lt.s32.totalorder %v4260_v54, %v6243_v13  ;;  %vm4584_vm10 = vmand %vm6257_vm3, %vm1018_vm8 }
 0x2af   :  { %vm1039_vm0 = vmand %vm6260_vm6, %vm1023_vm9  ;;  %v1053_v44 = vsel %vm1037_vm13, 1, %v5922_v15  ;;  %vm1030_vm8 = vcmp.lt.s32.totalorder %v4256_v40, %v6243_v13  ;;  %vm1027_vm3 = vcmp.lt.s32.totalorder %v4288_v2, %v6243_v13  ;;  %v1050_v19 = vsel %vm4584_vm10, 1, %v5922_v15 }
 0x2b0   :  { %vm1408_vm12 = vcmp.lt.s32.totalorder %v1406_v27, %v1407_v0  ;;  %vm4600_vm2 = vmand %vm4264_vm1, %vm1025_vm7  ;;  %v1055_v48 = vsel %vm1039_vm0, 1, %v5922_v15  ;;  %v1065_v20 = vadd.s32 %v1053_v44, %v1049_v60  ;;  %vm6270_vm10 = vnez %v6252_v25 }
 0x2b1   :  { %vm4611_vm9 = vmand %vm6263_vm4, %vm1026_vm5  ;;  %v1409_v56 = vsel %vm1408_vm12, %v1406_v27, %v1407_v0  ;;  %v1054_v46 = vsel %vm6270_vm10, 1, %v5922_v15  ;;  %vm6271_vm0 = vnez %v6255_v58  ;;  %vm6272_vm12 = vnez %v6176_v10 }
 0x2b2   :  { %vm4622_vm13 = vmand %vm6235_vm14, %vm1028_vm11  ;;  %vm6269_vm11 = vnez %v6247_v39  ;;  %v1056_v27 = vsel %vm6271_vm0, 1, %v5922_v15  ;;  %v1058_v39 = vsel %vm4611_vm9, 1, %v5922_v15  ;;  %v1066_v44 = vadd.s32 %v1054_v46, %v1050_v19 }
 0x2b3   :  { %vm1046_vm7 = vmand %vm6268_vm15, %vm1030_vm8  ;;  %v1051_v45 = vsel %vm6269_vm11, 1, %v5922_v15  ;;  %vm6275_vm11 = vcmp.lt.s32.totalorder %v6236_v34, %v6243_v13  ;;  %vm6276_vm10 = vnez %v6237_v32  ;;  %v1410_v58 = vrot.slane %v1409_v56, 1 }
 0x2b4   :  { %vm4650_vm5 = vmand %vm6272_vm12, %vm1027_vm3  ;;  %v1067_v25 = vadd.s32 %v1055_v48, %v1051_v45  ;;  %vm6277_vm3 = vnez %v6249_v8  ;;  %v1057_v51 = vsel %vm4600_vm2, 1, %v5922_v15  ;;  %v1060_v48 = vsel %vm4622_vm13, 1, %v5922_v15 }
 0x2b5   :  { %vm1048_vm0 = vmand %vm6276_vm10, %vm6275_vm11  ;;  %v1052_v60 = vsel %vm6277_vm3, 1, %v5922_v15  ;;  %v1062_v45 = vsel %vm1046_vm7, 1, %v5922_v15  ;;  %v1069_v59 = vadd.s32 %v1065_v20, %v1057_v51  ;;  %vm6278_vm9 = vcmp.lt.s32.totalorder %v6238_v53, %v6243_v13 }
 0x2b6   :  { %v1068_v46 = vadd.s32 %v1056_v27, %v1052_v60  ;;  %vm6279_vm11 = vnez %v6239_v7  ;;  %v1070_v8 = vadd.s32 %v1066_v44, %v1058_v39  ;;  %v1059_v11 = vsel %vm4650_vm5, 1, %v5922_v15 }
 0x2b7   :  { %vm1045_vm8 = vmand %vm6279_vm11, %vm6278_vm9  ;;  %v1064_v12 = vsel %vm1048_vm0, 1, %v5922_v15  ;;  %v1071_v36 = vadd.s32 %v1067_v25, %v1059_v11  ;;  %vm6280_vm2 = vcmp.lt.s32.totalorder %v6240_v42, %v6243_v13  ;;  %vm6281_vm7 = vnez %v6241_v37 }
 0x2b8   :  { %v1072_v35 = vadd.s32 %v1068_v46, %v1060_v48  ;;  %vm1047_vm13 = vmand %vm6281_vm7, %vm6280_vm2  ;;  %v1074_v20 = vadd.s32 %v1070_v8, %v1062_v45  ;;  %vm1411_vm3 = vcmp.lt.s32.totalorder %v1409_v56, %v1410_v58  ;;  %v1061_v60 = vsel %vm1045_vm8, 1, %v5922_v15 }
 0x2b9   :  { %v1073_v44 = vadd.s32 %v1069_v59, %v1061_v60  ;;  %v1063_v0 = vsel %vm1047_vm13, 1, %v5922_v15  ;;  %v4690_v1 = vsel %vm1411_vm3, %v1409_v56, %v1410_v58 }
 0x2ba   :  { %v1076_v51 = vadd.s32 %v1072_v35, %v1064_v12  ;;  %v1075_v48 = vadd.s32 %v1071_v36, %v1063_v0  ;;  %vm1413_vm8 = vcmp.lt.s32.totalorder %v4024_v41, %v4690_v1  ;;  %vm1414_vm13 = vcmp.lt.s32.totalorder %v4160_v62, %v4690_v1 }
 0x2bb   :  { %v1077_v25 = vadd.s32 %v1074_v20, %v1073_v44  ;;  %vm1415_vm6 = vcmp.lt.s32.totalorder %v4059_v31, %v4690_v1  ;;  %vm1417_vm14 = vcmp.lt.s32.totalorder %v4182_v24, %v4690_v1  ;;  %v6284_v12 = vmov 0 }
 0x2bc   :  { %v1078_v45 = vadd.s32 %v1076_v51, %v1075_v48  ;;  %v6290_v24 = vmov 0 }
 0x2be   :  { %v1079_v56 = vadd.s32 %v1078_v45, %v1077_v25 }
 0x2d7   :  { %v4596_v29 = vpop.permute.xlu0 %1449 }
 0x2d8   :  { %vm1494_vm0 = vcmp.eq.s32.totalorder %v4596_v29, 1 }
 0x2d9   :  { %vm4708_vm15 = vmand %vm1494_vm0, %vm1414_vm13  ;;  %vm1419_vm0 = vcmp.lt.s32.totalorder %v4202_v63, %v4690_v1  ;;  %v1080_v63 = vrot.slane %v1079_v56, 4 }
 0x2da   :  { %v6285_v12 = vsel %vm4708_vm15, 4294967295, %v6284_v12 }
 0x2db   :  { %v1081_v58 = vadd.s32 %v1080_v63, %v1079_v56 }
 0x2ea   :  { %v4526_v17 = vpop.permute.xlu1 %1446 }
 0x2eb   :  { %vm1493_vm5 = vcmp.eq.s32.totalorder %v4526_v17, 1  ;;  %v6286_v17 = vmov 0 }
 0x2ec   :  { %vm4700_vm3 = vmand %vm1493_vm5, %vm1413_vm8  ;;  %vm1416_vm8 = vcmp.lt.s32.totalorder %v4074_v47, %v4690_v1 }
 0x2ee   :  { %v4530_v4 = vpop.permute.xlu1 %1452 }
 0x2ef   :  { %vm1495_vm9 = vcmp.eq.s32.totalorder %v4530_v4, 1 }
 0x2f0   :  { %vm4712_vm12 = vmand %vm1495_vm9, %vm1415_vm6 }
 0x2f1   :  { %v6287_v17 = vsel %vm4712_vm12, 4294967295, %v6286_v17 }
 0x2f2   :  { %v4554_v61 = vpop.permute.xlu1 %1455  ;;  %v1459_v30 = vpop.permute.xlu0 %1458 }
 0x2f3   :  { %vm1497_vm2 = vcmp.eq.s32.totalorder %v1459_v30, 1  ;;  %vm1496_vm4 = vcmp.eq.s32.totalorder %v4554_v61, 1 }
 0x2f4   :  { %vm4716_vm5 = vmand %vm1497_vm2, %vm1417_vm14  ;;  %vm1418_vm14 = vcmp.lt.s32.totalorder %v4095_v38, %v4690_v1 }
 0x2f5   :  { %vm4723_vm7 = vmand %vm1496_vm4, %vm1416_vm8  ;;  %vm1420_vm4 = vcmp.lt.s32.totalorder %v4116_v52, %v4690_v1 }
 0x2f6   :  { %v4590_v16 = vpop.permute.xlu1 %1461  ;;  %v1465_v27 = vpop.permute.xlu0 %1464  ;;  %v6291_v24 = vsel %vm4723_vm7, 4294967295, %v6290_v24 }
 0x2f7   :  { %vm1499_vm1 = vcmp.eq.s32.totalorder %v1465_v27, 1  ;;  %vm1498_vm11 = vcmp.eq.s32.totalorder %v4590_v16, 1 }
 0x2f8   :  { %vm4730_vm9 = vmand %vm1499_vm1, %vm1419_vm0  ;;  %vm1422_vm1 = vcmp.lt.s32.totalorder %v4209_v9, %v4690_v1 }
 0x2f9   :  { %vm4736_vm13 = vmand %vm1498_vm11, %vm1418_vm14  ;;  %vm1421_vm11 = vcmp.lt.s32.totalorder %v4260_v54, %v4690_v1  ;;  %v1529_v54 = vsel %vm4716_vm5, 1, %v5922_v15  ;;  %vm1428_vm5 = vcmp.lt.s32.totalorder %v6236_v34, %v4690_v1 }
 0x2fa   :  { %v4630_v49 = vpop.permute.xlu1 %1467 }
 0x2fb   :  { %vm1500_vm6 = vcmp.eq.s32.totalorder %v4630_v49, 1 }
 0x2fc   :  { %vm4742_vm10 = vmand %vm1500_vm6, %vm1420_vm4  ;;  %vm1424_vm6 = vcmp.lt.s32.totalorder %v4197_v26, %v4690_v1  ;;  %v1525_v26 = vsel %vm4700_vm3, 1, %v5922_v15 }
 0x2fd   :  { %v1532_v35 = vsel %vm4742_vm10, 1, %v5922_v15  ;;  %v1541_v60 = vadd.s32 %v1529_v54, %v1525_v26  ;;  %vm6312_vm10 = vnez %v6291_v24 }
 0x2fe   :  { %v1474_v19 = vpop.permute.xlu1 %1473 }
 0x2ff   :  { %vm1502_vm2 = vcmp.eq.s32.totalorder %v1474_v19, 1 }
 0x300   :  { %vm4748_vm7 = vmand %vm1502_vm2, %vm1422_vm1  ;;  %vm1423_vm2 = vcmp.lt.s32.totalorder %v4288_v2, %v4690_v1  ;;  %v1531_v2 = vsel %vm4730_vm9, 1, %v5922_v15 }
 0x301   :  { %v1534_v44 = vsel %vm4748_vm7, 1, %v5922_v15 }
 0x302   :  { %v1480_v39 = vpop.permute.xlu1 %1479  ;;  %v1471_v46 = vpop.permute.xlu0 %1470 }
 0x303   :  { %vm1501_vm8 = vcmp.eq.s32.totalorder %v1471_v46, 1  ;;  %vm1504_vm0 = vcmp.eq.s32.totalorder %v1480_v39, 1  ;;  %v1528_v39 = vsel %vm6312_vm10, 1, %v5922_v15 }
 0x304   :  { %vm4754_vm12 = vmand %vm1501_vm8, %vm1421_vm11  ;;  %vm1426_vm11 = vcmp.lt.s32.totalorder %v4256_v40, %v4690_v1  ;;  %v1530_v40 = vsel %vm4736_vm13, 1, %v5922_v15  ;;  %vm6311_vm13 = vnez %v6287_v17  ;;  %v1544_v45 = vadd.s32 %v1532_v35, %v1528_v39 }
 0x305   :  { %vm4760_vm15 = vmand %vm1504_vm0, %vm1424_vm6  ;;  %v1533_v20 = vsel %vm4754_vm12, 1, %v5922_v15  ;;  %vm6310_vm6 = vnez %v6285_v12  ;;  %v2049_v35 = vsub.s32 1, %v4024_v41 }
 0x306   :  { %v1486_v59 = vpop.permute.xlu1 %1485  ;;  %v1477_v29 = vpop.permute.xlu0 %1476  ;;  %v1526_v34 = vsel %vm6310_vm6, 1, %v5922_v15  ;;  %v1536_v51 = vsel %vm4760_vm15, 1, %v5922_v15  ;;  %vm1427_vm15 = vcmp.lt.s32.totalorder %v6240_v42, %v4690_v1 }
 0x307   :  { %vm1503_vm14 = vcmp.eq.s32.totalorder %v1477_v29, 1  ;;  %vm1506_vm4 = vcmp.eq.s32.totalorder %v1486_v59, 1  ;;  %v1542_v46 = vadd.s32 %v1530_v40, %v1526_v34  ;;  %v1545_v59 = vadd.s32 %v1541_v60, %v1533_v20 }
 0x308   :  { %vm4769_vm8 = vmand %vm1503_vm14, %vm1423_vm2  ;;  %vm1425_vm14 = vcmp.lt.s32.totalorder %v6238_v53, %v4690_v1  ;;  %v1527_v53 = vsel %vm6311_vm13, 1, %v5922_v15  ;;  %v1548_v4 = vadd.s32 %v1544_v45, %v1536_v51  ;;  %v2083_v20 = vsub.s32 3, %v4024_v41  ;;  %v6318_v51 = vld [vmem:[#allocation17_spill] sm:$0xff] }
 0x309   :  { %vm4781_vm0 = vmand %vm1506_vm4, %vm1426_vm11  ;;  %v1535_v0 = vsel %vm4769_vm8, 1, %v5922_v15  ;;  %v1543_v25 = vadd.s32 %v1531_v2, %v1527_v53  ;;  %v1546_v17 = vadd.s32 %v1542_v46, %v1534_v44  ;;  %vm6314_vm8 = vnez %v6241_v37 }
 0x30a   :  { %v1492_v38 = vpop.permute.xlu1 %1491  ;;  %v1538_v56 = vsel %vm4781_vm0, 1, %v5922_v15  ;;  %vm6315_vm11 = vnez %v6239_v7  ;;  %vm6316_vm0 = vnez %v6176_v10  ;;  %v2781_v10 = vld [vmem:[%s5724_s1] sm:$0xf]  ;;  %vm6322_vm13 = vnez %v6162_v14 }
 0x30b   :  { %vm1508_vm1 = vcmp.eq.s32.totalorder %v1492_v38, 1  ;;  %v1547_v24 = vadd.s32 %v1543_v25, %v1535_v0  ;;  %v1550_v16 = vadd.s32 %v1546_v17, %v1538_v56  ;;  %v1082_v38 = vrot.slane %v1081_v58, 2 }
 0x30c   :  { %vm4798_vm3 = vmand %vm1508_vm1, %vm1428_vm5  ;;  %vm6313_vm1 = vnez %v6237_v32  ;;  %vm6317_vm5 = vnez %v6171_v21  ;;  %v4868_v0 = vrot.slane %v2781_v10, %v6318_v51  ;;  %v6320_v21 = vld [vmem:[#allocation16_spill] sm:$0xff] }
 0x30d   :  { %v1540_v12 = vsel %vm4798_vm3, 1, %v5922_v15  ;;  %v1083_v54 = vadd.s32 %v1082_v38, %v1081_v58  ;;  %vm6319_vm3 = vnez %v6168_v43 }
 0x30e   :  { %v1552_v63 = vadd.s32 %v1548_v4, %v1540_v12  ;;  %v4893_v12 = vrot.slane %v2781_v10, %v2083_v20 }
 0x30f   :  { %v1084_v2 = vrot.slane %v1083_v54, 1 }
 0x311   :  { %v1085_v8 = vadd.s32 %v1084_v2, %v1083_v54 }
 0x312   :  { %v1483_v11 = vpop.permute.xlu0 %1482 }
 0x313   :  { %vm1505_vm9 = vcmp.eq.s32.totalorder %v1483_v11, 1  ;;  %vm1804_vm2 = vcmp.lt.s32.totalorder %v1085_v8, 8  ;;  %v2020_v44 = vmul.u32 4, %v1085_v8 }
 0x314   :  { %vm1521_vm4 = vmand %vm1505_vm9, %vm1425_vm14  ;;  %vm6321_vm9 = vnez %v6320_v21 }
 0x315   :  { %v1537_v48 = vsel %vm1521_vm4, 1, %v5922_v15  ;;  %vm6324_vm4 = vnez %v6164_v23 }
 0x316   :  { %v1489_v36 = vpop.permute.xlu0 %1488  ;;  %v1549_v61 = vadd.s32 %v1545_v59, %v1537_v48  ;;  %v4887_v59 = vrot.slane %v2781_v10, %v2049_v35 }
 0x317   :  { %vm1507_vm12 = vcmp.eq.s32.totalorder %v1489_v36, 1  ;;  %v6323_v36 = vsub.s32 2, %v4024_v41 }
 0x318   :  { %vm1523_vm7 = vmand %vm1507_vm12, %vm1427_vm15  ;;  %v1553_v30 = vadd.s32 %v1550_v16, %v1549_v61  ;;  %vm6325_vm15 = vnez %v6166_v57 }
 0x319   :  { %v1539_v29 = vsel %vm1523_vm7, 1, %v5922_v15  ;;  %v4891_v56 = vrot.slane %v2781_v10, %v6323_v36 }
 0x31a   :  { %v1551_v49 = vadd.s32 %v1547_v24, %v1539_v29 }
 0x31c   :  { %v1554_v52 = vadd.s32 %v1552_v63, %v1551_v49 }
 0x31e   :  { %v1555_v9 = vadd.s32 %v1554_v52, %v1553_v30 }
 0x320   :  { %v1556_v19 = vrot.slane %v1555_v9, 4 }
 0x322   :  { %v1557_v26 = vadd.s32 %v1556_v19, %v1555_v9 }
 0x324   :  { %v1558_v1 = vrot.slane %v1557_v26, 2 }
 0x326   :  { %v1559_v42 = vadd.s32 %v1558_v1, %v1557_v26 }
 0x328   :  { %v1560_v11 = vrot.slane %v1559_v42, 1 }
 0x32a   :  { %v4830_v40 = vadd.s32 %v1560_v11, %v1559_v42 }
 0x32c   :  { %v4837_v27 = vsel %vm6313_vm1, %v4830_v40, 1073741824  ;;  %v4842_v58 = vsel %vm6314_vm8, %v4830_v40, 1073741824  ;;  %v4847_v34 = vsel %vm6315_vm11, %v4830_v40, 1073741824  ;;  %v4852_v53 = vsel %vm6316_vm0, %v4830_v40, 1073741824 }
 0x32d   :  { %v1789_v60 = vshra.s32 %v4837_v27, 16  ;;  %v1775_v32 = vshra.s32 %v4842_v58, 16  ;;  %v1747_v39 = vshra.s32 %v4847_v34, 16  ;;  %v1719_v37 = vshra.s32 %v4852_v53, 16 }
 0x32e   :  { %v4861_v7 = vsel %vm6317_vm5, %v4830_v40, 1073741824  ;;  %vm1802_vm14 = vcmp.lt.s32.totalorder %v4830_v40, 64  ;;  %v4877_v46 = vsel %vm6319_vm3, %v4830_v40, 1073741824  ;;  %v4884_v45 = vsel %vm6322_vm13, %v4830_v40, 1073741824 }
 0x32f   :  { %v4870_v48 = vcvt.s32.f32 %v1789_v60  ;;  %v4872_v25 = vcvt.s32.f32 %v1775_v32  ;;  %vm1803_vm6 = vmand %vm6321_vm9, %vm1802_vm14  ;;  %v4898_v43 = vsel %vm6324_vm4, %v4830_v40, 1073741824  ;;  %v4902_v14 = vcvt.s32.f32 %v1747_v39 }
 0x330   :  { %vm1805_vm10 = vmand %vm1803_vm6, %vm1804_vm2  ;;  %v4904_v17 = vcvt.s32.f32 %v1719_v37  ;;  %v1761_v4 = vshra.s32 %v4861_v7, 16  ;;  %v1691_v61 = vshra.s32 %v4877_v46, 16  ;;  %v1733_v23 = vshra.s32 %v4884_v45, 16 }
 0x331   :  { %1792 = vmin.xlane.f32.xlu1 %v4870_v48  ;;  %1778 = vmin.xlane.f32.xlu0 %v4872_v25  ;;  %v2021_v24 = vsel %vm1805_vm10, %v2020_v44, 32  ;;  %v1663_v38 = vshra.s32 %v4898_v43, 16  ;;  %v4916_v30 = vsel %vm6325_vm15, %v4830_v40, 1073741824  ;;  %vm6326_vm2 = vnez %v6160_v22 }
 0x332   :  { %v4909_v29 = vrot.slane %v2021_v24, %v6318_v51  ;;  %v2038_v16 = vadd.s32 1, %v2021_v24  ;;  %v2055_v63 = vadd.s32 2, %v2021_v24  ;;  %v2072_v49 = vadd.s32 3, %v2021_v24 }
 0x333   :  { %v4928_v9 = vsel %vm6326_vm2, %v4830_v40, 1073741824  ;;  %v4940_v2 = vcvt.s32.f32 %v1761_v4  ;;  %v4942_v1 = vcvt.s32.f32 %v1691_v61  ;;  %v1705_v32 = vshra.s32 %v4916_v30, 16 }
 0x334   :  { %vm2026_vm12 = vcmp.eq.s32.totalorder %v4024_v41, %v4909_v29  ;;  %vm2027_vm7 = vcmp.eq.s32.totalorder %v4160_v62, %v4909_v29  ;;  %v4923_v52 = vrot.slane %v2038_v16, %v6318_v51  ;;  %v4935_v19 = vrot.slane %v2055_v63, %v6318_v51 }
 0x335   :  { %1750 = vmin.xlane.f32.xlu0 %v4902_v14  ;;  %1722 = vmin.xlane.f32.xlu1 %v4904_v17  ;;  %v2034_v57 = vsel %vm2026_vm12, %v4868_v0, 0.0  ;;  %v2035_v54 = vsel %vm2027_vm7, %v4868_v0, 0.0  ;;  %v4938_v26 = vrot.slane %v2072_v49, %v6318_v51  ;;  %v4965_v39 = vcvt.s32.f32 %v1733_v23 }
 0x336   :  { %vm2043_vm1 = vcmp.eq.s32.totalorder %v4024_v41, %v4923_v52  ;;  %vm2044_vm8 = vcmp.eq.s32.totalorder %v4160_v62, %v4923_v52  ;;  %vm2060_vm11 = vcmp.eq.s32.totalorder %v4024_v41, %v4935_v19  ;;  %vm2061_vm0 = vcmp.eq.s32.totalorder %v4160_v62, %v4935_v19 }
 0x337   :  { %v2051_v22 = vsel %vm2043_vm1, %v4887_v59, %v2034_v57  ;;  %v2052_v42 = vsel %vm2044_vm8, %v4887_v59, %v2035_v54  ;;  %vm2077_vm5 = vcmp.eq.s32.totalorder %v4024_v41, %v4938_v26  ;;  %vm2078_vm14 = vcmp.eq.s32.totalorder %v4160_v62, %v4938_v26 }
 0x338   :  { %v2068_v8 = vsel %vm2060_vm11, %v4891_v56, %v2051_v22  ;;  %v2069_v11 = vsel %vm2061_vm0, %v4891_v56, %v2052_v42  ;;  %v4967_v37 = vcvt.s32.f32 %v1663_v38  ;;  %v1635_v44 = vshra.s32 %v4928_v9, 16 }
 0x339   :  { %1764 = vmin.xlane.f32.xlu0 %v4940_v2  ;;  %1694 = vmin.xlane.f32.xlu1 %v4942_v1  ;;  %v2085_v35 = vsel %vm2077_vm5, %v4893_v12, %v2068_v8  ;;  %v2086_v20 = vsel %vm2078_vm14, %v4893_v12, %v2069_v11  ;;  %vm6327_vm3 = vnez %v6148_v5  ;;  %vm6328_vm9 = vnez %v6140_v6 }
 0x33a   :  { %v2089_v60 = vpack.c.bf16 %v2086_v20, %v2085_v35  ;;  %v4973_v51 = vsel %vm6327_vm3, %v4830_v40, 1073741824  ;;  %v4978_v21 = vsel %vm6328_vm9, %v4830_v40, 1073741824  ;;  %v4982_v24 = vcvt.s32.f32 %v1705_v32 }
 0x33b   :  { %v4984_v61 = vcvt.s32.f32 %v1635_v44  ;;  %v1677_v16 = vshra.s32 %v4973_v51, 16  ;;  %v1607_v5 = vshra.s32 %v4978_v21, 16  ;;  %vm6329_vm6 = vnez %v6146_v50 }
 0x33c   :  { %2632 = vmatprep.mubr.bf16.mxu1 %v2089_v60  ;;  %v2091_v10 = vunpack.c.l.bf16 %v2089_v60  ;;  %v2092_v62 = vunpack.c.h.bf16 %v2089_v60  ;;  %v4991_v6 = vsel %vm6329_vm6, %v4830_v40, 1073741824  ;;  %vm6330_vm13 = vnez %v6138_v28 }
 0x33d   :  { %1736 = vmin.xlane.f32.xlu0 %v4965_v39  ;;  %1666 = vmin.xlane.f32.xlu1 %v4967_v37  ;;  %v4996_v63 = vsel %vm6330_vm13, %v4830_v40, 1073741824  ;;  %vm6331_vm10 = vnez %v6143_v55  ;;  %v1649_v50 = vshra.s32 %v4991_v6, 16  ;;  %v5006_v38 = vcvt.s32.f32 %v1677_v16 }
 0x33e   :  { %v2095_v36 = vsub.f32 %v2085_v35, %v2091_v10  ;;  %v2096_v4 = vsub.f32 %v2086_v20, %v2092_v62  ;;  %v5003_v49 = vsel %vm6331_vm10, %v4830_v40, 1073741824  ;;  %v5008_v57 = vcvt.s32.f32 %v1607_v5 }
 0x33f   :  { %v1579_v28 = vshra.s32 %v4996_v63, 16  ;;  %v1621_v54 = vshra.s32 %v5003_v49, 16  ;;  %vm6332_vm4 = vnez %v6156_v3  ;;  %v5019_v22 = vcvt.s32.f32 %v1649_v50 }
 0x340   :  { %v2099_v23 = vpack.c.bf16 %v2096_v4, %v2095_v36  ;;  %v5017_v55 = vsel %vm6332_vm4, %v4830_v40, 1073741824  ;;  %vm2028_vm15 = vcmp.eq.s32.totalorder %v4059_v31, %v4909_v29  ;;  %vm2029_vm12 = vcmp.eq.s32.totalorder %v4074_v47, %v4909_v29 }
 0x341   :  { %1708 = vmin.xlane.f32.xlu0 %v4982_v24  ;;  %1638 = vmin.xlane.f32.xlu1 %v4984_v61  ;;  %v5021_v42 = vcvt.s32.f32 %v1579_v28  ;;  %vm2045_vm7 = vcmp.eq.s32.totalorder %v4059_v31, %v4923_v52  ;;  %v5029_v8 = vcvt.s32.f32 %v1621_v54  ;;  %v1593_v11 = vshra.s32 %v5017_v55, 16 }
 0x342   :  { %2612 = vmatprep.mubr.bf16.mxu0 %v2099_v23  ;;  %v2036_v3 = vsel %vm2028_vm15, %v4868_v0, 0.0  ;;  %v2037_v40 = vsel %vm2029_vm12, %v4868_v0, 0.0  ;;  %vm2046_vm2 = vcmp.eq.s32.totalorder %v4074_v47, %v4923_v52  ;;  %vm2062_vm1 = vcmp.eq.s32.totalorder %v4059_v31, %v4935_v19 }
 0x343   :  { %v2053_v29 = vsel %vm2045_vm7, %v4887_v59, %v2036_v3  ;;  %v2101_v35 = vunpack.c.l.bf16 %v2099_v23  ;;  %v2054_v20 = vsel %vm2046_vm2, %v4887_v59, %v2037_v40  ;;  %vm2063_vm8 = vcmp.eq.s32.totalorder %v4074_v47, %v4935_v19 }
 0x344   :  { %v2070_v0 = vsel %vm2062_vm1, %v4891_v56, %v2053_v29  ;;  %vm2079_vm11 = vcmp.eq.s32.totalorder %v4059_v31, %v4938_v26  ;;  %v2071_v60 = vsel %vm2063_vm8, %v4891_v56, %v2054_v20  ;;  %vm2080_vm0 = vcmp.eq.s32.totalorder %v4074_v47, %v4938_v26 }
 0x345   :  { %1680 = vmin.xlane.f32.xlu0 %v5006_v38  ;;  %1610 = vmin.xlane.f32.xlu1 %v5008_v57  ;;  %v2087_v52 = vsel %vm2079_vm11, %v4893_v12, %v2070_v0  ;;  %v2102_v32 = vunpack.c.h.bf16 %v2099_v23  ;;  %v2088_v44 = vsel %vm2080_vm0, %v4893_v12, %v2071_v60  ;;  %v5052_v10 = vsub.f32 %v2095_v36, %v2101_v35 }
 0x346   :  { %v5055_v59 = vpack.c.bf16 %v2088_v44, %v2087_v52  ;;  %v5059_v62 = vcvt.s32.f32 %v1593_v11  ;;  %v1788_v28 = vand.u32 65535, %v4837_v27  ;;  %v1774_v54 = vand.u32 65535, %v4842_v58 }
 0x347   :  { %v5057_v19 = vsub.f32 %v2096_v4, %v2102_v32  ;;  %v1746_v35 = vand.u32 65535, %v4847_v34  ;;  %v1718_v32 = vand.u32 65535, %v4852_v53 }
 0x348   :  { %v2093_v31 = vunpack.c.l.bf16 %v5055_v59  ;;  %v2094_v56 = vunpack.c.h.bf16 %v5055_v59  ;;  %v1790_v40 = vcvt.s32.f32 %v1788_v28  ;;  %v1776_v29 = vcvt.s32.f32 %v1774_v54 }
 0x349   :  { %1652 = vmin.xlane.f32.xlu0 %v5019_v22  ;;  %1582 = vmin.xlane.f32.xlu1 %v5021_v42  ;;  %v2109_v47 = vpack.c.bf16 %v5057_v19, %v5052_v10  ;;  %v1748_v60 = vcvt.s32.f32 %v1746_v35 }
 0x34a   :  { %v2097_v12 = vsub.f32 %v2087_v52, %v2093_v31  ;;  %v2098_v26 = vsub.f32 %v2088_v44, %v2094_v56  ;;  %v1760_v52 = vand.u32 65535, %v4861_v7  ;;  %v1720_v31 = vcvt.s32.f32 %v1718_v32 }
 0x34b   :  { %v1732_v56 = vand.u32 65535, %v4884_v45  ;;  %v1690_v7 = vand.u32 65535, %v4877_v46  ;;  %v1704_v45 = vand.u32 65535, %v4916_v30  ;;  %v1662_v46 = vand.u32 65535, %v4898_v43 }
 0x34c   :  { %v5066_v36 = vpack.c.bf16 %v2098_v26, %v2097_v12  ;;  %v1762_v44 = vcvt.s32.f32 %v1760_v52  ;;  %v1676_v30 = vand.u32 65535, %v4973_v51  ;;  %v1634_v43 = vand.u32 65535, %v4928_v9 }
 0x34d   :  { %1624 = vmin.xlane.f32.xlu0 %v5029_v8  ;;  %v1706_v54 = vcvt.s32.f32 %v1704_v45  ;;  %v1648_v51 = vand.u32 65535, %v4991_v6  ;;  %v1606_v9 = vand.u32 65535, %v4978_v21  ;;  %v1620_v6 = vand.u32 65535, %v5003_v49 }
 0x34e   :  { %v2103_v16 = vunpack.c.l.bf16 %v5066_v36  ;;  %v2104_v4 = vunpack.c.h.bf16 %v5066_v36  ;;  %v1578_v21 = vand.u32 65535, %v4996_v63 }
 0x34f   :  { %v1650_v32 = vcvt.s32.f32 %v1648_v51 }
 0x350   :  { %v5070_v5 = vsub.f32 %v2097_v12, %v2103_v16  ;;  %v5072_v23 = vsub.f32 %v2098_v26, %v2104_v4  ;;  %v1734_v26 = vcvt.s32.f32 %v1732_v56  ;;  %v1692_v16 = vcvt.s32.f32 %v1690_v7 }
 0x351   :  { %1596 = vmin.xlane.f32.xlu0 %v5059_v62  ;;  %v1580_v56 = vcvt.s32.f32 %v1578_v21  ;;  %v1592_v7 = vand.u32 65535, %v5017_v55 }
 0x352   :  { %v2110_v50 = vpack.c.bf16 %v5072_v23, %v5070_v5 }
 0x3ba   :  { %v5078_v11 = vpop.xlane.xlu1 %1792  ;;  %v5080_v3 = vpop.xlane.xlu0 %1778 }
 0x3bb   :  { %vm1794_vm5 = vcmp.eq.f32.partialorder %v4870_v48, %v5078_v11  ;;  %vm1780_vm14 = vcmp.eq.f32.partialorder %v4872_v25, %v5080_v3 }
 0x3bc   :  { %v1795_v20 = vsel %vm1794_vm5, %v1790_v40, inf  ;;  %v1781_v0 = vsel %vm1780_vm14, %v1776_v29, inf  ;;  %v1664_v40 = vcvt.s32.f32 %v1662_v46 }
 0x3bd   :  { %1796 = vmin.xlane.f32.xlu0 %v1795_v20  ;;  %1782 = vmin.xlane.f32.xlu1 %v1781_v0  ;;  %v1678_v20 = vcvt.s32.f32 %v1676_v30  ;;  %v1636_v0 = vcvt.s32.f32 %v1634_v43 }
 0x3be   :  { %v5087_v27 = vpop.xlane.xlu0 %1750  ;;  %v5089_v58 = vpop.xlane.xlu1 %1722 }
 0x3bf   :  { %vm1752_vm3 = vcmp.eq.f32.partialorder %v4902_v14, %v5087_v27  ;;  %vm1724_vm9 = vcmp.eq.f32.partialorder %v4904_v17, %v5089_v58  ;;  %v1757_v55 = vcvt.f32.s32 %v5087_v27  ;;  %v6334_v27 = vld [vmem:[#allocation66_spill] sm:$0xff] }
 0x3c0   :  { %v1753_v34 = vsel %vm1752_vm3, %v1748_v60, inf  ;;  %v1725_v14 = vsel %vm1724_vm9, %v1720_v31, inf  ;;  %v1622_v31 = vcvt.s32.f32 %v1620_v6  ;;  %vm1853_vm3 = vcmp.lt.s32.totalorder %v4441_v18, 8 }
 0x3c1   :  { %1754 = vmin.xlane.f32.xlu1 %v1753_v34  ;;  %v1608_v34 = vcvt.s32.f32 %v1606_v9  ;;  %v1758_v30 = vshll.u32 %v1757_v55, 16  ;;  %vm6333_vm9 = vnez %v6120_v33  ;;  %v6335_v9 = vld [vmem:[#allocation22_spill] sm:$0xff] }
 0x3c2   :  { %v5097_v48 = vpop.xlane.xlu0 %1764  ;;  %v5099_v25 = vpop.xlane.xlu1 %1694 }
 0x3c3   :  { %vm1766_vm6 = vcmp.eq.f32.partialorder %v4940_v2, %v5097_v48  ;;  %vm1696_vm13 = vcmp.eq.f32.partialorder %v4942_v1, %v5099_v25 }
 0x3c4   :  { %v1767_v53 = vsel %vm1766_vm6, %v1762_v44, inf  ;;  %v1697_v4 = vsel %vm1696_vm13, %v1692_v16, inf  ;;  %vm1852_vm13 = vcmp.lt.s32.totalorder %v6334_v27, 8 }
 0x3c5   :  { %1768 = vmin.xlane.f32.xlu0 %v1767_v53  ;;  %1726 = vmin.xlane.f32.xlu1 %v1725_v14  ;;  %v1594_v53 = vcvt.s32.f32 %v1592_v7  ;;  %v1799_v14 = vcvt.f32.s32 %v5078_v11  ;;  %v1771_v11 = vcvt.f32.s32 %v5097_v48 }
 0x3c6   :  { %v5107_v17 = vpop.xlane.xlu0 %1736  ;;  %v5109_v12 = vpop.xlane.xlu1 %1666 }
 0x3c7   :  { %vm1738_vm10 = vcmp.eq.f32.partialorder %v4965_v39, %v5107_v17  ;;  %vm1668_vm4 = vcmp.eq.f32.partialorder %v4967_v37, %v5109_v12  ;;  %v1800_v45 = vshll.u32 %v1799_v14, 16  ;;  %v1743_v48 = vcvt.f32.s32 %v5107_v17  ;;  %v6338_v17 = vld [vmem:[#allocation29_spill] sm:$0xff] }
 0x3c8   :  { %v1739_v2 = vsel %vm1738_vm10, %v1734_v26, inf  ;;  %v1669_v29 = vsel %vm1668_vm4, %v1664_v40, inf  ;;  %v1785_v26 = vcvt.f32.s32 %v5080_v3  ;;  %vm6336_vm4 = vnez %v6335_v9 }
 0x3c9   :  { %1740 = vmin.xlane.f32.xlu0 %v1739_v2  ;;  %1698 = vmin.xlane.f32.xlu1 %v1697_v4  ;;  %v1772_v18 = vshll.u32 %v1771_v11, 16  ;;  %v6349_v11 = vld [vmem:[#allocation60_spill] sm:$0xff] }
 0x3ca   :  { %v5117_v1 = vpop.xlane.xlu0 %1708  ;;  %v5119_v28 = vpop.xlane.xlu1 %1638  ;;  %v1786_v46 = vshll.u32 %v1785_v26, 16 }
 0x3cb   :  { %vm1710_vm15 = vcmp.eq.f32.partialorder %v4982_v24, %v5117_v1  ;;  %vm1640_vm12 = vcmp.eq.f32.partialorder %v4984_v61, %v5119_v28 }
 0x3cc   :  { %v1711_v39 = vsel %vm1710_vm15, %v1706_v54, inf  ;;  %v1641_v60 = vsel %vm1640_vm12, %v1636_v0, inf }
 0x3cd   :  { %1712 = vmin.xlane.f32.xlu0 %v1711_v39  ;;  %1670 = vmin.xlane.f32.xlu1 %v1669_v29 }
 0x3ce   :  { %v5127_v37 = vpop.xlane.xlu0 %1680  ;;  %v5129_v35 = vpop.xlane.xlu1 %1610 }
 0x3cf   :  { %vm1682_vm7 = vcmp.eq.f32.partialorder %v5006_v38, %v5127_v37  ;;  %vm1612_vm2 = vcmp.eq.f32.partialorder %v5008_v57, %v5129_v35 }
 0x3d0   :  { %v1683_v24 = vsel %vm1682_vm7, %v1678_v20, inf  ;;  %v1613_v44 = vsel %vm1612_vm2, %v1608_v34, inf }
 0x3d1   :  { %1684 = vmin.xlane.f32.xlu0 %v1683_v24  ;;  %1642 = vmin.xlane.f32.xlu1 %v1641_v60  ;;  %v6337_v60 = vld [vmem:[#allocation65_spill] sm:$0xff] }
 0x3d2   :  { %v5137_v61 = vpop.xlane.xlu0 %1652  ;;  %v5139_v52 = vpop.xlane.xlu1 %1582  ;;  %vm1850_vm2 = vcmp.lt.s32.totalorder %v6337_v60, 8  ;;  %v6353_v60 = vld [vmem:[#allocation15_spill] sm:$0xff] }
 0x3d3   :  { %vm1654_vm1 = vcmp.eq.f32.partialorder %v5019_v22, %v5137_v61  ;;  %vm1584_vm8 = vcmp.eq.f32.partialorder %v5021_v42, %v5139_v52 }
 0x3d4   :  { %v1655_v38 = vsel %vm1654_vm1, %v1650_v32, inf  ;;  %v1585_v49 = vsel %vm1584_vm8, %v1580_v56, inf  ;;  %vm6339_vm1 = vnez %v6338_v17  ;;  %v1673_v32 = vcvt.f32.s32 %v5109_v12 }
 0x3d5   :  { %1656 = vmin.xlane.f32.xlu0 %v1655_v38  ;;  %1614 = vmin.xlane.f32.xlu1 %v1613_v44  ;;  %v1744_v38 = vshll.u32 %v1743_v48, 16  ;;  %v1715_v44 = vcvt.f32.s32 %v5117_v1 }
 0x3d6   :  { %v5147_v57 = vpop.xlane.xlu0 %1624  ;;  %v1674_v14 = vshll.u32 %v1673_v32, 16 }
 0x3d7   :  { %vm1626_vm11 = vcmp.eq.f32.partialorder %v5029_v8, %v5147_v57  ;;  %v1716_v55 = vshll.u32 %v1715_v44, 16  ;;  %v1589_v44 = vcvt.f32.s32 %v5139_v52  ;;  %v6358_v52 = vld [vmem:[#allocation59_spill] sm:$0xff] }
 0x3d8   :  { %v1627_v63 = vsel %vm1626_vm11, %v1622_v31, inf }
 0x3d9   :  { %1628 = vmin.xlane.f32.xlu0 %v1627_v63  ;;  %1586 = vmin.xlane.f32.xlu1 %v1585_v49  ;;  %v6340_v49 = vld [vmem:[#allocation64_spill] sm:$0xff] }
 0x3da   :  { %v5152_v22 = vpop.xlane.xlu0 %1596 }
 0x3db   :  { %vm1598_vm0 = vcmp.eq.f32.partialorder %v5059_v62, %v5152_v22  ;;  %v1729_v62 = vcvt.f32.s32 %v5089_v58  ;;  %v1701_v58 = vcvt.f32.s32 %v5099_v25 }
 0x3dc   :  { %v1599_v42 = vsel %vm1598_vm0, %v1594_v53, inf  ;;  %v6341_v53 = vld [vmem:[#allocation50_spill] sm:$0xff] }
 0x3dd   :  { %1600 = vmin.xlane.f32.xlu0 %v1599_v42  ;;  %v1730_v29 = vshll.u32 %v1729_v62, 16  ;;  %v1702_v21 = vshll.u32 %v1701_v58, 16  ;;  %v6343_v42 = vld [vmem:[#allocation62_spill] sm:$0xff] }
 0x446   :  { %v1797_v16 = vpop.xlane.xlu0 %1796  ;;  %v1783_v8 = vpop.xlane.xlu1 %1782 }
 0x447   :  { %v1798_v2 = vcvt.f32.s32 %v1797_v16  ;;  %v1784_v4 = vcvt.f32.s32 %v1783_v8  ;;  %v1645_v16 = vcvt.f32.s32 %v5119_v28  ;;  %v1687_v8 = vcvt.f32.s32 %v5127_v37  ;;  %v6346_v28 = vld [vmem:[#allocation63_spill] sm:$0xff] }
 0x449   :  { %v5159_v54 = vadd.s32 %v1800_v45, %v1798_v2  ;;  %v5161_v40 = vadd.s32 %v1786_v46, %v1784_v4  ;;  %v6344_v4 = vld [vmem:[#allocation52_spill] sm:$0xff]  ;;  %v1646_v58 = vshll.u32 %v1645_v16, 16  ;;  %v1688_v48 = vshll.u32 %v1687_v8, 16 }
 0x44a   :  { %v1755_v43 = vpop.xlane.xlu1 %1754  ;;  %v1590_v8 = vshll.u32 %v1589_v44, 16 }
 0x44b   :  { %vm1821_vm5 = vcmp.lt.s32.totalorder %v5159_v54, 64  ;;  %vm1820_vm14 = vcmp.lt.s32.totalorder %v5161_v40, 64  ;;  %v1756_v3 = vcvt.f32.s32 %v1755_v43  ;;  %v6347_v43 = vld [vmem:[#allocation13_spill] sm:$0xff] }
 0x44c   :  { %vm1837_vm6 = vmand %vm6333_vm9, %vm1821_vm5 }
 0x44d   :  { %v5171_v39 = vadd.s32 %v1758_v30, %v1756_v3  ;;  %vm1869_vm10 = vmand %vm1837_vm6, %vm1853_vm3  ;;  %vm6342_vm3 = vnez %v6341_v53  ;;  %vm1851_vm6 = vcmp.lt.s32.totalorder %v6343_v42, 8  ;;  %v1617_v3 = vcvt.f32.s32 %v5129_v35  ;;  %v6359_v42 = vld [vmem:[#allocation14_spill] sm:$0xff] }
 0x44e   :  { %v1769_v20 = vpop.xlane.xlu0 %1768  ;;  %v1727_v0 = vpop.xlane.xlu1 %1726  ;;  %v1901_v51 = vsel %vm1869_vm10, 1, %v5922_v15  ;;  %vm1836_vm15 = vmand %vm6336_vm4, %vm1820_vm14  ;;  %vm1848_vm14 = vcmp.lt.s32.totalorder %v6340_v49, 8  ;;  %vm6345_vm10 = vnez %v6344_v4 }
 0x44f   :  { %vm1818_vm12 = vcmp.lt.s32.totalorder %v5171_v39, 64  ;;  %v1770_v33 = vcvt.f32.s32 %v1769_v20  ;;  %v1728_v24 = vcvt.f32.s32 %v1727_v0  ;;  %1948 = vperm.xlu0 %2779, %v1901_v51   ;;  %vm1868_vm7 = vmand %vm1836_vm15, %vm1852_vm13  ;;  %v1659_v20 = vcvt.f32.s32 %v5137_v61  ;;  %v6352_v61 = vld [vmem:[#allocation61_spill] sm:$0xff] }
 0x450   :  { %v1900_v25 = vsel %vm1868_vm7, 1, %v5922_v15  ;;  %vm1834_vm8 = vmand %vm6339_vm1, %vm1818_vm12  ;;  %vm6348_vm1 = vnez %v6347_v43  ;;  %v1618_v17 = vshll.u32 %v1617_v3, 16 }
 0x451   :  { %v5186_v34 = vadd.s32 %v1772_v18, %v1770_v33  ;;  %v5188_v6 = vadd.s32 %v1730_v29, %v1728_v24  ;;  %1945 = vperm.xlu1 %2780, %v1900_v25   ;;  %vm1866_vm11 = vmand %vm1834_vm8, %vm1850_vm2  ;;  %vm1846_vm2 = vcmp.lt.s32.totalorder %v6346_v28, 8  ;;  %v6350_v18 = vld [vmem:[#allocation51_spill] sm:$0xff]  ;;  %v6355_v25 = vld [vmem:[#allocation46_spill] sm:$0xff] }
 0x452   :  { %v1741_v31 = vpop.xlane.xlu0 %1740  ;;  %v1699_v56 = vpop.xlane.xlu1 %1698  ;;  %v1898_v7 = vsel %vm1866_vm11, 1, %v5922_v15  ;;  %vm1849_vm11 = vcmp.lt.s32.totalorder %v6349_v11, 8  ;;  %v6365_v11 = vld [vmem:[#allocation55_spill] sm:$0xff] }
 0x453   :  { %vm1819_vm0 = vcmp.lt.s32.totalorder %v5186_v34, 64  ;;  %vm1816_vm5 = vcmp.lt.s32.totalorder %v5188_v6, 64  ;;  %v1742_v63 = vcvt.f32.s32 %v1741_v31  ;;  %v1700_v12 = vcvt.f32.s32 %v1699_v56 }
 0x454   :  { %vm1832_vm9 = vmand %vm6342_vm3, %vm1816_vm5  ;;  %vm6351_vm5 = vnez %v6350_v18  ;;  %v1631_v31 = vcvt.f32.s32 %v5147_v57 }
 0x455   :  { %v5198_v26 = vadd.s32 %v1744_v38, %v1742_v63  ;;  %v5200_v1 = vadd.s32 %v1702_v21, %v1700_v12  ;;  %1939 = vperm.xlu1 %2780, %v1898_v7   ;;  %vm1864_vm13 = vmand %vm1832_vm9, %vm1848_vm14  ;;  %v1660_v38 = vshll.u32 %v1659_v20, 16  ;;  %v6356_v12 = vld [vmem:[#allocation36_spill] sm:$0xff] }
 0x456   :  { %v1713_v45 = vpop.xlane.xlu0 %1712  ;;  %v1671_v46 = vpop.xlane.xlu1 %1670  ;;  %v1896_v2 = vsel %vm1864_vm13, 1, %v5922_v15  ;;  %vm1835_vm4 = vmand %vm6345_vm10, %vm1819_vm0  ;;  %vm1844_vm13 = vcmp.lt.s32.totalorder %v6352_v61, 8  ;;  %vm6354_vm10 = vnez %v6353_v60  ;;  %v6371_v61 = vld [vmem:[#allocation56_spill] sm:$0xff] }
 0x457   :  { %vm1817_vm15 = vcmp.lt.s32.totalorder %v5198_v26, 64  ;;  %vm1814_vm12 = vcmp.lt.s32.totalorder %v5200_v1, 64  ;;  %v1714_v30 = vcvt.f32.s32 %v1713_v45  ;;  %v1672_v62 = vcvt.f32.s32 %v1671_v46  ;;  %1933 = vperm.xlu0 %2779, %v1896_v2   ;;  %vm1867_vm7 = vmand %vm1835_vm4, %vm1851_vm6  ;;  %v6373_v60 = vld [vmem:[#allocation44_spill] sm:$0xff] }
 0x458   :  { %v1899_v37 = vsel %vm1867_vm7, 1, %v5922_v15  ;;  %vm1830_vm8 = vmand %vm6348_vm1, %vm1814_vm12  ;;  %vm1847_vm12 = vcmp.lt.s32.totalorder %v6355_v25, 8  ;;  %vm6357_vm7 = vnez %v6356_v12  ;;  %v1632_v45 = vshll.u32 %v1631_v31, 16  ;;  %v6377_v31 = vld [vmem:[#allocation12_spill] sm:$0xff] }
 0x459   :  { %v5219_v27 = vadd.s32 %v1716_v55, %v1714_v30  ;;  %v5221_v29 = vadd.s32 %v1674_v14, %v1672_v62  ;;  %1942 = vperm.xlu1 %2780, %v1899_v37   ;;  %vm1862_vm0 = vmand %vm1830_vm8, %vm1846_vm2  ;;  %v6361_v14 = vld [vmem:[#allocation43_spill] sm:$0xff]  ;;  %v1603_v46 = vcvt.f32.s32 %v5152_v22  ;;  %v6362_v62 = vld [vmem:[#allocation58_spill] sm:$0xff] }
 0x45a   :  { %v1685_v0 = vpop.xlane.xlu0 %1684  ;;  %v1643_v51 = vpop.xlane.xlu1 %1642  ;;  %v1894_v9 = vsel %vm1862_vm0, 1, %v5922_v15  ;;  %vm1833_vm14 = vmand %vm6351_vm5, %vm1817_vm15  ;;  %vm1842_vm0 = vcmp.lt.s32.totalorder %v6358_v52, 8  ;;  %vm6360_vm5 = vnez %v6359_v42  ;;  %v6364_v22 = vld [vmem:[#allocation45_spill] sm:$0xff] }
 0x45b   :  { %vm1815_vm3 = vcmp.lt.s32.totalorder %v5219_v27, 64  ;;  %vm1812_vm9 = vcmp.lt.s32.totalorder %v5221_v29, 64  ;;  %v1686_v35 = vcvt.f32.s32 %v1685_v0  ;;  %v1644_v33 = vcvt.f32.s32 %v1643_v51  ;;  %1927 = vperm.xlu0 %2779, %v1894_v9   ;;  %vm1865_vm6 = vmand %vm1833_vm14, %vm1849_vm11  ;;  %v6368_v51 = vld [vmem:[#allocation57_spill] sm:$0xff] }
 0x45c   :  { %v1897_v24 = vsel %vm1865_vm6, 1, %v5922_v15  ;;  %vm1828_vm4 = vmand %vm6354_vm10, %vm1812_vm9  ;;  %vm1845_vm9 = vcmp.lt.s32.totalorder %v6361_v14, 8  ;;  %vm6363_vm6 = vnez %v6362_v62  ;;  %v1604_v9 = vshll.u32 %v1603_v46, 16 }
 0x45d   :  { %v5238_v32 = vadd.s32 %v1688_v48, %v1686_v35  ;;  %v5240_v21 = vadd.s32 %v1646_v58, %v1644_v33  ;;  %1936 = vperm.xlu1 %2780, %v1897_v24   ;;  %vm1860_vm15 = vmand %vm1828_vm4, %vm1844_vm13  ;;  %v6367_v48 = vld [vmem:[#allocation42_spill] sm:$0xff]  ;;  %v6370_v35 = vld [vmem:[#allocation41_spill] sm:$0xff] }
 0x45e   :  { %v1657_v56 = vpop.xlane.xlu0 %1656  ;;  %v1615_v7 = vpop.xlane.xlu1 %1614  ;;  %v1892_v63 = vsel %vm1860_vm15, 1, %v5922_v15  ;;  %vm1831_vm2 = vmand %vm6357_vm7, %vm1815_vm3  ;;  %vm1840_vm15 = vcmp.lt.s32.totalorder %v6364_v22, 8  ;;  %vm6366_vm7 = vnez %v6365_v11  ;;  %v6390_v11 = vmov 0 }
 0x45f   :  { %vm1813_vm1 = vcmp.lt.s32.totalorder %v5238_v32, 64  ;;  %vm1810_vm8 = vcmp.lt.s32.totalorder %v5240_v21, 64  ;;  %v1658_v49 = vcvt.f32.s32 %v1657_v56  ;;  %v1616_v53 = vcvt.f32.s32 %v1615_v7  ;;  %1921 = vperm.xlu0 %2779, %v1892_v63   ;;  %vm1863_vm11 = vmand %vm1831_vm2, %vm1847_vm12  ;;  %v6379_v7 = vld [vmem:[#allocation67_spill] sm:$0xff] }
 0x460   :  { %v1895_v57 = vsel %vm1863_vm11, 1, %v5922_v15  ;;  %vm1826_vm14 = vmand %vm6360_vm5, %vm1810_vm8  ;;  %vm1843_vm8 = vcmp.lt.s32.totalorder %v6367_v48, 8  ;;  %vm6369_vm11 = vnez %v6368_v51  ;;  %v2382_v63 = vshrl.u32 %v6379_v7, 16 }
 0x461   :  { %v5258_v55 = vadd.s32 %v1660_v38, %v1658_v49  ;;  %v5260_v16 = vadd.s32 %v1618_v17, %v1616_v53  ;;  %1930 = vperm.xlu1 %2780, %v1895_v57   ;;  %vm1858_vm3 = vmand %vm1826_vm14, %vm1842_vm0  ;;  %v6374_v17 = vld [vmem:[#allocation54_spill] sm:$0xff]  ;;  %v6376_v38 = vld [vmem:[#allocation24_spill] sm:$0xff]  ;;  %v2381_v49 = vand.u32 65535, %v6379_v7 }
 0x462   :  { %v1629_v2 = vpop.xlane.xlu0 %1628  ;;  %v1587_v4 = vpop.xlane.xlu1 %1586  ;;  %v1890_v30 = vsel %vm1858_vm3, 1, %v5922_v15  ;;  %vm1829_vm13 = vmand %vm6363_vm6, %vm1813_vm1  ;;  %vm1841_vm3 = vcmp.lt.s32.totalorder %v6370_v35, 8  ;;  %vm6372_vm6 = vnez %v6371_v61  ;;  %v2384_v12 = vcvt.s32.f32 %v2382_v63  ;;  %v6422_v57 = vld [vmem:[#allocation20_spill] sm:$0xff] }
 0x463   :  { %vm1811_vm10 = vcmp.lt.s32.totalorder %v5258_v55, 64  ;;  %vm1808_vm4 = vcmp.lt.s32.totalorder %v5260_v16, 64  ;;  %v1630_v28 = vcvt.f32.s32 %v1629_v2  ;;  %v1588_v37 = vcvt.f32.s32 %v1587_v4  ;;  %1915 = vperm.xlu0 %2779, %v1890_v30   ;;  %vm1861_vm12 = vmand %vm1829_vm13, %vm1845_vm9 }
 0x464   :  { %v1893_v43 = vsel %vm1861_vm12, 1, %v5922_v15  ;;  %vm1824_vm2 = vmand %vm6366_vm7, %vm1808_vm4  ;;  %vm6375_vm12 = vnez %v6374_v17  ;;  %v2383_v53 = vcvt.s32.f32 %v2381_v49  ;;  %v2862_v2 = vmov 1.0|1.0  }
 0x465   :  { %v5276_v3 = vadd.s32 %v1632_v45, %v1630_v28  ;;  %v5278_v58 = vadd.s32 %v1590_v8, %v1588_v37  ;;  %1924 = vperm.xlu1 %2780, %v1893_v43   ;;  %vm1856_vm1 = vmand %vm1824_vm2, %vm1840_vm15  ;;  %v6384_v45 = vmov 0 }
 0x466   :  { %v1601_v20 = vpop.xlane.xlu0 %1600  ;;  %v1888_v0 = vsel %vm1856_vm1, 1, %v5922_v15  ;;  %vm1827_vm0 = vmand %vm6369_vm11, %vm1811_vm10  ;;  %vm1838_vm10 = vcmp.lt.s32.totalorder %v6373_v60, 8  ;;  %vm1839_vm1 = vcmp.lt.s32.totalorder %v6376_v38, 8 }
 0x467   :  { %vm1809_vm5 = vcmp.lt.s32.totalorder %v5276_v3, 64  ;;  %vm1806_vm14 = vcmp.lt.s32.totalorder %v5278_v58, 64  ;;  %v1602_v18 = vcvt.f32.s32 %v1601_v20  ;;  %1909 = vperm.xlu0 %2779, %v1888_v0   ;;  %vm1859_vm9 = vmand %vm1827_vm0, %vm1843_vm8  ;;  %vm6378_vm8 = vnez %v6377_v31 }
 0x468   :  { %v1891_v33 = vsel %vm1859_vm9, 1, %v5922_v15  ;;  %vm1825_vm13 = vmand %vm6372_vm6, %vm1809_vm5  ;;  %vm1885_vm5 = vcmp.eq.s32.totalorder %v6243_v13, %v5159_v54  ;;  %v6392_v20 = vmov 0 }
 0x469   :  { %v5292_v24 = vadd.s32 %v1604_v9, %v1602_v18  ;;  %1918 = vperm.xlu1 %2780, %v1891_v33   ;;  %vm1857_vm4 = vmand %vm1825_vm13, %vm1841_vm3  ;;  %vm1884_vm3 = vcmp.eq.s32.totalorder %v6243_v13, %v5161_v40  ;;  %v6427_v18 = vld [vmem:[#allocation26_spill] sm:$0xff] }
 0x46a   :  { %v1889_v25 = vsel %vm1857_vm4, 1, %v5922_v15  ;;  %vm1822_vm15 = vmand %vm6375_vm12, %vm1806_vm14 }
 0x46b   :  { %vm1807_vm7 = vcmp.lt.s32.totalorder %v5292_v24, 64  ;;  %vm1854_vm2 = vmand %vm1822_vm15, %vm1838_vm10  ;;  %vm1882_vm10 = vcmp.eq.s32.totalorder %v6243_v13, %v5171_v39 }
 0x46c   :  { %v1886_v44 = vsel %vm1854_vm2, 1, %v5922_v15  ;;  %vm1823_vm11 = vmand %vm6378_vm8, %vm1807_vm7  ;;  %vm1880_vm7 = vcmp.eq.s32.totalorder %v6243_v13, %v5188_v6  ;;  %vm1883_vm8 = vcmp.eq.s32.totalorder %v6243_v13, %v5186_v34 }
 0x46d   :  { %1912 = vperm.xlu1 %2780, %v1889_v25   ;;  %1903 = vperm.xlu0 %2779, %v1886_v44   ;;  %vm1855_vm0 = vmand %vm1823_vm11, %vm1839_vm1  ;;  %v6400_v25 = vmov 0 }
 0x46e   :  { %v1887_v56 = vsel %vm1855_vm0, 1, %v5922_v15 }
 0x471   :  { %1906 = vperm.xlu1 %2780, %v1887_v56   ;;  %v6432_v56 = vld [vmem:[#allocation18_spill] sm:$0xff] }
 0x48c   :  { %2387 = vadd.xlane.f32.xlu0 %v2384_v12 }
 0x495   :  { %2385 = vadd.xlane.f32.xlu1 %v2383_v53 }
 0x4ca   :  { %v1949_v52 = vpop.permute.xlu0 %1948 }
 0x4cb   :  { %vm1965_vm14 = vcmp.eq.s32.totalorder %v1949_v52, 1  ;;  %v6416_v52 = vld [vmem:[#allocation47_spill] sm:$0xff] }
 0x4cc   :  { %vm5308_vm9 = vmand %vm1885_vm5, %vm1965_vm14  ;;  %v1946_v42 = vpop.permute.xlu1 %1945  ;;  %vm1878_vm14 = vcmp.eq.s32.totalorder %v6243_v13, %v5200_v1 }
 0x4cd   :  { %v1997_v14 = vsel %vm5308_vm9, 1, %v5922_v15  ;;  %vm1964_vm6 = vcmp.eq.s32.totalorder %v1946_v42, 1 }
 0x4ce   :  { %vm5317_vm13 = vmand %vm1884_vm3, %vm1964_vm6 }
 0x4cf   :  { %v1996_v54 = vsel %vm5317_vm13, 1, %v5922_v15  ;;  %vm5328_vm4 = vmpackc.low %vm5308_vm9, %vm5317_vm13 }
 0x4d0   :  { %v6385_v45 = vsel %vm5328_vm4, 4294967295, %v6384_v45  ;;  %v2004_v46 = vadd.s32 %v1997_v14, %v1996_v54  ;;  %2596 = vmatprep.subr.msk.bf16.mxu0 %vm5328_vm4, %v2862_v2  ;;  %2616 = vmatprep.subr.msk.bf16.mxu1 %vm5328_vm4, %v2862_v2  ;;  %v1940_v40 = vpop.permute.xlu1 %1939  ;;  %v6417_v14 = vld [vmem:[#allocation21_spill] sm:$0xff] }
 0x4d1   :  { %vm1962_vm12 = vcmp.eq.s32.totalorder %v1940_v40, 1  ;;  %2597 = vmatpush3.bf16.msk.msra.mxu0 %vm5328_vm4, %v2862_v2  ;;  %2617 = vmatpush3.bf16.msk.msra.mxu1 %vm5328_vm4, %v2862_v2  ;;  %v5524_v54 = vsel %vm5308_vm9, %v6417_v14, 1073741824 }
 0x4d2   :  { %vm5346_vm15 = vmand %vm1882_vm10, %vm1962_vm12  ;;  %v1934_v30 = vpop.permute.xlu0 %1933  ;;  %vm1881_vm10 = vcmp.eq.s32.totalorder %v6243_v13, %v5198_v26  ;;  %v6398_v26 = vmov 0 }
 0x4d3   :  { %v1994_v62 = vsel %vm5346_vm15, 1, %v5922_v15  ;;  %vm1960_vm2 = vcmp.eq.s32.totalorder %v1934_v30, 1  ;;  %v6420_v30 = vld [vmem:[#allocation23_spill] sm:$0xff] }
 0x4d4   :  { %v2008_v39 = vadd.s32 %v2004_v46, %v1994_v62  ;;  %vm5355_vm1 = vmand %vm1880_vm7, %vm1960_vm2  ;;  %v1943_v37 = vpop.permute.xlu1 %1942  ;;  %v2304_v62 = vsel %vm5317_vm13, %v6420_v30, 1073741824 }
 0x4d5   :  { %v1992_v22 = vsel %vm5355_vm1, 1, %v5922_v15  ;;  %vm1963_vm11 = vcmp.eq.s32.totalorder %v1943_v37, 1 }
 0x4d6   :  { %v2002_v43 = vadd.s32 %v2008_v39, %v1992_v22  ;;  %vm5364_vm0 = vmand %vm1883_vm8, %vm1963_vm11  ;;  %v1928_v6 = vpop.permute.xlu0 %1927  ;;  %vm1879_vm8 = vcmp.eq.s32.totalorder %v6243_v13, %v5219_v27  ;;  %v6402_v27 = vmov 0  ;;  %v6421_v39 = vld [vmem:[#allocation48_spill] sm:$0xff]  ;;  %v2300_v22 = vsel %vm5355_vm1, %v6422_v57, 1073741824 }
 0x4d7   :  { %v6391_v11 = vsel %vm5364_vm0, 4294967295, %v6390_v11  ;;  %v1995_v48 = vsel %vm5364_vm0, 1, %v5922_v15  ;;  %vm5375_vm5 = vmpackc.low %vm5364_vm0, %vm5346_vm15  ;;  %vm1958_vm3 = vcmp.eq.s32.totalorder %v1928_v6, 1  ;;  %v2302_v37 = vsel %vm5346_vm15, %v6421_v39, 1073741824 }
 0x4d8   :  { %v6393_v20 = vsel %vm5375_vm5, 4294967295, %v6392_v20  ;;  %v2006_v34 = vadd.s32 %v2002_v43, %v1995_v48  ;;  %vm5381_vm6 = vmand %vm1878_vm14, %vm1958_vm3  ;;  %2598 = vmatprep.subr.msk.bf16.mxu0 %vm5375_vm5, %v2862_v2  ;;  %2618 = vmatprep.subr.msk.bf16.mxu1 %vm5375_vm5, %v2862_v2  ;;  %v1937_v51 = vpop.permute.xlu1 %1936  ;;  %v6425_v48 = vld [vmem:[#allocation33_spill] sm:$0xff] }
 0x4d9   :  { %v1990_v9 = vsel %vm5381_vm6, 1, %v5922_v15  ;;  %vm1961_vm12 = vcmp.eq.s32.totalorder %v1937_v51, 1  ;;  %2599 = vmatpush3.bf16.msk.msra.mxu0 %vm5375_vm5, %v2862_v2  ;;  %2619 = vmatpush3.bf16.msk.msra.mxu1 %vm5375_vm5, %v2862_v2  ;;  %v2298_v8 = vsel %vm5381_vm6, %v6425_v48, 1073741824 }
 0x4da   :  { %v2005_v1 = vadd.s32 %v2006_v34, %v1990_v9  ;;  %vm5402_vm7 = vmand %vm1881_vm10, %vm1961_vm12  ;;  %v1922_v35 = vpop.permute.xlu0 %1921  ;;  %vm1876_vm12 = vcmp.eq.s32.totalorder %v6243_v13, %v5221_v29  ;;  %v6426_v34 = vld [vmem:[#allocation34_spill] sm:$0xff] }
 0x4db   :  { %v1993_v33 = vsel %vm5402_vm7, 1, %v5922_v15  ;;  %vm5413_vm2 = vmpackc.low %vm5402_vm7, %vm5355_vm1  ;;  %vm1956_vm14 = vcmp.eq.s32.totalorder %v1922_v35, 1  ;;  %v2301_v4 = vsel %vm5402_vm7, %v6426_v34, 1073741824 }
 0x4dc   :  { %v6399_v26 = vsel %vm5413_vm2, 4294967295, %v6398_v26  ;;  %v2009_v61 = vadd.s32 %v2005_v1, %v1993_v33  ;;  %2600 = vmatprep.subr.msk.bf16.mxu0 %vm5413_vm2, %v2862_v2  ;;  %2620 = vmatprep.subr.msk.bf16.mxu1 %vm5413_vm2, %v2862_v2  ;;  %v1931_v60 = vpop.permute.xlu1 %1930 }
 0x4dd   :  { %vm1959_vm11 = vcmp.eq.s32.totalorder %v1931_v60, 1  ;;  %2601 = vmatpush3.bf16.msk.msra.mxu0 %vm5413_vm2, %v2862_v2  ;;  %2621 = vmatpush3.bf16.msk.msra.mxu1 %vm5413_vm2, %v2862_v2 }
 0x4de   :  { %vm5431_vm3 = vmand %vm1879_vm8, %vm1959_vm11  ;;  %v1916_v17 = vpop.permute.xlu0 %1915  ;;  %vm1877_vm11 = vcmp.eq.s32.totalorder %v6243_v13, %v5238_v32 }
 0x4df   :  { %v6401_v25 = vsel %vm5431_vm3, 4294967295, %v6400_v25  ;;  %v1991_v38 = vsel %vm5431_vm3, 1, %v5922_v15  ;;  %vm5442_vm10 = vmpackc.low %vm5431_vm3, %vm5381_vm6  ;;  %vm6429_vm6 = vcmp.eq.s32.totalorder %v6243_v13, %v5278_v58 }
 0x4e0   :  { %v6403_v27 = vsel %vm5442_vm10, 4294967295, %v6402_v27  ;;  %v2003_v44 = vadd.s32 %v2009_v61, %v1991_v38  ;;  %2602 = vmatprep.subr.msk.bf16.mxu0 %vm5442_vm10, %v2862_v2  ;;  %2622 = vmatprep.subr.msk.bf16.mxu1 %vm5442_vm10, %v2862_v2  ;;  %v1925_v31 = vpop.permute.xlu1 %1924  ;;  %vm5454_vm8 = vmand %vm1876_vm12, %vm1956_vm14  ;;  %vm1874_vm14 = vcmp.eq.s32.totalorder %v6243_v13, %v5240_v21  ;;  %v6428_v61 = vld [vmem:[#allocation32_spill] sm:$0xff] }
 0x4e1   :  { %vm1957_vm2 = vcmp.eq.s32.totalorder %v1925_v31, 1  ;;  %2603 = vmatpush3.bf16.msk.msra.mxu0 %vm5442_vm10, %v2862_v2  ;;  %2623 = vmatpush3.bf16.msk.msra.mxu1 %vm5442_vm10, %v2862_v2  ;;  %vm1872_vm10 = vcmp.eq.s32.totalorder %v6243_v13, %v5260_v16  ;;  %v1988_v63 = vsel %vm5454_vm8, 1, %v5922_v15  ;;  %v6412_v16 = vld [vmem:[#allocation38_spill] sm:$0xff] }
 0x4e2   :  { %vm5466_vm0 = vmand %vm1877_vm11, %vm1957_vm2  ;;  %v1910_v7 = vpop.permute.xlu0 %1909  ;;  %vm1875_vm11 = vcmp.eq.s32.totalorder %v6243_v13, %v5258_v55  ;;  %v2296_v49 = vsel %vm5454_vm8, %v6412_v16, 1073741824 }
 0x4e3   :  { %vm5476_vm12 = vmpackc.low %vm5466_vm0, %vm5454_vm8  ;;  %vm1952_vm5 = vcmp.eq.s32.totalorder %v1910_v7, 1  ;;  %v1989_v33 = vsel %vm5466_vm0, 1, %v5922_v15  ;;  %v2297_v60 = vsel %vm5466_vm0, %v6428_v61, 1073741824 }
 0x4e4   :  { %vm5485_vm2 = vmand %vm1872_vm10, %vm1952_vm5  ;;  %2604 = vmatprep.subr.msk.bf16.mxu0 %vm5476_vm12, %v2862_v2  ;;  %2624 = vmatprep.subr.msk.bf16.mxu1 %vm5476_vm12, %v2862_v2  ;;  %v1919_v21 = vpop.permute.xlu1 %1918  ;;  %vm1873_vm5 = vcmp.eq.s32.totalorder %v6243_v13, %v5276_v3  ;;  %vm6413_vm10 = vcmp.eq.s32.totalorder %v1916_v17, 1  ;;  %v6436_v3 = vld [vmem:[#allocation25_spill] sm:$0xff] }
 0x4e5   :  { %vm5505_vm3 = vmand %vm1874_vm14, %vm6413_vm10  ;;  %v1984_v55 = vsel %vm5485_vm2, 1, %v5922_v15  ;;  %v2292_v42 = vsel %vm5485_vm2, %v6416_v52, 1073741824  ;;  %vm1955_vm4 = vcmp.eq.s32.totalorder %v1919_v21, 1  ;;  %2605 = vmatpush3.bf16.msk.msra.mxu0 %vm5476_vm12, %v2862_v2  ;;  %2625 = vmatpush3.bf16.msk.msra.mxu1 %vm5476_vm12, %v2862_v2  ;;  %vm1871_vm10 = vcmp.eq.s32.totalorder %v6243_v13, %v5292_v24  ;;  %v6435_v21 = vld [vmem:[#allocation31_spill] sm:$0xff]  ;;  %v6439_v24 = vld [vmem:[#allocation53_spill] sm:$0xff] }
 0x4e6   :  { %v2000_v46 = vadd.s32 %v1988_v63, %v1984_v55  ;;  %vm2310_vm8 = vcmp.lt.s32.totalorder %v2292_v42, %v2296_v49  ;;  %vm5526_vm14 = vmand %vm1875_vm11, %vm1955_vm4  ;;  %v1986_v0 = vsel %vm5505_vm3, 1, %v5922_v15  ;;  %v2294_v35 = vsel %vm5505_vm3, %v6427_v18, 1073741824 }
 0x4e7   :  { %v2311_v43 = vsel %vm2310_vm8, %v2292_v42, %v2296_v49  ;;  %vm5545_vm9 = vmpackc.low %vm5526_vm14, %vm5505_vm3  ;;  %v2295_v12 = vsel %vm5526_vm14, %v6436_v3, 1073741824 }
 0x4e8   :  { %v2007_v51 = vadd.s32 %v2003_v44, %v2000_v46  ;;  %vm2318_vm13 = vcmp.lt.s32.totalorder %v2311_v43, %v2300_v22  ;;  %v1904_v28 = vpop.permute.xlu0 %1903  ;;  %2606 = vmatprep.subr.msk.bf16.mxu0 %vm5545_vm9, %v2862_v2  ;;  %2626 = vmatprep.subr.msk.bf16.mxu1 %vm5545_vm9, %v2862_v2  ;;  %v1913_v9 = vpop.permute.xlu1 %1912  ;;  %v1987_v44 = vsel %vm5526_vm14, 1, %v5922_v15 }
 0x4e9   :  { %v2319_v1 = vsel %vm2318_vm13, %v2311_v43, %v2300_v22  ;;  %vm1950_vm4 = vcmp.eq.s32.totalorder %v1904_v28, 1  ;;  %vm1953_vm15 = vcmp.eq.s32.totalorder %v1913_v9, 1  ;;  %2607 = vmatpush3.bf16.msk.msra.mxu0 %vm5545_vm9, %v2862_v2  ;;  %2627 = vmatpush3.bf16.msk.msra.mxu1 %vm5545_vm9, %v2862_v2 }
 0x4ea   :  { %vm2326_vm1 = vcmp.lt.s32.totalorder %v2319_v1, %v2304_v62  ;;  %vm5582_vm7 = vmand %vm6429_vm6, %vm1950_vm4  ;;  %vm6441_vm6 = vnez %v6401_v25  ;;  %v6443_v25 = vld [vmem:[#allocation27_spill] sm:$0xff] }
 0x4eb   :  { %v2327_v38 = vsel %vm2326_vm1, %v2319_v1, %v2304_v62  ;;  %v1982_v31 = vsel %vm5582_vm7, 1, %v5922_v15  ;;  %v2290_v29 = vsel %vm5582_vm7, %v6432_v56, 1073741824  ;;  %vm1969_vm0 = vmand %vm1873_vm5, %vm1953_vm15 }
 0x4ec   :  { %v1998_v58 = vadd.s32 %v1986_v0, %v1982_v31  ;;  %vm2306_vm3 = vcmp.lt.s32.totalorder %v2290_v29, %v2294_v35  ;;  %v1985_v7 = vsel %vm1969_vm0, 1, %v5922_v15  ;;  %vm5601_vm11 = vmpackc.low %vm1969_vm0, %vm5485_vm2  ;;  %v2293_v16 = vsel %vm1969_vm0, %v6435_v21, 1073741824  ;;  %v1907_v49 = vpop.permute.xlu1 %1906 }
 0x4ed   :  { %v2307_v53 = vsel %vm2306_vm3, %v2290_v29, %v2294_v35  ;;  %v2001_v55 = vadd.s32 %v1989_v33, %v1985_v7  ;;  %vm2312_vm8 = vcmp.lt.s32.totalorder %v2293_v16, %v2297_v60  ;;  %2608 = vmatprep.subr.msk.bf16.mxu0 %vm5601_vm11, %v2862_v2  ;;  %2628 = vmatprep.subr.msk.bf16.mxu1 %vm5601_vm11, %v2862_v2  ;;  %vm1951_vm5 = vcmp.eq.s32.totalorder %v1907_v49, 1 }
 0x4ee   :  { %v2010_v52 = vadd.s32 %v2007_v51, %v1998_v58  ;;  %vm2314_vm2 = vcmp.lt.s32.totalorder %v2307_v53, %v2298_v8  ;;  %v2313_v42 = vsel %vm2312_vm8, %v2293_v16, %v2297_v60  ;;  %vm1967_vm13 = vmand %vm1871_vm10, %vm1951_vm5  ;;  %2609 = vmatpush3.bf16.msk.msra.mxu0 %vm5601_vm11, %v2862_v2  ;;  %2629 = vmatpush3.bf16.msk.msra.mxu1 %vm5601_vm11, %v2862_v2 }
 0x4ef   :  { %v2315_v14 = vsel %vm2314_vm2, %v2307_v53, %v2298_v8  ;;  %vm2320_vm4 = vcmp.lt.s32.totalorder %v2313_v42, %v2301_v4  ;;  %v1983_v46 = vsel %vm1967_vm13, 1, %v5922_v15  ;;  %vm5627_vm14 = vmpackc.low %vm1967_vm13, %vm5582_vm7  ;;  %v2291_v30 = vsel %vm1967_vm13, %v6439_v24, 1073741824  ;;  %v6440_v15 = vld [vmem:[#allocation37_spill] sm:$0xff] }
 0x4f0   :  { %vm2322_vm10 = vcmp.lt.s32.totalorder %v2315_v14, %v2302_v37  ;;  %v2011_v62 = vadd.s32 %v2010_v52, %v2001_v55  ;;  %v2321_v39 = vsel %vm2320_vm4, %v2313_v42, %v2301_v4  ;;  %v1999_v57 = vadd.s32 %v1987_v44, %v1983_v46  ;;  %2610 = vmatprep.subr.msk.bf16.mxu0 %vm5627_vm14, %v2862_v2 }
 0x4f1   :  { %v2323_v22 = vsel %vm2322_vm10, %v2315_v14, %v2302_v37  ;;  %vm2328_vm15 = vcmp.lt.s32.totalorder %v2321_v39, %v5524_v54  ;;  %vm2308_vm1 = vcmp.lt.s32.totalorder %v2291_v30, %v2295_v12  ;;  %2630 = vmatprep.subr.msk.bf16.mxu1 %vm5627_vm14, %v2862_v2  ;;  %v2299_v43 = vsel %vm6441_vm6, %v6440_v15, 1073741824 }
 0x4f2   :  { %v2329_v48 = vsel %vm2328_vm15, %v2321_v39, %v5524_v54  ;;  %v2012_v8 = vadd.s32 %v2011_v62, %v1999_v57  ;;  %v2309_v34 = vsel %vm2308_vm1, %v2291_v30, %v2295_v12  ;;  %2611 = vmatpush3.bf16.msk.msra.mxu0 %vm5627_vm14, %v2862_v2  ;;  %2631 = vmatpush3.bf16.msk.msra.mxu1 %vm5627_vm14, %v2862_v2  ;;  %vm2402_vm1 = vcmp.eq.s32.totalorder %v4024_v41, 0 }
 0x4f3   :  { %vm2332_vm7 = vcmp.lt.s32.totalorder %v2327_v38, %v2329_v48  ;;  %vm2316_vm0 = vcmp.lt.s32.totalorder %v2309_v34, %v2299_v43  ;;  %vm6442_vm3 = vnez %v6385_v45  ;;  %vm6444_vm8 = vnez %v6391_v11 }
 0x4f4   :  { %2636 = vmatprep.subr.msk.bf16.mxu0 %vm6442_vm3, %v2862_v2  ;;  %v2303_v54 = vsel %vm6444_vm8, %v6443_v25, 1073741824  ;;  %v2333_v37 = vsel %vm2332_vm7, %v2327_v38, %v2329_v48  ;;  %v2317_v4 = vsel %vm2316_vm0, %v2309_v34, %v2299_v43  ;;  %v2013_v51 = vrot.slane %v2012_v8, 4 }
 0x4f5   :  { %vm2324_vm5 = vcmp.lt.s32.totalorder %v2317_v4, %v2303_v54  ;;  %2613 = vmatmul.mubr.bf16.vlgmr.msra.gmra.mxu0 %v5066_v36  ;;  %2633 = vmatmul.mubr.bf16.vlgmr.msra.gmra.mxu1 %v5055_v59  ;;  %vm6445_vm13 = vnez %v6393_v20  ;;  %vm6446_vm10 = vnez %v6399_v26  ;;  %vm6447_vm15 = vnez %v6403_v27 }
 0x4f6   :  { %v2325_v28 = vsel %vm2324_vm5, %v2317_v4, %v2303_v54  ;;  %2637 = vmatpush3.bf16.msk.msra.mxu0 %vm6442_vm3, %v2862_v2  ;;  %2652 = vmatprep.mubr.bf16.mxu0 %v2109_v47  ;;  %v2014_v9 = vadd.s32 %v2013_v51, %v2012_v8 }
 0x4f7   :  { %vm2330_vm2 = vcmp.lt.s32.totalorder %v2323_v22, %v2325_v28  ;;  %2638 = vmatprep.subr.msk.bf16.mxu0 %vm6445_vm13, %v2862_v2 }
 0x4f8   :  { %v2331_v11 = vsel %vm2330_vm2, %v2323_v22, %v2325_v28  ;;  %v2015_v0 = vrot.slane %v2014_v9, 2 }
 0x4f9   :  { %vm2334_vm4 = vcmp.lt.s32.totalorder %v2331_v11, %v2333_v37 }
 0x4fa   :  { %v2335_v36 = vsel %vm2334_vm4, %v2331_v11, %v2333_v37  ;;  %2639 = vmatpush3.bf16.msk.msra.mxu0 %vm6445_vm13, %v2862_v2  ;;  %v2016_v59 = vadd.s32 %v2015_v0, %v2014_v9 }
 0x4fb   :  { %2640 = vmatprep.subr.msk.bf16.mxu0 %vm6446_vm10, %v2862_v2  ;;  %v2336_v60 = vrot.slane %v2335_v36, 4 }
 0x4fc   :  { %v2017_v10 = vrot.slane %v2016_v59, 1 }
 0x4fe   :  { %2641 = vmatpush3.bf16.msk.msra.mxu0 %vm6446_vm10, %v2862_v2  ;;  %v2018_v19 = vadd.s32 %v2017_v10, %v2016_v59 }
 0x4ff   :  { %2642 = vmatprep.subr.msk.bf16.mxu0 %vm6447_vm15, %v2862_v2 }
 0x500   :  { %2019 = vst [vmem:[#allocation7] sm:$0x1] %v2018_v19 }
 0x502   :  { %2643 = vmatpush3.bf16.msk.msra.mxu0 %vm6447_vm15, %v2862_v2 }
 0x503   :  { %2644 = vmatprep.subr.msk.bf16.mxu0 %vm5476_vm12, %v2862_v2 }
 0x506   :  { %2645 = vmatpush3.bf16.msk.msra.mxu0 %vm5476_vm12, %v2862_v2  ;;  %vm2337_vm12 = vcmp.lt.s32.totalorder %v2335_v36, %v2336_v60 }
 0x507   :  { %2646 = vmatprep.subr.msk.bf16.mxu0 %vm5545_vm9, %v2862_v2 }
 0x50a   :  { %2647 = vmatpush3.bf16.msk.msra.mxu0 %vm5545_vm9, %v2862_v2 }
 0x50b   :  { %2648 = vmatprep.subr.msk.bf16.mxu0 %vm5601_vm11, %v2862_v2 }
 0x50e   :  { %2649 = vmatpush3.bf16.msk.msra.mxu0 %vm5601_vm11, %v2862_v2 }
 0x50f   :  { %2650 = vmatprep.subr.msk.bf16.mxu0 %vm5627_vm14, %v2862_v2 }
 0x512   :  { %2651 = vmatpush3.bf16.msk.msra.mxu0 %vm5627_vm14, %v2862_v2  ;;  %v2338_v2 = vsel %vm2337_vm12, %v2335_v36, %v2336_v60  ;;  %vm2403_vm14 = vcmp.eq.s32.totalorder %v4024_v41, 1 }
 0x513   :  { %v2339_v17 = vrot.slane %v2338_v2, 2 }
 0x515   :  { %2653 = vmatmul.mubr.bf16.vlgmr.msra.gmra.mxu0 %v2110_v50  ;;  %v2388_v47 = vpop.xlane.xlu0 %2387  ;;  %vm2340_vm9 = vcmp.lt.s32.totalorder %v2338_v2, %v2339_v17 }
 0x516   :  { %v2390_v45 = vcvt.f32.s32 %v2388_v47  ;;  %v2341_v5 = vsel %vm2340_vm9, %v2338_v2, %v2339_v17 }
 0x517   :  { %v2342_v23 = vrot.slane %v2341_v5, 1 }
 0x518   :  { %v2391_v26 = vshll.u32 %v2390_v45, 16 }
 0x519   :  { %vm2343_vm11 = vcmp.lt.s32.totalorder %v2341_v5, %v2342_v23 }
 0x51a   :  { %v2344_v50 = vsel %vm2343_vm11, %v2341_v5, %v2342_v23 }
 0x51b   :  { %v2346_v38 = vshra.s32 %v2344_v50, 9  ;;  %v2345_v31 = vand.u32 511, %v2344_v50  ;;  %v2348_v29 = vshra.s32 %v2344_v50, 18 }
 0x51d   :  { %v2347_v44 = vand.u32 511, %v2346_v38 }
 0x51e   :  { %v2386_v20 = vpop.xlane.xlu1 %2385 }
 0x51f   :  { %v2389_v27 = vcvt.f32.s32 %v2386_v20  ;;  %v2404_v56 = vsel %vm2403_vm14, %v2347_v44, %v2345_v31 }
 0x520   :  { %v2405_v7 = vsel %vm2402_vm1, %v2348_v29, %v2404_v56 }
 0x521   :  { %v2392_v32 = vadd.s32 %v2391_v26, %v2389_v27 }
 0x523   :  { %v2393_v6 = vrot.slane %v2392_v32, 4 }
 0x525   :  { %v2394_v1 = vadd.s32 %v2393_v6, %v2392_v32 }
 0x527   :  { %v2395_v18 = vrot.slane %v2394_v1, 2 }
 0x529   :  { %v2396_v35 = vadd.s32 %v2395_v18, %v2394_v1 }
 0x52b   :  { %v2397_v33 = vrot.slane %v2396_v35, 1 }
 0x52d   :  { %v2398_v61 = vadd.s32 %v2397_v33, %v2396_v35 }
 0x52f   :  { %2758 = vpush %v2398_v61 }
 0x560   :  { %s2759_s1 = spop %2758 }
 0x561   :  { %p2400_p0 = scmp.lt.s32.totalorder %s2759_s1, 64 }
 0x563   :  { %s6449_s1 = smov (!%p2400_p0, %s2759_s1), 64 }
 0x564   :  { %v2406_v58 = vstv %s6449_s1  ;;  %2411 = sst [smem:[#allocation8]] %s6449_s1 }
 0x565   :  { %vm2407_vm6 = vcmp.lt.s32.totalorder %v6243_v13, %v2406_v58  ;;  %2451 = dma.smem_to_hbm %s2865_s11, 16, %s5728_s5, [#allocation4]  }
 0x566   :  { %v2408_v63 = vsel %vm2407_vm6, %v2405_v7, 4294967295 }
 0x567   :  { %2409 = vst [vmem:[#allocation5] sm:$0x7] %v2408_v63 }
 0x568   :  { %2801 = shalt.err (!%p2798_p5)
}
 0x569   :  { %2433 = dma.vmem_to_hbm [thread:$0]  %s2431_s8, 64, %s5726_s3, [#allocation6]  }
 0x56a   :  { %s2810_s17 = scalar_lea.vmem %s2441_s10, 16  ;;  %s2814_s18 = scalar_lea.vmem %s2441_s10, 32 }
 0x56b   :  { %p2811_p6 = scmp.ne.s32.totalorder %s2441_s10, %s2810_s17  ;;  %p2815_p7 = scmp.lt.s32.totalorder %s2441_s10, %s2441_s10 }
 0x56c   :  { %p2816_p8 = scmp.lt.s32.totalorder %s2814_s18, %s2810_s17 }
 0x56e   :  { %p2817_p9 = por %p2816_p8, %p2815_p7 }
 0x570   :  { %p2818_p10 = pnand %p2817_p9, %p2811_p6 }
 0x572   :  { %2821 = shalt.err (!%p2818_p10)
}
 0x573   :  { %2443 = dma.vmem_to_hbm [thread:$0]  %s2441_s10, 16, %s5727_s4, [#allocation6]  }
 0x574   :  { %s2866_s3 = smov [#allocation2]  }
 0x575   :  { %s2417_s20 = sshll.u32 %s2866_s3, 4  ;;  %s2418_s20 = int_to_ptr.vmem [resolvable:$true] %s2417_s20 }
 0x576   :  { %s2830_s4 = scalar_lea.vmem %s2418_s20, 512  ;;  %p2835_p12 = scmp.lt.s32.totalorder %s2418_s20, %s2418_s20 }
 0x577   :  { %p2831_p11 = scmp.ne.s32.totalorder %s2418_s20, %s2830_s4  ;;  %p2836_p13 = scmp.lt.s32.totalorder %s2830_s4, %s2830_s4 }
 0x579   :  { %p2837_p0 = por %p2836_p13, %p2835_p12 }
 0x57b   :  { %p2838_p1 = pnand %p2837_p0, %p2831_p11 }
 0x5b5   :  { %v2614_v41 = vpop.f32.mrf.mxu0  ;;  %v2634_v13 = vpop.f32.mrf.mxu1 }
 0x5b6   :  { %v2227_v3 = vadd.f32 %v2634_v13, %v2614_v41 }
 0x5b7   :  { %v2169_v21 = vpop.f32.mrf.mxu0  ;;  %v2218_v16 = vpop.f32.mrf.mxu1 }
 0x5b8   :  { %v2219_v52 = vadd.f32 %v2218_v16, %v2169_v21 }
 0x5b9   :  { %v2615_v49 = vpop.f32.mrf.mxu0  ;;  %v2635_v53 = vpop.f32.mrf.mxu1 }
 0x5ba   :  { %v2230_v40 = vadd.f32 %v2635_v53, %v2615_v49 }
 0x5bb   :  { %v2172_v55 = vpop.f32.mrf.mxu0  ;;  %v2221_v14 = vpop.f32.mrf.mxu1 }
 0x5bc   :  { %v2222_v62 = vadd.f32 %v2221_v14, %v2172_v55 }
 0x5d5   :  { %v2654_v12 = vpop.f32.mrf.mxu0 }
 0x5d6   :  { %v2284_v42 = vadd.f32 %v2654_v12, %v2227_v3 }
 0x5d7   :  { %v2267_v46 = vpop.f32.mrf.mxu0 }
 0x5d8   :  { %2288 = vst [vmem:[#allocation2 + $0x10] sm:$0xff] %v2284_v42  ;;  %v2282_v24 = vadd.f32 %v2267_v46, %v2219_v52 }
 0x5d9   :  { %v2655_v30 = vpop.f32.mrf.mxu0 }
 0x5da   :  { %2286 = vst [vmem:[#allocation2] sm:$0xff] %v2282_v24  ;;  %v2285_v39 = vadd.f32 %v2655_v30, %v2230_v40 }
 0x5db   :  { %v2270_v57 = vpop.f32.mrf.mxu0 }
 0x5dc   :  { %2289 = vst [vmem:[#allocation2 + $0x18] sm:$0xff] %v2285_v39  ;;  %v2283_v22 = vadd.f32 %v2270_v57, %v2222_v62 }
 0x5de   :  { %2287 = vst [vmem:[#allocation2 + $0x8] sm:$0xff] %v2283_v22 }
 0x5df   :  { %2841 = shalt.err (!%p2838_p1)
}
 0x5e0   :  { %s2867_s21 = smov 128   ;;  %s2868_s22 = smov 8  }
 0x5e1   :  { %2423 = dma.vmem_to_hbm [thread:$0]  %s2418_s20, 512, %s5725_s2, [#allocation3], %s2867_s21, %s2867_s21, %s2868_s22  }
 0x5e2   :  { %2850 = dma.done.wait [#allocation3], 512  }
 0x5e3   :  { %2851 = vsyncadd [#allocation3], 4294966784 }
 0x5e4   :  { %2852 = dma.done.wait [#allocation6], 80  }
 0x5e5   :  { %2853 = vsyncadd [#allocation6], 4294967216 }
 0x5e6   :  { %2854 = dma.done.wait [#allocation4], 16  }
 0x5e7   :  { %2855 = vsyncadd [#allocation4], 4294967280 }
 0x5e8   :  { %2464 = sfence }
 0x5e9   :  { %2465 = vsyncpa [#allocation3], 1 }
 0x5ea   :  { %2466 = vsyncpa [#allocation6], 1 }
 0x5eb   :  { %2467 = vsyncpa [#allocation4], 1 }

</bundles_post_ra>
